<compile_context>
chip_gen: v5e
topology: v5e:2x2
jax: 0.10.0
libtpu: 0.0.40
codegen_flags: <defaults>
</compile_context>

<pallas_src>
import functools

import jax
import jax.numpy as jnp
from jax.experimental import pallas as pl
from jax.experimental.pallas import tpu as pltpu


def _swish(t):
    return t * jax.nn.sigmoid(t)


def _res_down_kernel(xg_ref, t_ref, wn_ref, bn_ref, wd_ref, bd_ref,
                     w1_ref, b1_ref, w2_ref, b2_ref, wi_ref, bi_ref,
                     out_ref, pad_scr, *, Ho, Wo, matmul_dtype):
    Np = Ho * Wo
    Cout = wd_ref.shape[-1]
    Hg = Ho + 1                      # rows per parity grid of the padded input

    def mm(a, w):
        return jnp.dot(a.astype(matmul_dtype), w.astype(matmul_dtype),
                       preferred_element_type=jnp.float32)

    # FeatureWiseAffine (use_affine_level=False): per-batch channel shift.
    nb = mm(t_ref[0], wn_ref[...]) + bn_ref[...]                 # [1, Cout]

    # Parity grids of the zero-padded input; grid gi = 2*row_parity + col_parity.
    g_raw = [xg_ref[0, pl.ds(gi * Hg, Hg), :, :] for gi in range(4)]
    a = [_swish(t) for t in g_raw]          # swish(x); swish(0)=0 keeps pads zero

    # identity path input: x sampled at stride-2 positions (un-swished, parity (1,1)).
    x_id = g_raw[3][:Ho, :Wo, :].reshape(Np, -1)

    # ---- conv_down: 3x3 / stride 2 / pad 1; bias folded into the accumulator.
    acc = bd_ref[...]
    for ky in range(3):
        for kx in range(3):
            gi = (ky % 2) * 2 + (kx % 2)
            tap = a[gi][ky // 2: ky // 2 + Ho, kx // 2: kx // 2 + Wo, :]
            acc = acc + mm(tap.reshape(Np, -1), wd_ref[ky * 3 + kx])
    h1 = _swish(acc)                                             # [Np, Cout]

    # Halo scratch (zero border == pad 1) shared by conv1 and conv2.
    pad_scr[...] = jnp.zeros(pad_scr.shape, pad_scr.dtype)
    pad_scr[pl.ds(1, Ho), pl.ds(1, Wo), :] = h1.reshape(Ho, Wo, Cout)

    # ---- conv1: bias + noise shift fused into the accumulator init.
    acc = b1_ref[...] + nb
    for ky in range(3):
        for kx in range(3):
            tap = pad_scr[pl.ds(ky, Ho), pl.ds(kx, Wo), :]
            acc = acc + mm(tap.reshape(Np, Cout), w1_ref[ky * 3 + kx])
    x2 = acc

    # dropout: eval-mode identity.
    # TODO(synk): nn.Dropout train-mode randomness not reproduced.
    pad_scr[pl.ds(1, Ho), pl.ds(1, Wo), :] = _swish(x2).reshape(Ho, Wo, Cout)

    # ---- conv2: bias + identity(1x1, stride 2) residual fused into the init.
    acc = mm(x_id, wi_ref[...]) + bi_ref[...] + b2_ref[...]
    for ky in range(3):
        for kx in range(3):
            tap = pad_scr[pl.ds(ky, Ho), pl.ds(kx, Wo), :]
            acc = acc + mm(tap.reshape(Np, Cout), w2_ref[ky * 3 + kx])

    out_ref[0] = acc.reshape(Ho, Wo, Cout).astype(out_ref.dtype)


def res_down_forward(x_nchw, time_emb, params, *, use_bf16_matmul=False):
    """Pallas forward. x_nchw: [B, C, H, W]; time_emb: [B, E]. Returns [B, Cout, H/2, W/2]."""
    wd, bd, w1, b1, w2, b2, wi, bi, wn, bn = params
    B, C, H, W = x_nchw.shape
    Cout = wd.shape[0]
    if C != Cout:
        raise ValueError("res_down requires dim == out_dim (identity conv).")
    if H % 2 or W % 2:
        raise ValueError("H and W must be even.")
    Ho, Wo = H // 2, W // 2
    E = wn.shape[1]

    # Layout plumbing (no byte inflation beyond the +1 halo): NCHW -> NHWC,
    # zero-pad by 1, space-to-depth into 4 parity grids stacked along rows.
    x_nhwc = jnp.transpose(x_nchw.astype(jnp.float32), (0, 2, 3, 1))
    xpad = jnp.pad(x_nhwc, ((0, 0), (1, 1), (1, 1), (0, 0)))
    xg = (xpad.reshape(B, Ho + 1, 2, Wo + 1, 2, C)
              .transpose(0, 2, 4, 1, 3, 5)
              .reshape(B, 4 * (Ho + 1), Wo + 1, C))

    # Weight layouts for [pixels, Cin] @ [Cin, Cout] matmuls.
    def conv3x3_w(w):   # torch OIHW [Co, Ci, 3, 3] -> [9, Ci, Co], k = ky*3 + kx
        return jnp.transpose(w, (2, 3, 1, 0)).reshape(9, w.shape[1], w.shape[0]).astype(jnp.float32)

    wd_f, w1_f, w2_f = conv3x3_w(wd), conv3x3_w(w1), conv3x3_w(w2)
    wi_m = jnp.transpose(wi[:, :, 0, 0], (1, 0)).astype(jnp.float32)   # [Ci, Co]
    wn_m = jnp.transpose(wn, (1, 0)).astype(jnp.float32)               # [E, Co]
    b2d = lambda b: b.reshape(1, -1).astype(jnp.float32)
    t3 = time_emb.reshape(B, 1, E).astype(jnp.float32)

    kernel = functools.partial(
        _res_down_kernel, Ho=Ho, Wo=Wo,
        matmul_dtype=jnp.bfloat16 if use_bf16_matmul else jnp.float32)

    Np = Ho * Wo
    flops = B * (2 * Np * Cout * (9 * C + 18 * Cout + C) + 2 * E * Cout)
    transcendentals = B * (4 * (Ho + 1) * (Wo + 1) * C + 2 * Np * Cout)
    bytes_accessed = 4 * (xg.size + t3.size + wd_f.size + w1_f.size + w2_f.size
                          + wi_m.size + wn_m.size + 6 * Cout + B * Np * Cout)

    out_nhwc = pl.pallas_call(
        kernel,
        out_shape=jax.ShapeDtypeStruct((B, Ho, Wo, Cout), jnp.float32),
        grid=(B,),
        in_specs=[
            pl.BlockSpec((1, 4 * (Ho + 1), Wo + 1, C), lambda b: (b, 0, 0, 0)),  # parity grids
            pl.BlockSpec((1, 1, E), lambda b: (b, 0, 0)),                        # time embedding
            pl.BlockSpec((E, Cout), lambda b: (0, 0)),                           # noise linear W
            pl.BlockSpec((1, Cout), lambda b: (0, 0)),                           # noise linear b
            pl.BlockSpec((9, C, Cout), lambda b: (0, 0, 0)),                     # conv_down W
            pl.BlockSpec((1, Cout), lambda b: (0, 0)),                           # conv_down b
            pl.BlockSpec((9, Cout, Cout), lambda b: (0, 0, 0)),                  # conv1 W
            pl.BlockSpec((1, Cout), lambda b: (0, 0)),                           # conv1 b
            pl.BlockSpec((9, Cout, Cout), lambda b: (0, 0, 0)),                  # conv2 W
            pl.BlockSpec((1, Cout), lambda b: (0, 0)),                           # conv2 b
            pl.BlockSpec((C, Cout), lambda b: (0, 0)),                           # identity W
            pl.BlockSpec((1, Cout), lambda b: (0, 0)),                           # identity b
        ],
        out_specs=pl.BlockSpec((1, Ho, Wo, Cout), lambda b: (b, 0, 0, 0)),
        scratch_shapes=[pltpu.VMEM((Ho + 2, Wo + 2, Cout), jnp.float32)],
        compiler_params=pltpu.CompilerParams(
            dimension_semantics=("parallel",),
            vmem_limit_bytes=48 * 1024 * 1024),
        cost_estimate=pl.CostEstimate(
            flops=int(flops), transcendentals=int(transcendentals),
            bytes_accessed=int(bytes_accessed)),
    )(xg, t3, wn_m, b2d(bn), wd_f, b2d(bd), w1_f, b2d(b1),
      w2_f, b2d(b2), wi_m, b2d(bi))

    return jnp.transpose(out_nhwc, (0, 3, 1, 2))   # back to NCHW


def reference_forward(x, time_emb, params):
    """Pure-JAX reference matching the PyTorch module (eval mode)."""
    wd, bd, w1, b1, w2, b2, wi, bi, wn, bn = params
    dn = ("NCHW", "OIHW", "NCHW")
    hp = jax.lax.Precision.HIGHEST

    def conv(a, w, s, p):
        return jax.lax.conv_general_dilated(a, w, (s, s), ((p, p), (p, p)),
                                            dimension_numbers=dn, precision=hp)

    sw = lambda t: t * jax.nn.sigmoid(t)
    h0 = conv(sw(x), wd, 2, 1) + bd[None, :, None, None]
    x1 = conv(sw(h0), w1, 1, 1) + b1[None, :, None, None]
    nb = jnp.dot(time_emb, wn.T, precision=hp) + bn
    x2 = x1 + nb[:, :, None, None]
    x3 = conv(sw(x2), w2, 1, 1) + b2[None, :, None, None]   # dropout: identity (eval)
    idt = conv(x, wi, 2, 0) + bi[None, :, None, None]
    return x3 + idt


if __name__ == "__main__":
    # Small deterministic config: dim == out_dim (required by the module itself).
    B, C, H, W = 2, 8, 16, 16
    Cout, E = 8, 32

    key = jax.random.PRNGKey(0)
    ks = jax.random.split(key, 12)
    x = jax.random.normal(ks[0], (B, C, H, W), jnp.float32)
    t = jax.random.normal(ks[1], (B, E), jnp.float32)
    wd = 0.1 * jax.random.normal(ks[2], (Cout, C, 3, 3), jnp.float32)     # OIHW
    bd = 0.1 * jax.random.normal(ks[3], (Cout,), jnp.float32)
    w1 = 0.1 * jax.random.normal(ks[4], (Cout, Cout, 3, 3), jnp.float32)
    b1 = 0.1 * jax.random.normal(ks[5], (Cout,), jnp.float32)
    w2 = 0.1 * jax.random.normal(ks[6], (Cout, Cout, 3, 3), jnp.float32)
    b2 = 0.1 * jax.random.normal(ks[7], (Cout,), jnp.float32)
    wi = 0.1 * jax.random.normal(ks[8], (Cout, Cout, 1, 1), jnp.float32)  # 1x1, stride 2
    bi = 0.1 * jax.random.normal(ks[9], (Cout,), jnp.float32)
    wn = 0.1 * jax.random.normal(ks[10], (Cout, E), jnp.float32)          # Linear weight
    bn = 0.1 * jax.random.normal(ks[11], (Cout,), jnp.float32)
    params = (wd, bd, w1, b1, w2, b2, wi, bi, wn, bn)

    out = jax.block_until_ready(res_down_forward(x, t, params))
    assert out.shape == (B, Cout, H // 2, W // 2), out.shape

    ref = jax.block_until_ready(reference_forward(x, t, params))
    max_err = float(jnp.max(jnp.abs(out - ref)))
    if max_err > 2e-3:
        raise AssertionError(f"Pallas kernel mismatch vs reference: {max_err}")

    print("KERNEL_OK")
</pallas_src>

<mosaic_0001>
module attributes {stable_mosaic.version = 11 : i64} {
  func.func @_res_down_kernel(%arg0: i32, %arg1: memref<1x36x9x8xf32, #tpu.memory_space<vmem>>, %arg2: memref<1x1x32xf32, #tpu.memory_space<vmem>>, %arg3: memref<32x8xf32, #tpu.memory_space<vmem>>, %arg4: memref<1x8xf32, #tpu.memory_space<vmem>>, %arg5: memref<9x8x8xf32, #tpu.memory_space<vmem>>, %arg6: memref<1x8xf32, #tpu.memory_space<vmem>>, %arg7: memref<9x8x8xf32, #tpu.memory_space<vmem>>, %arg8: memref<1x8xf32, #tpu.memory_space<vmem>>, %arg9: memref<9x8x8xf32, #tpu.memory_space<vmem>>, %arg10: memref<1x8xf32, #tpu.memory_space<vmem>>, %arg11: memref<8x8xf32, #tpu.memory_space<vmem>>, %arg12: memref<1x8xf32, #tpu.memory_space<vmem>>, %arg13: memref<1x8x8x8xf32, #tpu.memory_space<vmem>>, %arg14: memref<10x10x8xf32, #tpu.memory_space<vmem>>) attributes {dimension_semantics = [#tpu.dimension_semantics<parallel>], iteration_bounds = array<i64: 2>, scalar_prefetch = 0 : i64, scratch_operands = 1 : i64, tpu.core_type = #tpu.core_type<tc>, window_params = [{transform_indices = @transform_0, window_bounds = array<i64: 1, 36, 9, 8>}, {transform_indices = @transform_1, window_bounds = array<i64: 1, 1, 32>}, {pipeline_mode = #tpu.pipeline_mode<synchronous>, transform_indices = @transform_2, window_bounds = array<i64: 32, 8>}, {pipeline_mode = #tpu.pipeline_mode<synchronous>, transform_indices = @transform_3, window_bounds = array<i64: 1, 8>}, {pipeline_mode = #tpu.pipeline_mode<synchronous>, transform_indices = @transform_4, window_bounds = array<i64: 9, 8, 8>}, {pipeline_mode = #tpu.pipeline_mode<synchronous>, transform_indices = @transform_5, window_bounds = array<i64: 1, 8>}, {pipeline_mode = #tpu.pipeline_mode<synchronous>, transform_indices = @transform_6, window_bounds = array<i64: 9, 8, 8>}, {pipeline_mode = #tpu.pipeline_mode<synchronous>, transform_indices = @transform_7, window_bounds = array<i64: 1, 8>}, {pipeline_mode = #tpu.pipeline_mode<synchronous>, transform_indices = @transform_8, window_bounds = array<i64: 9, 8, 8>}, {pipeline_mode = #tpu.pipeline_mode<synchronous>, transform_indices = @transform_9, window_bounds = array<i64: 1, 8>}, {pipeline_mode = #tpu.pipeline_mode<synchronous>, transform_indices = @transform_10, window_bounds = array<i64: 8, 8>}, {pipeline_mode = #tpu.pipeline_mode<synchronous>, transform_indices = @transform_11, window_bounds = array<i64: 1, 8>}, {transform_indices = @transform_12, window_bounds = array<i64: 1, 8, 8, 8>}]} {
    %c0 = arith.constant 0 : index
    %c0_0 = arith.constant 0 : index
    %c0_1 = arith.constant 0 : index
    %0 = vector.load %arg2[%c0, %c0_0, %c0_1] : memref<1x1x32xf32, #tpu.memory_space<vmem>>, vector<1x1x32xf32>
    %1 = vector.shape_cast %0 : vector<1x1x32xf32> to vector<1x32xf32>
    %c0_2 = arith.constant 0 : index
    %c0_3 = arith.constant 0 : index
    %2 = vector.load %arg3[%c0_2, %c0_3] : memref<32x8xf32, #tpu.memory_space<vmem>>, vector<32x8xf32>
    %cst = arith.constant dense<0.000000e+00> : vector<1x8xf32>
    %3 = tpu.matmul %1, %2, %cst {dimension_numbers = #tpu.dot_dimension_numbers<[1], [0], [0], [1], [0, 0, 1, 1], [], []>} : vector<1x32xf32>, vector<32x8xf32>, vector<1x8xf32> -> vector<1x8xf32>
    %c0_4 = arith.constant 0 : index
    %c0_5 = arith.constant 0 : index
    %4 = vector.load %arg4[%c0_4, %c0_5] : memref<1x8xf32, #tpu.memory_space<vmem>>, vector<1x8xf32>
    %5 = arith.addf %3, %4 : vector<1x8xf32>
    %c0_6 = arith.constant 0 : index
    %c0_7 = arith.constant 0 : index
    %c0_8 = arith.constant 0 : index
    %c0_9 = arith.constant 0 : index
    %6 = vector.load %arg1[%c0_6, %c0_7, %c0_8, %c0_9] : memref<1x36x9x8xf32, #tpu.memory_space<vmem>>, vector<1x9x9x8xf32>
    %7 = vector.shape_cast %6 : vector<1x9x9x8xf32> to vector<9x9x8xf32>
    %c0_10 = arith.constant 0 : index
    %c9 = arith.constant 9 : index
    %c0_11 = arith.constant 0 : index
    %c0_12 = arith.constant 0 : index
    %8 = vector.load %arg1[%c0_10, %c9, %c0_11, %c0_12] : memref<1x36x9x8xf32, #tpu.memory_space<vmem>>, vector<1x9x9x8xf32>
    %9 = vector.shape_cast %8 : vector<1x9x9x8xf32> to vector<9x9x8xf32>
    %c0_13 = arith.constant 0 : index
    %c18 = arith.constant 18 : index
    %c0_14 = arith.constant 0 : index
    %c0_15 = arith.constant 0 : index
    %10 = vector.load %arg1[%c0_13, %c18, %c0_14, %c0_15] : memref<1x36x9x8xf32, #tpu.memory_space<vmem>>, vector<1x9x9x8xf32>
    %11 = vector.shape_cast %10 : vector<1x9x9x8xf32> to vector<9x9x8xf32>
    %c0_16 = arith.constant 0 : index
    %c27 = arith.constant 27 : index
    %c0_17 = arith.constant 0 : index
    %c0_18 = arith.constant 0 : index
    %12 = vector.load %arg1[%c0_16, %c27, %c0_17, %c0_18] : memref<1x36x9x8xf32, #tpu.memory_space<vmem>>, vector<1x9x9x8xf32>
    %13 = vector.shape_cast %12 : vector<1x9x9x8xf32> to vector<9x9x8xf32>
    %14 = arith.negf %7 : vector<9x9x8xf32>
    %15 = math.exp %14 : vector<9x9x8xf32>
    %cst_19 = arith.constant 1.000000e+00 : f32
    %16 = vector.broadcast %cst_19 : f32 to vector<9x9x8xf32>
    %17 = arith.addf %16, %15 : vector<9x9x8xf32>
    %18 = arith.divf %16, %17 : vector<9x9x8xf32>
    %19 = arith.mulf %7, %18 : vector<9x9x8xf32>
    %20 = arith.negf %9 : vector<9x9x8xf32>
    %21 = math.exp %20 : vector<9x9x8xf32>
    %cst_20 = arith.constant 1.000000e+00 : f32
    %22 = vector.broadcast %cst_20 : f32 to vector<9x9x8xf32>
    %23 = arith.addf %22, %21 : vector<9x9x8xf32>
    %24 = arith.divf %22, %23 : vector<9x9x8xf32>
    %25 = arith.mulf %9, %24 : vector<9x9x8xf32>
    %26 = arith.negf %11 : vector<9x9x8xf32>
    %27 = math.exp %26 : vector<9x9x8xf32>
    %cst_21 = arith.constant 1.000000e+00 : f32
    %28 = vector.broadcast %cst_21 : f32 to vector<9x9x8xf32>
    %29 = arith.addf %28, %27 : vector<9x9x8xf32>
    %30 = arith.divf %28, %29 : vector<9x9x8xf32>
    %31 = arith.mulf %11, %30 : vector<9x9x8xf32>
    %32 = arith.negf %13 : vector<9x9x8xf32>
    %33 = math.exp %32 : vector<9x9x8xf32>
    %cst_22 = arith.constant 1.000000e+00 : f32
    %34 = vector.broadcast %cst_22 : f32 to vector<9x9x8xf32>
    %35 = arith.addf %34, %33 : vector<9x9x8xf32>
    %36 = arith.divf %34, %35 : vector<9x9x8xf32>
    %37 = arith.mulf %13, %36 : vector<9x9x8xf32>
    %38 = vector.extract_strided_slice %13 {offsets = [0, 0, 0], sizes = [8, 8, 8], strides = [1, 1, 1]} : vector<9x9x8xf32> to vector<8x8x8xf32>
    %39 = vector.shape_cast %38 : vector<8x8x8xf32> to vector<64x8xf32>
    %c0_23 = arith.constant 0 : index
    %c0_24 = arith.constant 0 : index
    %40 = vector.load %arg6[%c0_23, %c0_24] : memref<1x8xf32, #tpu.memory_space<vmem>>, vector<1x8xf32>
    %41 = vector.extract_strided_slice %19 {offsets = [0, 0, 0], sizes = [8, 8, 8], strides = [1, 1, 1]} : vector<9x9x8xf32> to vector<8x8x8xf32>
    %42 = vector.shape_cast %41 : vector<8x8x8xf32> to vector<64x8xf32>
    %c0_25 = arith.constant 0 : index
    %c0_26 = arith.constant 0 : index
    %c0_27 = arith.constant 0 : index
    %43 = vector.load %arg5[%c0_25, %c0_26, %c0_27] : memref<9x8x8xf32, #tpu.memory_space<vmem>>, vector<1x8x8xf32>
    %44 = vector.shape_cast %43 : vector<1x8x8xf32> to vector<8x8xf32>
    %cst_28 = arith.constant dense<0.000000e+00> : vector<64x8xf32>
    %45 = tpu.matmul %42, %44, %cst_28 {dimension_numbers = #tpu.dot_dimension_numbers<[1], [0], [0], [1], [0, 0, 1, 1], [], []>} : vector<64x8xf32>, vector<8x8xf32>, vector<64x8xf32> -> vector<64x8xf32>
    %46 = vector.broadcast %40 : vector<1x8xf32> to vector<64x8xf32>
    %47 = arith.addf %46, %45 : vector<64x8xf32>
    %48 = vector.extract_strided_slice %25 {offsets = [0, 0, 0], sizes = [8, 8, 8], strides = [1, 1, 1]} : vector<9x9x8xf32> to vector<8x8x8xf32>
    %49 = vector.shape_cast %48 : vector<8x8x8xf32> to vector<64x8xf32>
    %c1 = arith.constant 1 : index
    %c0_29 = arith.constant 0 : index
    %c0_30 = arith.constant 0 : index
    %50 = vector.load %arg5[%c1, %c0_29, %c0_30] : memref<9x8x8xf32, #tpu.memory_space<vmem>>, vector<1x8x8xf32>
    %51 = vector.shape_cast %50 : vector<1x8x8xf32> to vector<8x8xf32>
    %cst_31 = arith.constant dense<0.000000e+00> : vector<64x8xf32>
    %52 = tpu.matmul %49, %51, %cst_31 {dimension_numbers = #tpu.dot_dimension_numbers<[1], [0], [0], [1], [0, 0, 1, 1], [], []>} : vector<64x8xf32>, vector<8x8xf32>, vector<64x8xf32> -> vector<64x8xf32>
    %53 = arith.addf %47, %52 : vector<64x8xf32>
    %54 = vector.extract_strided_slice %19 {offsets = [0, 1, 0], sizes = [8, 8, 8], strides = [1, 1, 1]} : vector<9x9x8xf32> to vector<8x8x8xf32>
    %55 = vector.shape_cast %54 : vector<8x8x8xf32> to vector<64x8xf32>
    %c2 = arith.constant 2 : index
    %c0_32 = arith.constant 0 : index
    %c0_33 = arith.constant 0 : index
    %56 = vector.load %arg5[%c2, %c0_32, %c0_33] : memref<9x8x8xf32, #tpu.memory_space<vmem>>, vector<1x8x8xf32>
    %57 = vector.shape_cast %56 : vector<1x8x8xf32> to vector<8x8xf32>
    %cst_34 = arith.constant dense<0.000000e+00> : vector<64x8xf32>
    %58 = tpu.matmul %55, %57, %cst_34 {dimension_numbers = #tpu.dot_dimension_numbers<[1], [0], [0], [1], [0, 0, 1, 1], [], []>} : vector<64x8xf32>, vector<8x8xf32>, vector<64x8xf32> -> vector<64x8xf32>
    %59 = arith.addf %53, %58 : vector<64x8xf32>
    %60 = vector.extract_strided_slice %31 {offsets = [0, 0, 0], sizes = [8, 8, 8], strides = [1, 1, 1]} : vector<9x9x8xf32> to vector<8x8x8xf32>
    %61 = vector.shape_cast %60 : vector<8x8x8xf32> to vector<64x8xf32>
    %c3 = arith.constant 3 : index
    %c0_35 = arith.constant 0 : index
    %c0_36 = arith.constant 0 : index
    %62 = vector.load %arg5[%c3, %c0_35, %c0_36] : memref<9x8x8xf32, #tpu.memory_space<vmem>>, vector<1x8x8xf32>
    %63 = vector.shape_cast %62 : vector<1x8x8xf32> to vector<8x8xf32>
    %cst_37 = arith.constant dense<0.000000e+00> : vector<64x8xf32>
    %64 = tpu.matmul %61, %63, %cst_37 {dimension_numbers = #tpu.dot_dimension_numbers<[1], [0], [0], [1], [0, 0, 1, 1], [], []>} : vector<64x8xf32>, vector<8x8xf32>, vector<64x8xf32> -> vector<64x8xf32>
    %65 = arith.addf %59, %64 : vector<64x8xf32>
    %66 = vector.extract_strided_slice %37 {offsets = [0, 0, 0], sizes = [8, 8, 8], strides = [1, 1, 1]} : vector<9x9x8xf32> to vector<8x8x8xf32>
    %67 = vector.shape_cast %66 : vector<8x8x8xf32> to vector<64x8xf32>
    %c4 = arith.constant 4 : index
    %c0_38 = arith.constant 0 : index
    %c0_39 = arith.constant 0 : index
    %68 = vector.load %arg5[%c4, %c0_38, %c0_39] : memref<9x8x8xf32, #tpu.memory_space<vmem>>, vector<1x8x8xf32>
    %69 = vector.shape_cast %68 : vector<1x8x8xf32> to vector<8x8xf32>
    %cst_40 = arith.constant dense<0.000000e+00> : vector<64x8xf32>
    %70 = tpu.matmul %67, %69, %cst_40 {dimension_numbers = #tpu.dot_dimension_numbers<[1], [0], [0], [1], [0, 0, 1, 1], [], []>} : vector<64x8xf32>, vector<8x8xf32>, vector<64x8xf32> -> vector<64x8xf32>
    %71 = arith.addf %65, %70 : vector<64x8xf32>
    %72 = vector.extract_strided_slice %31 {offsets = [0, 1, 0], sizes = [8, 8, 8], strides = [1, 1, 1]} : vector<9x9x8xf32> to vector<8x8x8xf32>
    %73 = vector.shape_cast %72 : vector<8x8x8xf32> to vector<64x8xf32>
    %c5 = arith.constant 5 : index
    %c0_41 = arith.constant 0 : index
    %c0_42 = arith.constant 0 : index
    %74 = vector.load %arg5[%c5, %c0_41, %c0_42] : memref<9x8x8xf32, #tpu.memory_space<vmem>>, vector<1x8x8xf32>
    %75 = vector.shape_cast %74 : vector<1x8x8xf32> to vector<8x8xf32>
    %cst_43 = arith.constant dense<0.000000e+00> : vector<64x8xf32>
    %76 = tpu.matmul %73, %75, %cst_43 {dimension_numbers = #tpu.dot_dimension_numbers<[1], [0], [0], [1], [0, 0, 1, 1], [], []>} : vector<64x8xf32>, vector<8x8xf32>, vector<64x8xf32> -> vector<64x8xf32>
    %77 = arith.addf %71, %76 : vector<64x8xf32>
    %78 = vector.extract_strided_slice %19 {offsets = [1, 0, 0], sizes = [8, 8, 8], strides = [1, 1, 1]} : vector<9x9x8xf32> to vector<8x8x8xf32>
    %79 = vector.shape_cast %78 : vector<8x8x8xf32> to vector<64x8xf32>
    %c6 = arith.constant 6 : index
    %c0_44 = arith.constant 0 : index
    %c0_45 = arith.constant 0 : index
    %80 = vector.load %arg5[%c6, %c0_44, %c0_45] : memref<9x8x8xf32, #tpu.memory_space<vmem>>, vector<1x8x8xf32>
    %81 = vector.shape_cast %80 : vector<1x8x8xf32> to vector<8x8xf32>
    %cst_46 = arith.constant dense<0.000000e+00> : vector<64x8xf32>
    %82 = tpu.matmul %79, %81, %cst_46 {dimension_numbers = #tpu.dot_dimension_numbers<[1], [0], [0], [1], [0, 0, 1, 1], [], []>} : vector<64x8xf32>, vector<8x8xf32>, vector<64x8xf32> -> vector<64x8xf32>
    %83 = arith.addf %77, %82 : vector<64x8xf32>
    %84 = vector.extract_strided_slice %25 {offsets = [1, 0, 0], sizes = [8, 8, 8], strides = [1, 1, 1]} : vector<9x9x8xf32> to vector<8x8x8xf32>
    %85 = vector.shape_cast %84 : vector<8x8x8xf32> to vector<64x8xf32>
    %c7 = arith.constant 7 : index
    %c0_47 = arith.constant 0 : index
    %c0_48 = arith.constant 0 : index
    %86 = vector.load %arg5[%c7, %c0_47, %c0_48] : memref<9x8x8xf32, #tpu.memory_space<vmem>>, vector<1x8x8xf32>
    %87 = vector.shape_cast %86 : vector<1x8x8xf32> to vector<8x8xf32>
    %cst_49 = arith.constant dense<0.000000e+00> : vector<64x8xf32>
    %88 = tpu.matmul %85, %87, %cst_49 {dimension_numbers = #tpu.dot_dimension_numbers<[1], [0], [0], [1], [0, 0, 1, 1], [], []>} : vector<64x8xf32>, vector<8x8xf32>, vector<64x8xf32> -> vector<64x8xf32>
    %89 = arith.addf %83, %88 : vector<64x8xf32>
    %90 = vector.extract_strided_slice %19 {offsets = [1, 1, 0], sizes = [8, 8, 8], strides = [1, 1, 1]} : vector<9x9x8xf32> to vector<8x8x8xf32>
    %91 = vector.shape_cast %90 : vector<8x8x8xf32> to vector<64x8xf32>
    %c8 = arith.constant 8 : index
    %c0_50 = arith.constant 0 : index
    %c0_51 = arith.constant 0 : index
    %92 = vector.load %arg5[%c8, %c0_50, %c0_51] : memref<9x8x8xf32, #tpu.memory_space<vmem>>, vector<1x8x8xf32>
    %93 = vector.shape_cast %92 : vector<1x8x8xf32> to vector<8x8xf32>
    %cst_52 = arith.constant dense<0.000000e+00> : vector<64x8xf32>
    %94 = tpu.matmul %91, %93, %cst_52 {dimension_numbers = #tpu.dot_dimension_numbers<[1], [0], [0], [1], [0, 0, 1, 1], [], []>} : vector<64x8xf32>, vector<8x8xf32>, vector<64x8xf32> -> vector<64x8xf32>
    %95 = arith.addf %89, %94 : vector<64x8xf32>
    %96 = arith.negf %95 : vector<64x8xf32>
    %97 = math.exp %96 : vector<64x8xf32>
    %cst_53 = arith.constant 1.000000e+00 : f32
    %98 = vector.broadcast %cst_53 : f32 to vector<64x8xf32>
    %99 = arith.addf %98, %97 : vector<64x8xf32>
    %100 = arith.divf %98, %99 : vector<64x8xf32>
    %101 = arith.mulf %95, %100 : vector<64x8xf32>
    %cst_54 = arith.constant 0.000000e+00 : f32
    %102 = vector.broadcast %cst_54 : f32 to vector<10x10x8xf32>
    %c0_55 = arith.constant 0 : index
    %c0_56 = arith.constant 0 : index
    %c0_57 = arith.constant 0 : index
    %103 = vector.load %arg14[%c0_55, %c0_56, %c0_57] : memref<10x10x8xf32, #tpu.memory_space<vmem>>, vector<10x10x8xf32>
    tpu.vector_store %arg14[%c0_55, %c0_56, %c0_57], %102 {strides = array<i32>} : memref<10x10x8xf32, #tpu.memory_space<vmem>>, vector<10x10x8xf32>,
    %104 = vector.shape_cast %101 : vector<64x8xf32> to vector<8x8x8xf32>
    %c1_58 = arith.constant 1 : index
    %c1_59 = arith.constant 1 : index
    %c0_60 = arith.constant 0 : index
    %105 = vector.load %arg14[%c1_58, %c1_59, %c0_60] : memref<10x10x8xf32, #tpu.memory_space<vmem>>, vector<8x8x8xf32>
    tpu.vector_store %arg14[%c1_58, %c1_59, %c0_60], %104 {strides = array<i32>} : memref<10x10x8xf32, #tpu.memory_space<vmem>>, vector<8x8x8xf32>,
    %c0_61 = arith.constant 0 : index
    %c0_62 = arith.constant 0 : index
    %106 = vector.load %arg8[%c0_61, %c0_62] : memref<1x8xf32, #tpu.memory_space<vmem>>, vector<1x8xf32>
    %107 = arith.addf %106, %5 : vector<1x8xf32>
    %c0_63 = arith.constant 0 : index
    %c0_64 = arith.constant 0 : index
    %c0_65 = arith.constant 0 : index
    %108 = vector.load %arg14[%c0_63, %c0_64, %c0_65] : memref<10x10x8xf32, #tpu.memory_space<vmem>>, vector<8x8x8xf32>
    %109 = vector.shape_cast %108 : vector<8x8x8xf32> to vector<64x8xf32>
    %c0_66 = arith.constant 0 : index
    %c0_67 = arith.constant 0 : index
    %c0_68 = arith.constant 0 : index
    %110 = vector.load %arg7[%c0_66, %c0_67, %c0_68] : memref<9x8x8xf32, #tpu.memory_space<vmem>>, vector<1x8x8xf32>
    %111 = vector.shape_cast %110 : vector<1x8x8xf32> to vector<8x8xf32>
    %cst_69 = arith.constant dense<0.000000e+00> : vector<64x8xf32>
    %112 = tpu.matmul %109, %111, %cst_69 {dimension_numbers = #tpu.dot_dimension_numbers<[1], [0], [0], [1], [0, 0, 1, 1], [], []>} : vector<64x8xf32>, vector<8x8xf32>, vector<64x8xf32> -> vector<64x8xf32>
    %113 = vector.broadcast %107 : vector<1x8xf32> to vector<64x8xf32>
    %114 = arith.addf %113, %112 : vector<64x8xf32>
    %c0_70 = arith.constant 0 : index
    %c1_71 = arith.constant 1 : index
    %c0_72 = arith.constant 0 : index
    %115 = vector.load %arg14[%c0_70, %c1_71, %c0_72] : memref<10x10x8xf32, #tpu.memory_space<vmem>>, vector<8x8x8xf32>
    %116 = vector.shape_cast %115 : vector<8x8x8xf32> to vector<64x8xf32>
    %c1_73 = arith.constant 1 : index
    %c0_74 = arith.constant 0 : index
    %c0_75 = arith.constant 0 : index
    %117 = vector.load %arg7[%c1_73, %c0_74, %c0_75] : memref<9x8x8xf32, #tpu.memory_space<vmem>>, vector<1x8x8xf32>
    %118 = vector.shape_cast %117 : vector<1x8x8xf32> to vector<8x8xf32>
    %cst_76 = arith.constant dense<0.000000e+00> : vector<64x8xf32>
    %119 = tpu.matmul %116, %118, %cst_76 {dimension_numbers = #tpu.dot_dimension_numbers<[1], [0], [0], [1], [0, 0, 1, 1], [], []>} : vector<64x8xf32>, vector<8x8xf32>, vector<64x8xf32> -> vector<64x8xf32>
    %120 = arith.addf %114, %119 : vector<64x8xf32>
    %c0_77 = arith.constant 0 : index
    %c2_78 = arith.constant 2 : index
    %c0_79 = arith.constant 0 : index
    %121 = vector.load %arg14[%c0_77, %c2_78, %c0_79] : memref<10x10x8xf32, #tpu.memory_space<vmem>>, vector<8x8x8xf32>
    %122 = vector.shape_cast %121 : vector<8x8x8xf32> to vector<64x8xf32>
    %c2_80 = arith.constant 2 : index
    %c0_81 = arith.constant 0 : index
    %c0_82 = arith.constant 0 : index
    %123 = vector.load %arg7[%c2_80, %c0_81, %c0_82] : memref<9x8x8xf32, #tpu.memory_space<vmem>>, vector<1x8x8xf32>
    %124 = vector.shape_cast %123 : vector<1x8x8xf32> to vector<8x8xf32>
    %cst_83 = arith.constant dense<0.000000e+00> : vector<64x8xf32>
    %125 = tpu.matmul %122, %124, %cst_83 {dimension_numbers = #tpu.dot_dimension_numbers<[1], [0], [0], [1], [0, 0, 1, 1], [], []>} : vector<64x8xf32>, vector<8x8xf32>, vector<64x8xf32> -> vector<64x8xf32>
    %126 = arith.addf %120, %125 : vector<64x8xf32>
    %c1_84 = arith.constant 1 : index
    %c0_85 = arith.constant 0 : index
    %c0_86 = arith.constant 0 : index
    %127 = vector.load %arg14[%c1_84, %c0_85, %c0_86] : memref<10x10x8xf32, #tpu.memory_space<vmem>>, vector<8x8x8xf32>
    %128 = vector.shape_cast %127 : vector<8x8x8xf32> to vector<64x8xf32>
    %c3_87 = arith.constant 3 : index
    %c0_88 = arith.constant 0 : index
    %c0_89 = arith.constant 0 : index
    %129 = vector.load %arg7[%c3_87, %c0_88, %c0_89] : memref<9x8x8xf32, #tpu.memory_space<vmem>>, vector<1x8x8xf32>
    %130 = vector.shape_cast %129 : vector<1x8x8xf32> to vector<8x8xf32>
    %cst_90 = arith.constant dense<0.000000e+00> : vector<64x8xf32>
    %131 = tpu.matmul %128, %130, %cst_90 {dimension_numbers = #tpu.dot_dimension_numbers<[1], [0], [0], [1], [0, 0, 1, 1], [], []>} : vector<64x8xf32>, vector<8x8xf32>, vector<64x8xf32> -> vector<64x8xf32>
    %132 = arith.addf %126, %131 : vector<64x8xf32>
    %c1_91 = arith.constant 1 : index
    %c1_92 = arith.constant 1 : index
    %c0_93 = arith.constant 0 : index
    %133 = vector.load %arg14[%c1_91, %c1_92, %c0_93] : memref<10x10x8xf32, #tpu.memory_space<vmem>>, vector<8x8x8xf32>
    %134 = vector.shape_cast %133 : vector<8x8x8xf32> to vector<64x8xf32>
    %c4_94 = arith.constant 4 : index
    %c0_95 = arith.constant 0 : index
    %c0_96 = arith.constant 0 : index
    %135 = vector.load %arg7[%c4_94, %c0_95, %c0_96] : memref<9x8x8xf32, #tpu.memory_space<vmem>>, vector<1x8x8xf32>
    %136 = vector.shape_cast %135 : vector<1x8x8xf32> to vector<8x8xf32>
    %cst_97 = arith.constant dense<0.000000e+00> : vector<64x8xf32>
    %137 = tpu.matmul %134, %136, %cst_97 {dimension_numbers = #tpu.dot_dimension_numbers<[1], [0], [0], [1], [0, 0, 1, 1], [], []>} : vector<64x8xf32>, vector<8x8xf32>, vector<64x8xf32> -> vector<64x8xf32>
    %138 = arith.addf %132, %137 : vector<64x8xf32>
    %c1_98 = arith.constant 1 : index
    %c2_99 = arith.constant 2 : index
    %c0_100 = arith.constant 0 : index
    %139 = vector.load %arg14[%c1_98, %c2_99, %c0_100] : memref<10x10x8xf32, #tpu.memory_space<vmem>>, vector<8x8x8xf32>
    %140 = vector.shape_cast %139 : vector<8x8x8xf32> to vector<64x8xf32>
    %c5_101 = arith.constant 5 : index
    %c0_102 = arith.constant 0 : index
    %c0_103 = arith.constant 0 : index
    %141 = vector.load %arg7[%c5_101, %c0_102, %c0_103] : memref<9x8x8xf32, #tpu.memory_space<vmem>>, vector<1x8x8xf32>
    %142 = vector.shape_cast %141 : vector<1x8x8xf32> to vector<8x8xf32>
    %cst_104 = arith.constant dense<0.000000e+00> : vector<64x8xf32>
    %143 = tpu.matmul %140, %142, %cst_104 {dimension_numbers = #tpu.dot_dimension_numbers<[1], [0], [0], [1], [0, 0, 1, 1], [], []>} : vector<64x8xf32>, vector<8x8xf32>, vector<64x8xf32> -> vector<64x8xf32>
    %144 = arith.addf %138, %143 : vector<64x8xf32>
    %c2_105 = arith.constant 2 : index
    %c0_106 = arith.constant 0 : index
    %c0_107 = arith.constant 0 : index
    %145 = vector.load %arg14[%c2_105, %c0_106, %c0_107] : memref<10x10x8xf32, #tpu.memory_space<vmem>>, vector<8x8x8xf32>
    %146 = vector.shape_cast %145 : vector<8x8x8xf32> to vector<64x8xf32>
    %c6_108 = arith.constant 6 : index
    %c0_109 = arith.constant 0 : index
    %c0_110 = arith.constant 0 : index
    %147 = vector.load %arg7[%c6_108, %c0_109, %c0_110] : memref<9x8x8xf32, #tpu.memory_space<vmem>>, vector<1x8x8xf32>
    %148 = vector.shape_cast %147 : vector<1x8x8xf32> to vector<8x8xf32>
    %cst_111 = arith.constant dense<0.000000e+00> : vector<64x8xf32>
    %149 = tpu.matmul %146, %148, %cst_111 {dimension_numbers = #tpu.dot_dimension_numbers<[1], [0], [0], [1], [0, 0, 1, 1], [], []>} : vector<64x8xf32>, vector<8x8xf32>, vector<64x8xf32> -> vector<64x8xf32>
    %150 = arith.addf %144, %149 : vector<64x8xf32>
    %c2_112 = arith.constant 2 : index
    %c1_113 = arith.constant 1 : index
    %c0_114 = arith.constant 0 : index
    %151 = vector.load %arg14[%c2_112, %c1_113, %c0_114] : memref<10x10x8xf32, #tpu.memory_space<vmem>>, vector<8x8x8xf32>
    %152 = vector.shape_cast %151 : vector<8x8x8xf32> to vector<64x8xf32>
    %c7_115 = arith.constant 7 : index
    %c0_116 = arith.constant 0 : index
    %c0_117 = arith.constant 0 : index
    %153 = vector.load %arg7[%c7_115, %c0_116, %c0_117] : memref<9x8x8xf32, #tpu.memory_space<vmem>>, vector<1x8x8xf32>
    %154 = vector.shape_cast %153 : vector<1x8x8xf32> to vector<8x8xf32>
    %cst_118 = arith.constant dense<0.000000e+00> : vector<64x8xf32>
    %155 = tpu.matmul %152, %154, %cst_118 {dimension_numbers = #tpu.dot_dimension_numbers<[1], [0], [0], [1], [0, 0, 1, 1], [], []>} : vector<64x8xf32>, vector<8x8xf32>, vector<64x8xf32> -> vector<64x8xf32>
    %156 = arith.addf %150, %155 : vector<64x8xf32>
    %c2_119 = arith.constant 2 : index
    %c2_120 = arith.constant 2 : index
    %c0_121 = arith.constant 0 : index
    %157 = vector.load %arg14[%c2_119, %c2_120, %c0_121] : memref<10x10x8xf32, #tpu.memory_space<vmem>>, vector<8x8x8xf32>
    %158 = vector.shape_cast %157 : vector<8x8x8xf32> to vector<64x8xf32>
    %c8_122 = arith.constant 8 : index
    %c0_123 = arith.constant 0 : index
    %c0_124 = arith.constant 0 : index
    %159 = vector.load %arg7[%c8_122, %c0_123, %c0_124] : memref<9x8x8xf32, #tpu.memory_space<vmem>>, vector<1x8x8xf32>
    %160 = vector.shape_cast %159 : vector<1x8x8xf32> to vector<8x8xf32>
    %cst_125 = arith.constant dense<0.000000e+00> : vector<64x8xf32>
    %161 = tpu.matmul %158, %160, %cst_125 {dimension_numbers = #tpu.dot_dimension_numbers<[1], [0], [0], [1], [0, 0, 1, 1], [], []>} : vector<64x8xf32>, vector<8x8xf32>, vector<64x8xf32> -> vector<64x8xf32>
    %162 = arith.addf %156, %161 : vector<64x8xf32>
    %163 = arith.negf %162 : vector<64x8xf32>
    %164 = math.exp %163 : vector<64x8xf32>
    %cst_126 = arith.constant 1.000000e+00 : f32
    %165 = vector.broadcast %cst_126 : f32 to vector<64x8xf32>
    %166 = arith.addf %165, %164 : vector<64x8xf32>
    %167 = arith.divf %165, %166 : vector<64x8xf32>
    %168 = arith.mulf %162, %167 : vector<64x8xf32>
    %169 = vector.shape_cast %168 : vector<64x8xf32> to vector<8x8x8xf32>
    %c1_127 = arith.constant 1 : index
    %c1_128 = arith.constant 1 : index
    %c0_129 = arith.constant 0 : index
    %170 = vector.load %arg14[%c1_127, %c1_128, %c0_129] : memref<10x10x8xf32, #tpu.memory_space<vmem>>, vector<8x8x8xf32>
    tpu.vector_store %arg14[%c1_127, %c1_128, %c0_129], %169 {strides = array<i32>} : memref<10x10x8xf32, #tpu.memory_space<vmem>>, vector<8x8x8xf32>,
    %c0_130 = arith.constant 0 : index
    %c0_131 = arith.constant 0 : index
    %171 = vector.load %arg11[%c0_130, %c0_131] : memref<8x8xf32, #tpu.memory_space<vmem>>, vector<8x8xf32>
    %cst_132 = arith.constant dense<0.000000e+00> : vector<64x8xf32>
    %172 = tpu.matmul %39, %171, %cst_132 {dimension_numbers = #tpu.dot_dimension_numbers<[1], [0], [0], [1], [0, 0, 1, 1], [], []>} : vector<64x8xf32>, vector<8x8xf32>, vector<64x8xf32> -> vector<64x8xf32>
    %c0_133 = arith.constant 0 : index
    %c0_134 = arith.constant 0 : index
    %173 = vector.load %arg12[%c0_133, %c0_134] : memref<1x8xf32, #tpu.memory_space<vmem>>, vector<1x8xf32>
    %174 = vector.broadcast %173 : vector<1x8xf32> to vector<64x8xf32>
    %175 = arith.addf %172, %174 : vector<64x8xf32>
    %c0_135 = arith.constant 0 : index
    %c0_136 = arith.constant 0 : index
    %176 = vector.load %arg10[%c0_135, %c0_136] : memref<1x8xf32, #tpu.memory_space<vmem>>, vector<1x8xf32>
    %177 = vector.broadcast %176 : vector<1x8xf32> to vector<64x8xf32>
    %178 = arith.addf %175, %177 : vector<64x8xf32>
    %c0_137 = arith.constant 0 : index
    %c0_138 = arith.constant 0 : index
    %c0_139 = arith.constant 0 : index
    %179 = vector.load %arg14[%c0_137, %c0_138, %c0_139] : memref<10x10x8xf32, #tpu.memory_space<vmem>>, vector<8x8x8xf32>
    %180 = vector.shape_cast %179 : vector<8x8x8xf32> to vector<64x8xf32>
    %c0_140 = arith.constant 0 : index
    %c0_141 = arith.constant 0 : index
    %c0_142 = arith.constant 0 : index
    %181 = vector.load %arg9[%c0_140, %c0_141, %c0_142] : memref<9x8x8xf32, #tpu.memory_space<vmem>>, vector<1x8x8xf32>
    %182 = vector.shape_cast %181 : vector<1x8x8xf32> to vector<8x8xf32>
    %cst_143 = arith.constant dense<0.000000e+00> : vector<64x8xf32>
    %183 = tpu.matmul %180, %182, %cst_143 {dimension_numbers = #tpu.dot_dimension_numbers<[1], [0], [0], [1], [0, 0, 1, 1], [], []>} : vector<64x8xf32>, vector<8x8xf32>, vector<64x8xf32> -> vector<64x8xf32>
    %184 = arith.addf %178, %183 : vector<64x8xf32>
    %c0_144 = arith.constant 0 : index
    %c1_145 = arith.constant 1 : index
    %c0_146 = arith.constant 0 : index
    %185 = vector.load %arg14[%c0_144, %c1_145, %c0_146] : memref<10x10x8xf32, #tpu.memory_space<vmem>>, vector<8x8x8xf32>
    %186 = vector.shape_cast %185 : vector<8x8x8xf32> to vector<64x8xf32>
    %c1_147 = arith.constant 1 : index
    %c0_148 = arith.constant 0 : index
    %c0_149 = arith.constant 0 : index
    %187 = vector.load %arg9[%c1_147, %c0_148, %c0_149] : memref<9x8x8xf32, #tpu.memory_space<vmem>>, vector<1x8x8xf32>
    %188 = vector.shape_cast %187 : vector<1x8x8xf32> to vector<8x8xf32>
    %cst_150 = arith.constant dense<0.000000e+00> : vector<64x8xf32>
    %189 = tpu.matmul %186, %188, %cst_150 {dimension_numbers = #tpu.dot_dimension_numbers<[1], [0], [0], [1], [0, 0, 1, 1], [], []>} : vector<64x8xf32>, vector<8x8xf32>, vector<64x8xf32> -> vector<64x8xf32>
    %190 = arith.addf %184, %189 : vector<64x8xf32>
    %c0_151 = arith.constant 0 : index
    %c2_152 = arith.constant 2 : index
    %c0_153 = arith.constant 0 : index
    %191 = vector.load %arg14[%c0_151, %c2_152, %c0_153] : memref<10x10x8xf32, #tpu.memory_space<vmem>>, vector<8x8x8xf32>
    %192 = vector.shape_cast %191 : vector<8x8x8xf32> to vector<64x8xf32>
    %c2_154 = arith.constant 2 : index
    %c0_155 = arith.constant 0 : index
    %c0_156 = arith.constant 0 : index
    %193 = vector.load %arg9[%c2_154, %c0_155, %c0_156] : memref<9x8x8xf32, #tpu.memory_space<vmem>>, vector<1x8x8xf32>
    %194 = vector.shape_cast %193 : vector<1x8x8xf32> to vector<8x8xf32>
    %cst_157 = arith.constant dense<0.000000e+00> : vector<64x8xf32>
    %195 = tpu.matmul %192, %194, %cst_157 {dimension_numbers = #tpu.dot_dimension_numbers<[1], [0], [0], [1], [0, 0, 1, 1], [], []>} : vector<64x8xf32>, vector<8x8xf32>, vector<64x8xf32> -> vector<64x8xf32>
    %196 = arith.addf %190, %195 : vector<64x8xf32>
    %c1_158 = arith.constant 1 : index
    %c0_159 = arith.constant 0 : index
    %c0_160 = arith.constant 0 : index
    %197 = vector.load %arg14[%c1_158, %c0_159, %c0_160] : memref<10x10x8xf32, #tpu.memory_space<vmem>>, vector<8x8x8xf32>
    %198 = vector.shape_cast %197 : vector<8x8x8xf32> to vector<64x8xf32>
    %c3_161 = arith.constant 3 : index
    %c0_162 = arith.constant 0 : index
    %c0_163 = arith.constant 0 : index
    %199 = vector.load %arg9[%c3_161, %c0_162, %c0_163] : memref<9x8x8xf32, #tpu.memory_space<vmem>>, vector<1x8x8xf32>
    %200 = vector.shape_cast %199 : vector<1x8x8xf32> to vector<8x8xf32>
    %cst_164 = arith.constant dense<0.000000e+00> : vector<64x8xf32>
    %201 = tpu.matmul %198, %200, %cst_164 {dimension_numbers = #tpu.dot_dimension_numbers<[1], [0], [0], [1], [0, 0, 1, 1], [], []>} : vector<64x8xf32>, vector<8x8xf32>, vector<64x8xf32> -> vector<64x8xf32>
    %202 = arith.addf %196, %201 : vector<64x8xf32>
    %c1_165 = arith.constant 1 : index
    %c1_166 = arith.constant 1 : index
    %c0_167 = arith.constant 0 : index
    %203 = vector.load %arg14[%c1_165, %c1_166, %c0_167] : memref<10x10x8xf32, #tpu.memory_space<vmem>>, vector<8x8x8xf32>
    %204 = vector.shape_cast %203 : vector<8x8x8xf32> to vector<64x8xf32>
    %c4_168 = arith.constant 4 : index
    %c0_169 = arith.constant 0 : index
    %c0_170 = arith.constant 0 : index
    %205 = vector.load %arg9[%c4_168, %c0_169, %c0_170] : memref<9x8x8xf32, #tpu.memory_space<vmem>>, vector<1x8x8xf32>
    %206 = vector.shape_cast %205 : vector<1x8x8xf32> to vector<8x8xf32>
    %cst_171 = arith.constant dense<0.000000e+00> : vector<64x8xf32>
    %207 = tpu.matmul %204, %206, %cst_171 {dimension_numbers = #tpu.dot_dimension_numbers<[1], [0], [0], [1], [0, 0, 1, 1], [], []>} : vector<64x8xf32>, vector<8x8xf32>, vector<64x8xf32> -> vector<64x8xf32>
    %208 = arith.addf %202, %207 : vector<64x8xf32>
    %c1_172 = arith.constant 1 : index
    %c2_173 = arith.constant 2 : index
    %c0_174 = arith.constant 0 : index
    %209 = vector.load %arg14[%c1_172, %c2_173, %c0_174] : memref<10x10x8xf32, #tpu.memory_space<vmem>>, vector<8x8x8xf32>
    %210 = vector.shape_cast %209 : vector<8x8x8xf32> to vector<64x8xf32>
    %c5_175 = arith.constant 5 : index
    %c0_176 = arith.constant 0 : index
    %c0_177 = arith.constant 0 : index
    %211 = vector.load %arg9[%c5_175, %c0_176, %c0_177] : memref<9x8x8xf32, #tpu.memory_space<vmem>>, vector<1x8x8xf32>
    %212 = vector.shape_cast %211 : vector<1x8x8xf32> to vector<8x8xf32>
    %cst_178 = arith.constant dense<0.000000e+00> : vector<64x8xf32>
    %213 = tpu.matmul %210, %212, %cst_178 {dimension_numbers = #tpu.dot_dimension_numbers<[1], [0], [0], [1], [0, 0, 1, 1], [], []>} : vector<64x8xf32>, vector<8x8xf32>, vector<64x8xf32> -> vector<64x8xf32>
    %214 = arith.addf %208, %213 : vector<64x8xf32>
    %c2_179 = arith.constant 2 : index
    %c0_180 = arith.constant 0 : index
    %c0_181 = arith.constant 0 : index
    %215 = vector.load %arg14[%c2_179, %c0_180, %c0_181] : memref<10x10x8xf32, #tpu.memory_space<vmem>>, vector<8x8x8xf32>
    %216 = vector.shape_cast %215 : vector<8x8x8xf32> to vector<64x8xf32>
    %c6_182 = arith.constant 6 : index
    %c0_183 = arith.constant 0 : index
    %c0_184 = arith.constant 0 : index
    %217 = vector.load %arg9[%c6_182, %c0_183, %c0_184] : memref<9x8x8xf32, #tpu.memory_space<vmem>>, vector<1x8x8xf32>
    %218 = vector.shape_cast %217 : vector<1x8x8xf32> to vector<8x8xf32>
    %cst_185 = arith.constant dense<0.000000e+00> : vector<64x8xf32>
    %219 = tpu.matmul %216, %218, %cst_185 {dimension_numbers = #tpu.dot_dimension_numbers<[1], [0], [0], [1], [0, 0, 1, 1], [], []>} : vector<64x8xf32>, vector<8x8xf32>, vector<64x8xf32> -> vector<64x8xf32>
    %220 = arith.addf %214, %219 : vector<64x8xf32>
    %c2_186 = arith.constant 2 : index
    %c1_187 = arith.constant 1 : index
    %c0_188 = arith.constant 0 : index
    %221 = vector.load %arg14[%c2_186, %c1_187, %c0_188] : memref<10x10x8xf32, #tpu.memory_space<vmem>>, vector<8x8x8xf32>
    %222 = vector.shape_cast %221 : vector<8x8x8xf32> to vector<64x8xf32>
    %c7_189 = arith.constant 7 : index
    %c0_190 = arith.constant 0 : index
    %c0_191 = arith.constant 0 : index
    %223 = vector.load %arg9[%c7_189, %c0_190, %c0_191] : memref<9x8x8xf32, #tpu.memory_space<vmem>>, vector<1x8x8xf32>
    %224 = vector.shape_cast %223 : vector<1x8x8xf32> to vector<8x8xf32>
    %cst_192 = arith.constant dense<0.000000e+00> : vector<64x8xf32>
    %225 = tpu.matmul %222, %224, %cst_192 {dimension_numbers = #tpu.dot_dimension_numbers<[1], [0], [0], [1], [0, 0, 1, 1], [], []>} : vector<64x8xf32>, vector<8x8xf32>, vector<64x8xf32> -> vector<64x8xf32>
    %226 = arith.addf %220, %225 : vector<64x8xf32>
    %c2_193 = arith.constant 2 : index
    %c2_194 = arith.constant 2 : index
    %c0_195 = arith.constant 0 : index
    %227 = vector.load %arg14[%c2_193, %c2_194, %c0_195] : memref<10x10x8xf32, #tpu.memory_space<vmem>>, vector<8x8x8xf32>
    %228 = vector.shape_cast %227 : vector<8x8x8xf32> to vector<64x8xf32>
    %c8_196 = arith.constant 8 : index
    %c0_197 = arith.constant 0 : index
    %c0_198 = arith.constant 0 : index
    %229 = vector.load %arg9[%c8_196, %c0_197, %c0_198] : memref<9x8x8xf32, #tpu.memory_space<vmem>>, vector<1x8x8xf32>
    %230 = vector.shape_cast %229 : vector<1x8x8xf32> to vector<8x8xf32>
    %cst_199 = arith.constant dense<0.000000e+00> : vector<64x8xf32>
    %231 = tpu.matmul %228, %230, %cst_199 {dimension_numbers = #tpu.dot_dimension_numbers<[1], [0], [0], [1], [0, 0, 1, 1], [], []>} : vector<64x8xf32>, vector<8x8xf32>, vector<64x8xf32> -> vector<64x8xf32>
    %232 = arith.addf %226, %231 : vector<64x8xf32>
    %233 = vector.shape_cast %232 : vector<64x8xf32> to vector<8x8x8xf32>
    %c0_200 = arith.constant 0 : index
    %c0_201 = arith.constant 0 : index
    %c0_202 = arith.constant 0 : index
    %c0_203 = arith.constant 0 : index
    %234 = vector.load %arg13[%c0_200, %c0_201, %c0_202, %c0_203] : memref<1x8x8x8xf32, #tpu.memory_space<vmem>>, vector<1x8x8x8xf32>
    %235 = vector.shape_cast %234 : vector<1x8x8x8xf32> to vector<8x8x8xf32>
    %236 = vector.shape_cast %233 : vector<8x8x8xf32> to vector<1x8x8x8xf32>
    tpu.vector_store %arg13[%c0_200, %c0_201, %c0_202, %c0_203], %236 {strides = array<i32>} : memref<1x8x8x8xf32, #tpu.memory_space<vmem>>, vector<1x8x8x8xf32>,
    return
  }
  func.func @transform_0(%arg0: i32) -> (i32, i32, i32, i32) {
    %c0_i32 = arith.constant 0 : i32
    %c0_i32_0 = arith.constant 0 : i32
    %c0_i32_1 = arith.constant 0 : i32
    %c0_i32_2 = arith.constant 0 : i32
    return %arg0, %c0_i32, %c0_i32_0, %c0_i32_1 : i32, i32, i32, i32
  }
  func.func @transform_1(%arg0: i32) -> (i32, i32, i32) {
    %c0_i32 = arith.constant 0 : i32
    %c0_i32_0 = arith.constant 0 : i32
    %c0_i32_1 = arith.constant 0 : i32
    return %arg0, %c0_i32, %c0_i32_0 : i32, i32, i32
  }
  func.func @transform_2(%arg0: i32) -> (i32, i32) {
    %c0_i32 = arith.constant 0 : i32
    %c0_i32_0 = arith.constant 0 : i32
    %c0_i32_1 = arith.constant 0 : i32
    return %c0_i32, %c0_i32_0 : i32, i32
  }
  func.func @transform_3(%arg0: i32) -> (i32, i32) {
    %c0_i32 = arith.constant 0 : i32
    %c0_i32_0 = arith.constant 0 : i32
    %c0_i32_1 = arith.constant 0 : i32
    return %c0_i32, %c0_i32_0 : i32, i32
  }
  func.func @transform_4(%arg0: i32) -> (i32, i32, i32) {
    %c0_i32 = arith.constant 0 : i32
    %c0_i32_0 = arith.constant 0 : i32
    %c0_i32_1 = arith.constant 0 : i32
    %c0_i32_2 = arith.constant 0 : i32
    return %c0_i32, %c0_i32_0, %c0_i32_1 : i32, i32, i32
  }
  func.func @transform_5(%arg0: i32) -> (i32, i32) {
    %c0_i32 = arith.constant 0 : i32
    %c0_i32_0 = arith.constant 0 : i32
    %c0_i32_1 = arith.constant 0 : i32
    return %c0_i32, %c0_i32_0 : i32, i32
  }
  func.func @transform_6(%arg0: i32) -> (i32, i32, i32) {
    %c0_i32 = arith.constant 0 : i32
    %c0_i32_0 = arith.constant 0 : i32
    %c0_i32_1 = arith.constant 0 : i32
    %c0_i32_2 = arith.constant 0 : i32
    return %c0_i32, %c0_i32_0, %c0_i32_1 : i32, i32, i32
  }
  func.func @transform_7(%arg0: i32) -> (i32, i32) {
    %c0_i32 = arith.constant 0 : i32
    %c0_i32_0 = arith.constant 0 : i32
    %c0_i32_1 = arith.constant 0 : i32
    return %c0_i32, %c0_i32_0 : i32, i32
  }
  func.func @transform_8(%arg0: i32) -> (i32, i32, i32) {
    %c0_i32 = arith.constant 0 : i32
    %c0_i32_0 = arith.constant 0 : i32
    %c0_i32_1 = arith.constant 0 : i32
    %c0_i32_2 = arith.constant 0 : i32
    return %c0_i32, %c0_i32_0, %c0_i32_1 : i32, i32, i32
  }
  func.func @transform_9(%arg0: i32) -> (i32, i32) {
    %c0_i32 = arith.constant 0 : i32
    %c0_i32_0 = arith.constant 0 : i32
    %c0_i32_1 = arith.constant 0 : i32
    return %c0_i32, %c0_i32_0 : i32, i32
  }
  func.func @transform_10(%arg0: i32) -> (i32, i32) {
    %c0_i32 = arith.constant 0 : i32
    %c0_i32_0 = arith.constant 0 : i32
    %c0_i32_1 = arith.constant 0 : i32
    return %c0_i32, %c0_i32_0 : i32, i32
  }
  func.func @transform_11(%arg0: i32) -> (i32, i32) {
    %c0_i32 = arith.constant 0 : i32
    %c0_i32_0 = arith.constant 0 : i32
    %c0_i32_1 = arith.constant 0 : i32
    return %c0_i32, %c0_i32_0 : i32, i32
  }
  func.func @transform_12(%arg0: i32) -> (i32, i32, i32, i32) {
    %c0_i32 = arith.constant 0 : i32
    %c0_i32_0 = arith.constant 0 : i32
    %c0_i32_1 = arith.constant 0 : i32
    %c0_i32_2 = arith.constant 0 : i32
    return %arg0, %c0_i32, %c0_i32_0, %c0_i32_1 : i32, i32, i32, i32
  }
}

</mosaic_0001>

<bundles_post_ra>
// kernel: tpu_custom_call.1
= control target key start
LH: loop header
LB: loop body
LE: loop exit
PB: predicated region body
PF: predicated region fallthrough
CT: control target
= control target key end

     0   :  { %17 = vsyncpa [#allocation4], 0  ;;  %s7647_s0 = inlined_call_operand.vmem [shape: f32[2,36,9,8], index: 0, kind: input, shape index: {}]   ;;  %s7648_s1 = inlined_call_operand.vmem [shape: f32[2,1,32], index: 1, kind: input, shape index: {}]   ;;  %s7649_s2 = inlined_call_operand.vmem [shape: f32[32,8], index: 2, kind: input, shape index: {}]   ;;  %s7650_s3 = inlined_call_operand.vmem [shape: f32[1,8], index: 3, kind: input, shape index: {}]   ;;  %s7651_s4 = inlined_call_operand.vmem [shape: f32[9,8,8], index: 4, kind: input, shape index: {}]   ;;  %s7652_s5 = inlined_call_operand.vmem [shape: f32[1,8], index: 5, kind: input, shape index: {}]   ;;  %s7653_s6 = inlined_call_operand.vmem [shape: f32[9,8,8], index: 6, kind: input, shape index: {}]   ;;  %s7654_s7 = inlined_call_operand.vmem [shape: f32[1,8], index: 7, kind: input, shape index: {}]   ;;  %s7655_s8 = inlined_call_operand.vmem [shape: f32[9,8,8], index: 8, kind: input, shape index: {}]   ;;  %s7656_s9 = inlined_call_operand.vmem [shape: f32[1,8], index: 9, kind: input, shape index: {}]   ;;  %s7657_s10 = inlined_call_operand.vmem [shape: f32[8,8], index: 10, kind: input, shape index: {}]   ;;  %s7658_s11 = inlined_call_operand.vmem [shape: f32[1,8], index: 11, kind: input, shape index: {}]   ;;  %s7659_s12 = inlined_call_operand.hbm [shape: f32[2,8,8,8], index: 12, kind: output, shape index: {}]  }
   0x1   :  { %19 = vsyncpa [#allocation4 + $0x1], 0  ;;  %s5047_s21 = smov 0   ;;  %s5049_s22 = smov 0  }
   0x2   :  { %s5051_s23 = smov 0   ;;  %s5053_s24 = smov 0  }
   0x3 LB: > { %7671 = sst [smem:[#allocation6_spill]] %s4973_s23  ;;  %s5068_s25 = sadd.s32 4294967295, %s4977_s24   ;;  %s4977_s24 = sphi %s5053_s24, %s8127_s24   ;;  %s4973_s23 = sphi %s5051_s23, %s8124_s23   ;;  %s4969_s22 = sphi %s5049_s22, %s8126_s22   ;;  %s4965_s21 = sphi %s5047_s21, %s8125_s21  }
   0x4   : > { %s4231_s26 = sadd.s32 4294967294, %s4977_s24   ;;  %s5072_s27 = sadd.s32 1, %s4977_s24  }
   0x5   : > { %s294_s28 = sadd.s32 1, %s4973_s23  ;;  %s291_s29 = ssub.s32 %s4977_s24, %s5072_s27 }
   0x6   : > { %p304_p0 = scmp.ne.s32.totalorder %s4973_s23, %s4969_s22  ;;  %p292_p1 = scmp.eq.s32.totalorder %s291_s29, 0 }
   0x7   : > { %p305_p2 = scmp.eq.s32.totalorder %s5068_s25, 1  ;;  %p310_p3 = scmp.ne.s32.totalorder %s4969_s22, %s4965_s21 }
   0x8   : > { %p311_p4 = scmp.eq.s32.totalorder %s4231_s26, 1  ;;  %p4234_p7 = scmp.ge.s32.totalorder %s4977_s24, 1 }
   0x9   : > { %s5083_s30 = scalar_select %p292_p1, %s4973_s23, %s294_s28  }
   0xa   : > { %p5085_p5 = por %p305_p2, %p304_p0  ;;  %p5089_p6 = por %p311_p4, %p310_p3 }
   0xb   : > { %7672 = sst [smem:[#allocation7_spill]] %s5083_s30  ;;  %p373_p8 = scmp.lt.s32.totalorder %s4977_s24, 3 }
   0xd   : > { %p374_p9 = pnand %p4234_p7, %p373_p8 }
   0xf   : > { %377 = sbr.rel (%p374_p9) target bundleno = 1042 (0x412), region = 68 }
  0x14   : > { %v430_v0 = vld [vmem:[%s7649_s2 + $0x18] sm:$0xff]  ;;  %v429_v1 = vld [vmem:[%s7649_s2 + $0x10] sm:$0xff]  ;;  %v1531_v2 = vld [vmem:[%s7651_s4] sm:$0xff]  ;;  %p418_p10 = scmp.lt.s32.totalorder %s5068_s25, 1  ;;  %vm432_vm0 = vcmask 261120   ;;  %s415_s23 = sand.u32 1, %s4969_s22  }
  0x15   : > { %448 = vmatpush.msra.mxu0 %v430_v0  ;;  %1572 = vmatpush.msra.mxu1 %v1531_v2  ;;  %v4330_v3 = vld [vmem:[%s7651_s4 + $0x8] sm:$0xff]  ;;  %v4348_v7 = vld [vmem:[%s7651_s4 + $0x18] sm:$0xff]  ;;  %v427_v10 = vld [vmem:[%s7649_s2] sm:$0xff]  ;;  %s4235_s30 = sshll.u32 %s415_s23, 6  ;;  %s4591_s15 = sshll.u32 %s5068_s25, 6 }
  0x16   : > { %1650 = vmatpush.msra.mxu2 %v4330_v3  ;;  %v428_v4 = vld [vmem:[%s7649_s2 + $0x8] sm:$0xff]  ;;  %s419_s16 = scalar_select %p418_p10, %s5068_s25, 1  ;;  %v4339_v11 = vld [vmem:[%s7651_s4 + $0x10] sm:$0xff] }
  0x17   : > { %449 = vmatpush.msra.mxu0 %v429_v1  ;;  %4592 = vmatpush.msrb.mxu1 %v4348_v7  ;;  %s4156_s18 = scalar_lea.hbm %s7659_s12, %s4591_s15  ;;  %s4145_s25 = scalar_lea.sflag [#allocation4], %s415_s23 }
  0x18   : > { %s4593_s17 = smul.u32 576, %s419_s16  ;;  %s425_s26 = scalar_lea.vmem %s7648_s1, %s419_s16  ;;  %1750 = vmatpush.msra.mxu3 %v4339_v11 }
  0x19   : > { %450 = vmatpush.msra.mxu0 %v428_v4  ;;  %v426_v12 = vld [vmem:[%s425_s26] sm:$0x1]  ;;  %s4159_s26 = sshll.u32 %s4156_s18, 4  ;;  %s4935_s16 = scalar_lea.hbm %s7659_s12, 128  ;;  %s4160_s26 = int_to_ptr.hbm [resolvable:$true] %s4159_s26 }
  0x1a   : > { %s5115_s19 = scalar_lea.vmem %s7647_s0, %s4593_s17  ;;  %s4929_s28 = sshra.s32 %s4160_s26, 4  ;;  %s4930_s28 = int_to_ptr.hbm [resolvable:$true] %s4929_s28 }
  0x1b   : > { %v5121_v5 = vld [vmem:[%s5115_s19] sm:$0xff]  ;;  %v5124_v6 = vld [vmem:[%s5115_s19 + $0x90] sm:$0xff]  ;;  %451 = vmatpush.msra.mxu0 %v427_v10  ;;  %v5138_v13 = vld [vmem:[%s5115_s19 + $0x8] sm:$0x1]  ;;  %s4931_s29 = scalar_lea.hbm %s4930_s28, 64  ;;  %p4936_p0 = scmp.lt.s32.totalorder %s4930_s28, %s7659_s12 }
  0x1c   : > { %v4271_v8 = vmul.f32 -1.442695, %v5121_v5  ;;  %v4289_v9 = vmul.f32 -1.442695, %v5124_v6  ;;  %v5141_v14 = vld [vmem:[%s5115_s19 + $0x10] sm:$0xff]  ;;  %4237 = vmatmul.msk.f32.vlgmr.msra.gmra.mxu0 %vm432_vm0, %v426_v12  ;;  %v5146_v17 = vld [vmem:[%s5115_s19 + $0xa0] sm:$0xff]  ;;  %p4932_p11 = scmp.ne.s32.totalorder %s4930_s28, %s4931_s29  ;;  %p4937_p1 = scmp.lt.s32.totalorder %s4935_s16, %s4931_s29 }
  0x1d   : > { %v4272_v15 = vmul.f32 -1.442695, %v5138_v13  ;;  %v4273_v16 = vmul.f32 -1.442695, %v5141_v14  ;;  %v4290_v18 = vmul.f32 -1.442695, %v5146_v17  ;;  %1825 = vmatpush.msrb.mxu0 %v4348_v7 }
  0x1e   : > { %4639 = vpow2.f32 %v4271_v8  ;;  %v5150_v19 = vld [vmem:[%s5115_s19 + $0x18] sm:$0x1]  ;;  %v5153_v20 = vld [vmem:[%s5115_s19 + $0x120] sm:$0xff]  ;;  %v5161_v24 = vld [vmem:[%s5115_s19 + $0xb0] sm:$0xff]  ;;  %p4933_p12 = pnand %p4932_p11, %p5085_p5  ;;  %p4938_p2 = por %p4937_p1, %p4936_p0 }
  0x1f   : > { %4641 = vpow2.f32 %v4289_v9  ;;  %v4274_v21 = vmul.f32 -1.442695, %v5150_v19  ;;  %v4298_v22 = vmul.f32 -1.442695, %v5153_v20  ;;  %v5158_v23 = vld [vmem:[%s5115_s19 + $0x20] sm:$0xff] }
  0x20   : > { %4643 = vpow2.f32 %v4272_v15  ;;  %v4275_v28 = vmul.f32 -1.442695, %v5158_v23  ;;  %v4291_v31 = vmul.f32 -1.442695, %v5161_v24  ;;  %v5171_v33 = vld [vmem:[%s5115_s19 + $0x28] sm:$0x1]  ;;  %p4934_p13 = pneg %p4933_p12 }
  0x21   : > { %4645 = vpow2.f32 %v4273_v16  ;;  %v5185_v43 = vmul.f32 -1.442695, %v5171_v33 }
  0x22   : > { %4647 = vpow2.f32 %v4290_v18  ;;  %p4939_p3 = pnand %p4938_p2, %p4934_p13 }
  0x23   : > { %4649 = vpow2.f32 %v4274_v21 }
  0x24   : > { %v4640_v25 = vpop.eup %4639  ;;  %4651 = vpow2.f32 %v4298_v22 }
  0x25   : > { %v4642_v26 = vpop.eup %4641  ;;  %v5163_v27 = vadd.f32 1.0, %v4640_v25 }
  0x26   : > { %v4644_v29 = vpop.eup %4643  ;;  %v5166_v30 = vadd.f32 1.0, %v4642_v26 }
  0x27   : > { %v4646_v32 = vpop.eup %4645  ;;  %4653 = vrcp.f32 %v5163_v27  ;;  %v591_v35 = vand.u32 2147483647, %v5163_v27  ;;  %v593_v36 = vand.u32 2147483648, %v5163_v27  ;;  %v5177_v39 = vadd.f32 1.0, %v4644_v29 }
  0x28   : > { %v4648_v34 = vpop.eup %4647  ;;  %4655 = vrcp.f32 %v5166_v30  ;;  %v915_v38 = vand.u32 2147483647, %v5166_v30  ;;  %v5179_v40 = vadd.f32 1.0, %v4646_v32  ;;  %v917_v41 = vand.u32 2147483648, %v5166_v30  ;;  %v5370_v32 = vld [vmem:[%s5115_s19 + $0x140] sm:$0xff] }
  0x29   : > { %v4650_v37 = vpop.eup %4649  ;;  %4657 = vpow2.f32 %v4275_v28  ;;  %v5182_v42 = vadd.f32 1.0, %v4648_v34  ;;  %vm587_vm1 = vweird.f32 %v5163_v27  ;;  %vm911_vm2 = vweird.f32 %v5166_v30 }
  0x2a   : > { %4659 = vpow2.f32 %v4291_v31  ;;  %v608_v44 = vand.u32 2147483648, %v5177_v39  ;;  %v4652_v45 = vpop.eup %4651  ;;  %vm5191_vm3 = vcmp.eq.f32.partialorder %v591_v35, 8.507059e+37  ;;  %v594_v47 = vor.u32 1.1754944e-38, %v593_v36 }
  0x2b   : > { %4661 = vrcp.f32 %v5177_v39  ;;  %v606_v48 = vand.u32 2147483647, %v5177_v39  ;;  %v5197_v49 = vadd.f32 1.0, %v4650_v37  ;;  %vm5199_vm4 = vcmp.eq.f32.partialorder %v915_v38, 8.507059e+37 }
  0x2c   : > { %4663 = vrcp.f32 %v5179_v40  ;;  %v621_v52 = vand.u32 2147483647, %v5179_v40  ;;  %v623_v53 = vand.u32 2147483648, %v5179_v40  ;;  %v918_v56 = vor.u32 1.1754944e-38, %v917_v41 }
  0x2d   : > { %v4654_v50 = vpop.eup %4653  ;;  %4665 = vrcp.f32 %v5182_v42  ;;  %vm602_vm5 = vweird.f32 %v5177_v39  ;;  %vm617_vm6 = vweird.f32 %v5179_v40  ;;  %v5212_v59 = vor.u32 1.1754944e-38, %v608_v44 }
  0x2e   : > { %v4656_v54 = vpop.eup %4655  ;;  %v583_v55 = vmul.f32 %v4654_v50, %v5163_v27  ;;  %v930_v60 = vand.u32 2147483647, %v5182_v42  ;;  %v932_v61 = vand.u32 2147483648, %v5182_v42  ;;  %vm588_vm8 = vweird.f32 %v4654_v50 }
  0x2f   : > { %v5209_v57 = vpop.eup %4657  ;;  %v907_v58 = vmul.f32 %v4656_v54, %v5166_v30  ;;  %vm5218_vm9 = vcmp.eq.f32.partialorder %v606_v48, 8.507059e+37  ;;  %4667 = vrcp.f32 %v5197_v49  ;;  %vm912_vm11 = vweird.f32 %v4656_v54  ;;  %vm5238_vm15 = vmor %vm587_vm1, %vm588_vm8 }
  0x30   : > { %v5216_v62 = vpop.eup %4659  ;;  %v584_v63 = vsub.f32 1.0, %v583_v55  ;;  %vm5224_vm12 = vcmp.eq.f32.partialorder %v621_v52, 8.507059e+37  ;;  %v624_v4 = vor.u32 1.1754944e-38, %v623_v53  ;;  %v636_v7 = vand.u32 2147483647, %v5197_v49  ;;  %vm5247_vm0 = vmor %vm911_vm2, %vm912_vm11 }
  0x31   : > { %v4662_v1 = vpop.eup %4661  ;;  %v908_v2 = vsub.f32 1.0, %v907_v58  ;;  %vm5230_vm13 = vcmp.eq.f32.partialorder %v930_v60, 8.507059e+37  ;;  %v933_v21 = vor.u32 1.1754944e-38, %v932_v61  ;;  %v638_v22 = vand.u32 2147483648, %v5197_v49 }
  0x32   : > { %v4664_v8 = vpop.eup %4663  ;;  %v585_v9 = vmul.f32 %v4654_v50, %v584_v63  ;;  %v598_v10 = vmul.f32 %v4662_v1, %v5177_v39  ;;  %vm603_vm14 = vweird.f32 %v4662_v1  ;;  %vm1692_vm1 = vcmask 1046528  }
  0x33   : > { %v4666_v12 = vpop.eup %4665  ;;  %v909_v16 = vmul.f32 %v4656_v54, %v908_v2  ;;  %v613_v18 = vmul.f32 %v4664_v8, %v5179_v40  ;;  %vm618_vm8 = vweird.f32 %v4664_v8  ;;  %vm5252_vm10 = vcmp.eq.f32.partialorder %v636_v7, 8.507059e+37  ;;  %vm5267_vm2 = vmor %vm602_vm5, %vm603_vm14 }
  0x34   : > { %v586_v25 = vadd.f32 %v4654_v50, %v585_v9  ;;  %v599_v28 = vsub.f32 1.0, %v598_v10  ;;  %v922_v27 = vmul.f32 %v4666_v12, %v5182_v42  ;;  %vm927_vm7 = vweird.f32 %v4666_v12 }
  0x35   : > { %v910_v29 = vadd.f32 %v4656_v54, %v909_v16  ;;  %v614_v31 = vsub.f32 1.0, %v613_v18  ;;  %v4668_v34 = vpop.eup %4667  ;;  %v5258_v37 = vadd.f32 1.0, %v4652_v45  ;;  %vm7695_vm5 = vweird.f32 %v5182_v42 }
  0x36   : > { %v590_v30 = vsel %vm5238_vm15, %v4654_v50, %v586_v25  ;;  %v600_v35 = vmul.f32 %v4662_v1, %v599_v28  ;;  %v923_v36 = vsub.f32 1.0, %v922_v27  ;;  %v628_v50 = vmul.f32 %v4668_v34, %v5197_v49  ;;  %vm5286_vm11 = vmor %vm7695_vm5, %vm927_vm7  ;;  %v5350_v25 = vld [vmem:[%s5115_s19 + $0xc0] sm:$0xff] }
  0x37   : > { %v595_v38 = vsel %vm5191_vm3, %v594_v47, %v590_v30  ;;  %v914_v41 = vsel %vm5247_vm0, %v4656_v54, %v910_v29  ;;  %v615_v48 = vmul.f32 %v4664_v8, %v614_v31  ;;  %vm5278_vm3 = vmor %vm617_vm6, %vm618_vm8  ;;  %vm7698_vm14 = vcmask 64512   ;;  %v5367_v31 = vld [vmem:[%s5115_s19 + $0x38] sm:$0x1] }
  0x38   : > { %v852_v52 = vmul.f32 %v595_v38, %v5121_v5  ;;  %v919_v45 = vsel %vm5199_vm4, %v918_v56, %v914_v41  ;;  %v601_v46 = vadd.f32 %v4662_v1, %v600_v35  ;;  %v924_v39 = vmul.f32 %v4666_v12, %v923_v36  ;;  %vm7699_vm6 = vmmov %vm7698_vm14  ;;  %v5375_v38 = vld [vmem:[%s5115_s19 + $0x40] sm:$0xff] }
  0x39   : > { %v1041_v53 = vmul.f32 %v5124_v6, %v919_v45  ;;  %v616_v54 = vadd.f32 %v4664_v8, %v615_v48  ;;  %v629_v51 = vsub.f32 1.0, %v628_v50  ;;  %vm633_vm4 = vweird.f32 %v4668_v34  ;;  %v5392_v45 = vld [vmem:[%s5115_s19 + $0xd0] sm:$0xff] }
  0x3a   : > { %4322 = vmatmul.msk.f32.vlgmr.msra.gmra.mxu1 %vm7698_vm14, %v852_v52  ;;  %v605_v40 = vsel %vm5267_vm2, %v4662_v1, %v601_v46  ;;  %v925_v55 = vadd.f32 %v4666_v12, %v924_v39  ;;  %4669 = vrcp.f32 %v5258_v37  ;;  %v5295_v6 = vadd.f32 1.0, %v5209_v57  ;;  %vm7707_vm2 = vmmov %vm7699_vm6 }
  0x3b   : > { %4331 = vmatmul.msk.f32.vlgmr.msra.gmra.mxu2 %vm7699_vm6, %v1041_v53  ;;  %v610_v42 = vsel %vm5218_vm9, %v5212_v59, %v605_v40  ;;  %v620_v56 = vsel %vm5278_vm3, %v4664_v8, %v616_v54  ;;  %v630_v58 = vmul.f32 %v4668_v34, %v629_v51  ;;  %v639_v60 = vor.u32 1.1754944e-38, %v638_v22  ;;  %v5316_v59 = vld [vmem:[%s5115_s19 + $0x130] sm:$0xff]  ;;  %vm7713_vm14 = vmmov %vm7707_vm2 }
  0x3c   : > { %v1693_v61 = vrot.slane %v852_v52, 1  ;;  %v853_v63 = vmul.f32 %v610_v42, %v5138_v13  ;;  %v625_v1 = vsel %vm5224_vm12, %v624_v4, %v620_v56  ;;  %v929_v57 = vsel %vm5286_vm11, %v4666_v12, %v925_v55  ;;  %vm7703_vm12 = vmmov %vm7699_vm6  ;;  %v5347_v22 = vld [vmem:[%s5115_s19 + $0x30] sm:$0xff] }
  0x3d   : > { %vm7700_vm7 = vweird.f32 %v5197_v49  ;;  %v5319_v2 = vmul.f32 %v625_v1, %v5141_v14  ;;  %v934_v13 = vsel %vm5230_vm13, %v933_v21, %v929_v57  ;;  %v631_v3 = vadd.f32 %v4668_v34, %v630_v58  ;;  %v5415_v1 = vld [vmem:[%s5115_s19 + $0x48] sm:$0x1] }
  0x3e   : > { %vm5311_vm15 = vmor %vm7700_vm7, %vm633_vm4  ;;  %v5324_v4 = vadd.f32 1.0, %v5216_v62  ;;  %v1694_v7 = vrot.slane %v853_v63, 1  ;;  %v1123_v8 = vand.u32 2147483647, %v5258_v37  ;;  %v1125_v49 = vand.u32 2147483648, %v5258_v37 }
  0x3f   : > { %4671 = vrcp.f32 %v5295_v6  ;;  %v5330_v9 = vmul.f32 %v5146_v17, %v934_v13  ;;  %v635_v14 = vsel %vm5311_vm15, %v4668_v34, %v631_v3  ;;  %vm1119_vm9 = vweird.f32 %v5258_v37 }
  0x40   : > { %v4300_v62 = vmul.f32 -1.442695, %v5316_v59  ;;  %v4670_v10 = vpop.eup %4669  ;;  %v1695_v11 = vsel %vm1692_vm1, %v1693_v61, %v1694_v7  ;;  %v640_v12 = vsel %vm5252_vm10, %v639_v60, %v635_v14  ;;  %v651_v15 = vand.u32 2147483647, %v5295_v6  ;;  %vm7704_vm10 = vmmov %vm7699_vm6 }
  0x41   : > { %v653_v16 = vand.u32 2147483648, %v5295_v6  ;;  %4340 = vmatmul.msk.f32.vlgmr.msra.gmra.mxu3 %vm7703_vm12, %v1695_v11  ;;  %v855_v17 = vmul.f32 %v640_v12, %v5150_v19  ;;  %v1696_v18 = vrot.slane %v5319_v2, 1  ;;  %v1115_v21 = vmul.f32 %v4670_v10, %v5258_v37 }
  0x42   : > { %4673 = vrcp.f32 %v5324_v4  ;;  %4323 = vmatmul.msk.f32.gmra.mxu1 %vm7704_vm10, %v5319_v2  ;;  %vm1120_vm13 = vweird.f32 %v4670_v10  ;;  %vm5354_vm0 = vcmp.eq.f32.partialorder %v1123_v8, 8.507059e+37  ;;  %v1126_v19 = vor.u32 1.1754944e-38, %v1125_v49 }
  0x43   : > { %vm647_vm8 = vweird.f32 %v5295_v6  ;;  %4332 = vmatmul.msk.f32.gmra.mxu2 %vm7707_vm2, %v5330_v9  ;;  %v1697_v28 = vrot.slane %v855_v17, 1  ;;  %v1116_v27 = vsub.f32 1.0, %v1115_v21  ;;  %vm5361_vm3 = vcmp.eq.f32.partialorder %v651_v15, 8.507059e+37  ;;  %vm5385_vm11 = vmor %vm1119_vm9, %vm1120_vm13 }
  0x44   : > { %4675 = vpow2.f32 %v5185_v43  ;;  %v654_v30 = vor.u32 1.1754944e-38, %v653_v16  ;;  %v4277_v35 = vmul.f32 -1.442695, %v5347_v22  ;;  %v4292_v36 = vmul.f32 -1.442695, %v5350_v25  ;;  %vm7718_vm9 = vmmov %vm7707_vm2 }
  0x45   : > { %v4672_v34 = vpop.eup %4671  ;;  %4677 = vpow2.f32 %v4300_v62  ;;  %v5378_v41 = vsel %vm1692_vm1, %v1696_v18, %v1697_v28  ;;  %v1117_v44 = vmul.f32 %v4670_v10, %v1116_v27  ;;  %vm941_vm5 = vweird.f32 %v5324_v4  ;;  %vm7721_vm13 = vmmov %vm7707_vm2 }
  0x46   : > { %7710 = vst [vmem:[#allocation8_spill] sm:$0xff] %v5378_v41  ;;  %v643_v43 = vmul.f32 %v4672_v34, %v5295_v6  ;;  %vm648_vm4 = vweird.f32 %v4672_v34  ;;  %4679 = vpow2.f32 %v4277_v35  ;;  %v4278_v50 = vmul.f32 -1.442695, %v5367_v31 }
  0x47   : > { %v4302_v52 = vmul.f32 -1.442695, %v5370_v32  ;;  %v1118_v47 = vadd.f32 %v4670_v10, %v1117_v44  ;;  %4681 = vpow2.f32 %v4292_v36  ;;  %v4279_v53 = vmul.f32 -1.442695, %v5375_v38  ;;  %vm5408_vm7 = vmor %vm647_vm8, %vm648_vm4 }
  0x48   : > { %v4674_v46 = vpop.eup %4673  ;;  %v644_v39 = vsub.f32 1.0, %v643_v43  ;;  %v945_v54 = vand.u32 2147483647, %v5324_v4  ;;  %v947_v5 = vand.u32 2147483648, %v5324_v4  ;;  %4683 = vpow2.f32 %v4278_v50 }
  0x49   : > { %v937_v37 = vmul.f32 %v4674_v46, %v5324_v4  ;;  %4341 = vmatmul.msk.f32.gmra.mxu3 %vm7713_vm14, %v5378_v41  ;;  %v1122_v40 = vsel %vm5385_vm11, %v4670_v10, %v1118_v47  ;;  %vm942_vm6 = vweird.f32 %v4674_v46  ;;  %v4293_v42 = vmul.f32 -1.442695, %v5392_v45 }
  0x4a   : > { %v4676_v51 = vpop.eup %4675  ;;  %v645_v55 = vmul.f32 %v4672_v34, %v644_v39  ;;  %v1127_v58 = vsel %vm5354_vm0, %v1126_v19, %v1122_v40  ;;  %4685 = vpow2.f32 %v4302_v52  ;;  %vm5422_vm15 = vcmp.eq.f32.partialorder %v945_v54, 8.507059e+37  ;;  %vm5434_vm12 = vmor %vm941_vm5, %vm942_vm6 }
  0x4b   : > { %v4678_v56 = vpop.eup %4677  ;;  %v938_v61 = vsub.f32 1.0, %v937_v37  ;;  %v5412_v63 = vadd.f32 1.0, %v4676_v51  ;;  %v5418_v57 = vmul.f32 %v5153_v20, %v1127_v58  ;;  %4687 = vpow2.f32 %v4279_v53 }
  0x4c   : > { %v646_v0 = vadd.f32 %v4672_v34, %v645_v55  ;;  %v5420_v13 = vadd.f32 1.0, %v4678_v56  ;;  %v4680_v3 = vpop.eup %4679  ;;  %v948_v14 = vor.u32 1.1754944e-38, %v947_v5  ;;  %v5440_v62 = vmul.f32 -1.442695, %v5415_v1 }
  0x4d   : > { %v939_v7 = vmul.f32 %v4674_v46, %v938_v61  ;;  %4689 = vrcp.f32 %v5412_v63  ;;  %v4682_v8 = vpop.eup %4681  ;;  %4349 = vmatmul.msk.f32.vlgmr.msrb.gmra.mxu0 %vm7718_vm9, %v5418_v57  ;;  %v666_v15 = vand.u32 2147483647, %v5412_v63  ;;  %v668_v16 = vand.u32 2147483648, %v5412_v63 }
  0x4e   : > { %v650_v20 = vsel %vm5408_vm7, %v4672_v34, %v646_v0  ;;  %4691 = vrcp.f32 %v5420_v13  ;;  %v4684_v10 = vpop.eup %4683  ;;  %v1153_v17 = vand.u32 2147483647, %v5420_v13  ;;  %v5450_v18 = vadd.f32 1.0, %v4680_v3 }
  0x4f   : > { %v655_v11 = vsel %vm5361_vm3, %v654_v30, %v650_v20  ;;  %v940_v12 = vadd.f32 %v4674_v46, %v939_v7  ;;  %4693 = vpow2.f32 %v4293_v42  ;;  %vm662_vm10 = vweird.f32 %v5412_v63  ;;  %vm7726_vm3 = vmmov %vm7718_vm9 }
  0x50   : > { %v5447_v4 = vmul.f32 %v655_v11, %v5158_v23  ;;  %v4686_v21 = vpop.eup %4685  ;;  %v1155_v19 = vand.u32 2147483648, %v5420_v13  ;;  %v5456_v28 = vadd.f32 1.0, %v4682_v8  ;;  %vm1149_vm0 = vweird.f32 %v5420_v13 }
  0x51   : > { %v944_v26 = vsel %vm5434_vm12, %v4674_v46, %v940_v12  ;;  %v4688_v27 = vpop.eup %4687  ;;  %4695 = vrcp.f32 %v5450_v18  ;;  %v5464_v29 = vadd.f32 1.0, %v4684_v10  ;;  %vm5469_vm8 = vcmp.eq.f32.partialorder %v666_v15, 8.507059e+37 }
  0x52   : > { %4324 = vmatmul.msk.f32.gmra.mxu1 %vm7721_vm13, %v5447_v4  ;;  %v949_v23 = vsel %vm5422_vm15, %v948_v14, %v944_v26  ;;  %v669_v36 = vor.u32 1.1754944e-38, %v668_v16  ;;  %v681_v44 = vand.u32 2147483647, %v5450_v18  ;;  %vm5475_vm2 = vcmp.eq.f32.partialorder %v1153_v17, 8.507059e+37 }
  0x53   : > { %v4690_v34 = vpop.eup %4689  ;;  %v5467_v30 = vmul.f32 %v5161_v24, %v949_v23  ;;  %v683_v52 = vand.u32 2147483648, %v5450_v18  ;;  %4697 = vrcp.f32 %v5456_v28  ;;  %v1699_v24 = vrot.slane %v5447_v4, 1 }
  0x54   : > { %v4692_v43 = vpop.eup %4691  ;;  %v658_v48 = vmul.f32 %v4690_v34, %v5412_v63  ;;  %v1156_v47 = vor.u32 1.1754944e-38, %v1155_v19  ;;  %vm677_vm5 = vweird.f32 %v5450_v18  ;;  %vm663_vm11 = vweird.f32 %v4690_v34  ;;  %v5610_v63 = vld [vmem:[%s5115_s19 + $0x50] sm:$0xff] }
  0x55   : > { %4333 = vmatmul.msk.f32.gmra.mxu2 %vm7726_vm3, %v5467_v30  ;;  %v1145_v46 = vmul.f32 %v4692_v43, %v5420_v13  ;;  %v5486_v39 = vpop.eup %4693  ;;  %v960_v37 = vand.u32 2147483647, %v5456_v28  ;;  %4699 = vrcp.f32 %v5464_v29  ;;  %vm1150_vm4 = vweird.f32 %v4692_v43  ;;  %vm5500_vm7 = vmor %vm662_vm10, %vm663_vm11 }
  0x56   : > { %v659_v53 = vsub.f32 1.0, %v658_v48  ;;  %vm5490_vm14 = vcmp.eq.f32.partialorder %v681_v44, 8.507059e+37  ;;  %vm956_vm6 = vweird.f32 %v5456_v28  ;;  %v684_v55 = vor.u32 1.1754944e-38, %v683_v52  ;;  %vm5510_vm9 = vmor %vm1149_vm0, %vm1150_vm4 }
  0x57   : > { %v1146_v54 = vsub.f32 1.0, %v1145_v46  ;;  %v4696_v51 = vpop.eup %4695  ;;  %v962_v42 = vand.u32 2147483648, %v5456_v28  ;;  %v5496_v56 = vadd.f32 1.0, %v4686_v21  ;;  %vm692_vm15 = vweird.f32 %v5464_v29 }
  0x58   : > { %v660_v40 = vmul.f32 %v4690_v34, %v659_v53  ;;  %v673_v61 = vmul.f32 %v4696_v51, %v5450_v18  ;;  %v696_v0 = vand.u32 2147483647, %v5464_v29  ;;  %vm5514_vm12 = vcmp.eq.f32.partialorder %v960_v37, 8.507059e+37 }
  0x59   : > { %v1147_v60 = vmul.f32 %v4692_v43, %v1146_v54  ;;  %v4698_v3 = vpop.eup %4697  ;;  %v698_v8 = vand.u32 2147483648, %v5464_v29  ;;  %4701 = vrcp.f32 %v5496_v56  ;;  %vm678_vm10 = vweird.f32 %v4696_v51 }
  0x5a   : > { %v661_v7 = vadd.f32 %v4690_v34, %v660_v40  ;;  %v674_v49 = vsub.f32 1.0, %v673_v61  ;;  %v952_v14 = vmul.f32 %v4698_v3, %v5456_v28  ;;  %vm957_vm13 = vweird.f32 %v4698_v3  ;;  %vm5534_vm0 = vmor %vm677_vm5, %vm678_vm10 }
  0x5b   : > { %v1148_v20 = vadd.f32 %v4692_v43, %v1147_v60  ;;  %v4700_v10 = vpop.eup %4699  ;;  %v963_v11 = vor.u32 1.1754944e-38, %v962_v42  ;;  %v5523_v12 = vadd.f32 1.0, %v4688_v27  ;;  %vm7739_vm5 = vcmask 64512  }
  0x5c   : > { %v665_v13 = vsel %vm5500_vm7, %v4690_v34, %v661_v7  ;;  %v675_v17 = vmul.f32 %v4696_v51, %v674_v49  ;;  %v953_v21 = vsub.f32 1.0, %v952_v14  ;;  %v688_v27 = vmul.f32 %v4700_v10, %v5464_v29  ;;  %vm7741_vm11 = vmmov %vm7739_vm5 }
  0x5d   : > { %v670_v15 = vsel %vm5469_vm8, %v669_v36, %v665_v13  ;;  %v1152_v16 = vsel %vm5510_vm9, %v4692_v43, %v1148_v20  ;;  %v699_v34 = vor.u32 1.1754944e-38, %v698_v8  ;;  %vm1179_vm8 = vweird.f32 %v5496_v56  ;;  %vm7744_vm7 = vmmov %vm7739_vm5  ;;  %v5620_v13 = vld [vmem:[%s5115_s19 + $0xe0] sm:$0xff] }
  0x5e   : > { %v857_v26 = vmul.f32 %v670_v15, %v5171_v33  ;;  %v1157_v19 = vsel %vm5475_vm2, %v1156_v47, %v1152_v16  ;;  %v676_v36 = vadd.f32 %v4696_v51, %v675_v17  ;;  %v954_v44 = vmul.f32 %v4698_v3, %v953_v21  ;;  %vm5546_vm2 = vmor %vm956_vm6, %vm957_vm13  ;;  %v5626_v16 = vld [vmem:[%s5115_s19 + $0x58] sm:$0x1] }
  0x5f   : > { %v5540_v35 = vmul.f32 %v5316_v59, %v1157_v19  ;;  %v4702_v33 = vpop.eup %4701  ;;  %v689_v48 = vsub.f32 1.0, %v688_v27  ;;  %vm693_vm3 = vweird.f32 %v4700_v10  ;;  %4703 = vrcp.f32 %v5523_v12  ;;  %vm7749_vm10 = vmmov %vm7739_vm5 }
  0x60   : > { %v1700_v43 = vrot.slane %v857_v26, 1  ;;  %v680_v59 = vsel %vm5534_vm0, %v4696_v51, %v676_v36  ;;  %v955_v50 = vadd.f32 %v4698_v3, %v954_v44  ;;  %v1175_v52 = vmul.f32 %v4702_v33, %v5496_v56  ;;  %vm5574_vm4 = vmor %vm692_vm15, %vm693_vm3 }
  0x61   : > { %4350 = vmatmul.msk.f32.gmra.mxu0 %vm7739_vm5, %v5540_v35  ;;  %v1183_v46 = vand.u32 2147483647, %v5496_v56  ;;  %v685_v47 = vsel %vm5490_vm14, %v684_v55, %v680_v59  ;;  %v690_v53 = vmul.f32 %v4700_v10, %v689_v48  ;;  %v1185_v37 = vand.u32 2147483648, %v5496_v56 }
  0x62   : > { %v5560_v28 = vsel %vm1692_vm1, %v1699_v24, %v1700_v43  ;;  %v5568_v54 = vmul.f32 %v685_v47, %v5347_v22  ;;  %v959_v51 = vsel %vm5546_vm2, %v4698_v3, %v955_v50  ;;  %v1176_v5 = vsub.f32 1.0, %v1175_v52  ;;  %v5603_v3 = vld [vmem:[%s5115_s19 + $0x150] sm:$0xff]  ;;  %vm7754_vm2 = vmmov %vm7739_vm5  ;;  %v5660_v52 = vld [vmem:[%s5115_s19 + $0x60] sm:$0xff] }
  0x63   : > { %7740 = vst [vmem:[#allocation9_spill] sm:$0xff] %v5560_v28  ;;  %4342 = vmatmul.msk.f32.gmra.mxu3 %vm7741_vm11, %v5560_v28  ;;  %vm1180_vm14 = vweird.f32 %v4702_v33  ;;  %v964_v40 = vsel %vm5514_vm12, %v963_v11, %v959_v51  ;;  %v691_v55 = vadd.f32 %v4700_v10, %v690_v53  ;;  %vm697_vm6 = vcmp.eq.f32.partialorder %v696_v0, 8.507059e+37  ;;  %v5671_v51 = vld [vmem:[%s5115_s19 + $0x68] sm:$0x1] }
  0x64   : > { %4325 = vmatmul.msk.f32.gmra.mxu1 %vm7744_vm7, %v5568_v54  ;;  %v5583_v22 = vmul.f32 %v5350_v25, %v964_v40  ;;  %v1177_v29 = vmul.f32 %v4702_v33, %v1176_v5  ;;  %vm5585_vm15 = vcmp.eq.f32.partialorder %v1183_v46, 8.507059e+37  ;;  %v5590_v58 = vadd.f32 1.0, %v5486_v39  ;;  %vm5596_vm9 = vmor %vm1179_vm8, %vm1180_vm14  ;;  %v5663_v46 = vld [vmem:[%s5115_s19 + $0xf0] sm:$0xff] }
  0x65   : > { %v4704_v60 = vpop.eup %4703  ;;  %v695_v61 = vsel %vm5574_vm4, %v4700_v10, %v691_v55  ;;  %v1186_v25 = vor.u32 1.1754944e-38, %v1185_v37  ;;  %vm707_vm12 = vweird.f32 %v5523_v12  ;;  %4705 = vpow2.f32 %v5440_v62  ;;  %vm7753_vm8 = vmmov %vm7739_vm5 }
  0x66   : > { %4334 = vmatmul.msk.f32.gmra.mxu2 %vm7749_vm10, %v5583_v22  ;;  %v700_v39 = vsel %vm697_vm6, %v699_v34, %v695_v61  ;;  %v1178_v7 = vadd.f32 %v4702_v33, %v1177_v29  ;;  %v703_v56 = vmul.f32 %v4704_v60, %v5523_v12  ;;  %v713_v6 = vand.u32 2147483648, %v5523_v12  ;;  %v5678_v29 = vld [vmem:[%s5115_s19 + $0x170] sm:$0xff]  ;;  %vm7757_vm14 = vmmov %vm7754_vm2 }
  0x67   : > { %v859_v8 = vmul.f32 %v700_v39, %v5367_v31  ;;  %v1702_v20 = vrot.slane %v5568_v54, 1  ;;  %v711_v62 = vand.u32 2147483647, %v5523_v12  ;;  %4707 = vrcp.f32 %v5590_v58 }
  0x68   : > { %v1182_v49 = vsel %vm5596_vm9, %v4702_v33, %v1178_v7  ;;  %v704_v14 = vsub.f32 1.0, %v703_v56  ;;  %vm708_vm13 = vweird.f32 %v4704_v60  ;;  %v4304_v10 = vmul.f32 -1.442695, %v5603_v3 }
  0x69   : > { %v1703_v11 = vrot.slane %v859_v8, 1  ;;  %v1187_v31 = vsel %vm5585_vm15, %v1186_v25, %v1182_v49  ;;  %v4281_v15 = vmul.f32 -1.442695, %v5610_v63  ;;  %v714_v26 = vor.u32 1.1754944e-38, %v713_v6  ;;  %vm5636_vm0 = vmor %vm707_vm12, %vm708_vm13 }
  0x6a   : > { %v5629_v17 = vmul.f32 %v5370_v32, %v1187_v31  ;;  %v705_v21 = vmul.f32 %v4704_v60, %v704_v14  ;;  %4709 = vpow2.f32 %v4304_v10  ;;  %v975_v34 = vand.u32 2147483647, %v5590_v58  ;;  %v5643_v32 = vld [vmem:[%s5115_s19 + $0x160] sm:$0xff] }
  0x6b   : > { %v4706_v19 = vpop.eup %4705  ;;  %v5632_v23 = vsel %vm1692_vm1, %v1702_v20, %v1703_v11  ;;  %4711 = vpow2.f32 %v4281_v15  ;;  %v4294_v36 = vmul.f32 -1.442695, %v5620_v13  ;;  %vm712_vm3 = vcmp.eq.f32.partialorder %v711_v62, 8.507059e+37 }
  0x6c   : > { %7750 = vst [vmem:[#allocation10_spill] sm:$0xff] %v5632_v23  ;;  %4343 = vmatmul.msk.f32.gmra.mxu3 %vm7753_vm8, %v5632_v23  ;;  %4351 = vmatmul.msk.f32.gmra.mxu0 %vm7754_vm2, %v5629_v17  ;;  %v706_v12 = vadd.f32 %v4704_v60, %v705_v21  ;;  %v5649_v44 = vadd.f32 1.0, %v4706_v19  ;;  %v4282_v33 = vmul.f32 -1.442695, %v5626_v16  ;;  %vm971_vm5 = vweird.f32 %v5590_v58 }
  0x6d   : > { %v4708_v43 = vpop.eup %4707  ;;  %v977_v18 = vand.u32 2147483648, %v5590_v58  ;;  %4713 = vpow2.f32 %v4294_v36  ;;  %v4306_v50 = vmul.f32 -1.442695, %v5643_v32  ;;  %vm5665_vm4 = vcmp.eq.f32.partialorder %v975_v34, 8.507059e+37 }
  0x6e   : > { %v710_v48 = vsel %vm5636_vm0, %v4704_v60, %v706_v12  ;;  %v967_v59 = vmul.f32 %v4708_v43, %v5590_v58  ;;  %4715 = vrcp.f32 %v5649_v44  ;;  %vm972_vm11 = vweird.f32 %v4708_v43  ;;  %vm7764_vm0 = vmmov %vm7754_vm2 }
  0x6f   : > { %v715_v47 = vsel %vm712_vm3, %v714_v26, %v710_v48  ;;  %v726_v37 = vand.u32 2147483647, %v5649_v44  ;;  %v728_v55 = vand.u32 2147483648, %v5649_v44  ;;  %4717 = vpow2.f32 %v4282_v33  ;;  %vm5694_vm6 = vmor %vm971_vm5, %vm972_vm11 }
  0x70   : > { %v4710_v24 = vpop.eup %4709  ;;  %v5674_v5 = vmul.f32 %v715_v47, %v5375_v38  ;;  %v968_v40 = vsub.f32 1.0, %v967_v59  ;;  %v978_v60 = vor.u32 1.1754944e-38, %v977_v18  ;;  %v4283_v0 = vmul.f32 -1.442695, %v5660_v52 }
  0x71   : > { %v4712_v42 = vpop.eup %4711  ;;  %v5680_v61 = vadd.f32 1.0, %v4710_v24  ;;  %v4295_v25 = vmul.f32 -1.442695, %v5663_v46  ;;  %4719 = vpow2.f32 %v4306_v50  ;;  %v5689_v7 = vmul.f32 -1.442695, %v5671_v51 }
  0x72   : > { %4326 = vmatmul.msk.f32.gmra.mxu1 %vm7757_vm14, %v5674_v5  ;;  %v969_v39 = vmul.f32 %v4708_v43, %v968_v40  ;;  %v5686_v38 = vadd.f32 1.0, %v4712_v42  ;;  %vm722_vm7 = vweird.f32 %v5649_v44  ;;  %vm5699_vm15 = vcmp.eq.f32.partialorder %v726_v37, 8.507059e+37 }
  0x73   : > { %v4714_v56 = vpop.eup %4713  ;;  %4721 = vrcp.f32 %v5680_v61  ;;  %v5705_v20 = vmul.f32 -1.442695, %v5678_v29  ;;  %v729_v14 = vor.u32 1.1754944e-38, %v728_v55  ;;  %v1705_v58 = vrot.slane %v5674_v5, 1 }
  0x74   : > { %v4716_v62 = vpop.eup %4715  ;;  %v970_v49 = vadd.f32 %v4708_v43, %v969_v39  ;;  %4723 = vrcp.f32 %v5686_v38  ;;  %v1213_v11 = vand.u32 2147483647, %v5680_v61  ;;  %v1215_v31 = vand.u32 2147483648, %v5680_v61 }
  0x75   : > { %v718_v10 = vmul.f32 %v4716_v62, %v5649_v44  ;;  %4725 = vpow2.f32 %v4283_v0  ;;  %v4718_v15 = vpop.eup %4717  ;;  %vm723_vm9 = vweird.f32 %v4716_v62  ;;  %v741_v26 = vand.u32 2147483647, %v5686_v38 }
  0x76   : > { %v974_v21 = vsel %vm5694_vm6, %v4708_v43, %v970_v49  ;;  %v5715_v19 = vadd.f32 1.0, %v4714_v56  ;;  %v743_v36 = vand.u32 2147483648, %v5686_v38  ;;  %v5720_v12 = vadd.f32 1.0, %v4718_v15  ;;  %vm5738_vm8 = vmor %vm722_vm7, %vm723_vm9 }
  0x77   : > { %v979_v27 = vsel %vm5665_vm4, %v978_v60, %v974_v21  ;;  %v719_v34 = vsub.f32 1.0, %v718_v10  ;;  %v4720_v33 = vpop.eup %4719  ;;  %vm1209_vm12 = vweird.f32 %v5680_v61  ;;  %vm737_vm10 = vweird.f32 %v5686_v38 }
  0x78   : > { %v5723_v18 = vmul.f32 %v5392_v45, %v979_v27  ;;  %4727 = vrcp.f32 %v5715_v19  ;;  %vm5728_vm13 = vcmp.eq.f32.partialorder %v1213_v11, 8.507059e+37  ;;  %v1216_v50 = vor.u32 1.1754944e-38, %v1215_v31 }
  0x79   : > { %v4722_v43 = vpop.eup %4721  ;;  %v720_v48 = vmul.f32 %v4716_v62, %v719_v34  ;;  %4729 = vrcp.f32 %v5720_v12  ;;  %vm5743_vm2 = vcmp.eq.f32.partialorder %v741_v26, 8.507059e+37  ;;  %v990_v24 = vand.u32 2147483647, %v5715_v19 }
  0x7a   : > { %v4724_v47 = vpop.eup %4723  ;;  %4335 = vmatmul.msk.f32.gmra.mxu2 %vm7764_vm0, %v5723_v18  ;;  %v1205_v53 = vmul.f32 %v4722_v43, %v5680_v61  ;;  %4731 = vpow2.f32 %v4295_v25  ;;  %v744_v60 = vor.u32 1.1754944e-38, %v743_v36  ;;  %vm986_vm3 = vweird.f32 %v5715_v19  ;;  %v5849_v36 = vld [vmem:[%s5115_s19 + $0x100] sm:$0xff] }
  0x7b   : > { %v4726_v40 = vpop.eup %4725  ;;  %v721_v55 = vadd.f32 %v4716_v62, %v720_v48  ;;  %v733_v42 = vmul.f32 %v4724_v47, %v5686_v38  ;;  %vm1210_vm5 = vweird.f32 %v4722_v43  ;;  %v992_v0 = vand.u32 2147483648, %v5715_v19 }
  0x7c   : > { %v1206_v44 = vsub.f32 1.0, %v1205_v53  ;;  %vm752_vm11 = vweird.f32 %v5720_v12  ;;  %vm738_vm4 = vweird.f32 %v4724_v47  ;;  %v5754_v6 = vadd.f32 1.0, %v4720_v33  ;;  %vm5766_vm6 = vmor %vm1209_vm12, %vm1210_vm5 }
  0x7d   : > { %v725_v39 = vsel %vm5738_vm8, %v4716_v62, %v721_v55  ;;  %v734_v56 = vsub.f32 1.0, %v733_v42  ;;  %vm5758_vm14 = vcmp.eq.f32.partialorder %v990_v24, 8.507059e+37  ;;  %v756_v31 = vand.u32 2147483647, %v5720_v12  ;;  %vm5775_vm7 = vmor %vm737_vm10, %vm738_vm4 }
  0x7e   : > { %v4728_v25 = vpop.eup %4727  ;;  %v730_v49 = vsel %vm5699_vm15, %v729_v14, %v725_v39  ;;  %v1207_v10 = vmul.f32 %v4722_v43, %v1206_v44  ;;  %v758_v14 = vand.u32 2147483648, %v5720_v12  ;;  %4733 = vrcp.f32 %v5754_v6  ;;  %vm7776_vm12 = vmmov %vm7764_vm0 }
  0x7f   : > { %v4730_v15 = vpop.eup %4729  ;;  %v861_v21 = vmul.f32 %v730_v49, %v5415_v1  ;;  %v735_v26 = vmul.f32 %v4724_v47, %v734_v56  ;;  %v982_v8 = vmul.f32 %v4728_v25, %v5715_v19  ;;  %v5781_v61 = vadd.f32 1.0, %v4726_v40  ;;  %vm7784_vm4 = vmmov %vm7764_vm0 }
  0x80   : > { %v4732_v27 = vpop.eup %4731  ;;  %v1208_v34 = vadd.f32 %v4722_v43, %v1207_v10  ;;  %v748_v1 = vmul.f32 %v4730_v15, %v5720_v12  ;;  %vm987_vm15 = vweird.f32 %v4728_v25  ;;  %v993_v24 = vor.u32 1.1754944e-38, %v992_v0 }
  0x81   : > { %v1706_v33 = vrot.slane %v861_v21, 1  ;;  %v736_v48 = vadd.f32 %v4724_v47, %v735_v26  ;;  %v983_v45 = vsub.f32 1.0, %v982_v8  ;;  %vm753_vm9 = vweird.f32 %v4730_v15  ;;  %vm5803_vm10 = vmor %vm986_vm3, %vm987_vm15  ;;  %v5836_v26 = vld [vmem:[%s5115_s19 + $0x70] sm:$0xff] }
  0x82   : > { %v1212_v53 = vsel %vm5766_vm6, %v4722_v43, %v1208_v34  ;;  %v749_v55 = vsub.f32 1.0, %v748_v1  ;;  %4735 = vrcp.f32 %v5781_v61  ;;  %v5817_v37 = vadd.f32 1.0, %v4732_v27 }
  0x83   : > { %v5788_v38 = vsel %vm1692_vm1, %v1705_v58, %v1706_v33  ;;  %v1217_v42 = vsel %vm5728_vm13, %v1216_v50, %v1212_v53  ;;  %v740_v40 = vsel %vm5775_vm7, %v4724_v47, %v736_v48  ;;  %v984_v44 = vmul.f32 %v4728_v25, %v983_v45  ;;  %vm5812_vm13 = vmor %vm752_vm11, %vm753_vm9  ;;  %v5857_v33 = vld [vmem:[%s5115_s19 + $0x78] sm:$0x1]  ;;  %v5881_v58 = vld [vmem:[%s5115_s19 + $0x190] sm:$0xff] }
  0x84   : > { %7775 = vst [vmem:[#allocation11_spill] sm:$0xff] %v5788_v38  ;;  %4344 = vmatmul.msk.f32.gmra.mxu3 %vm7776_vm12, %v5788_v38  ;;  %v5797_v43 = vmul.f32 %v5603_v3, %v1217_v42  ;;  %v745_v0 = vsel %vm5743_vm2, %v744_v60, %v740_v40  ;;  %v750_v59 = vmul.f32 %v4730_v15, %v749_v55  ;;  %v759_v50 = vor.u32 1.1754944e-38, %v758_v14  ;;  %v4734_v19 = vpop.eup %4733  ;;  %vm7781_vm2 = vmmov %vm7764_vm0  ;;  %v5872_v55 = vld [vmem:[%s5115_s19 + $0x180] sm:$0xff] }
  0x85   : > { %v5808_v47 = vmul.f32 %v745_v0, %v5610_v63  ;;  %v985_v39 = vadd.f32 %v4728_v25, %v984_v44  ;;  %vm757_vm8 = vcmp.eq.f32.partialorder %v756_v31, 8.507059e+37  ;;  %v1243_v63 = vand.u32 2147483647, %v5754_v6  ;;  %vm7790_vm9 = vmmov %vm7764_vm0 }
  0x86   : > { %4352 = vmatmul.msk.f32.gmra.mxu0 %vm7764_vm0, %v5797_v43  ;;  %v751_v60 = vadd.f32 %v4730_v15, %v750_v59  ;;  %v1245_v56 = vand.u32 2147483648, %v5754_v6  ;;  %v1235_v49 = vmul.f32 %v4734_v19, %v5754_v6  ;;  %vm1239_vm3 = vweird.f32 %v5754_v6 }
  0x87   : > { %4327 = vmatmul.msk.f32.gmra.mxu1 %vm7781_vm2, %v5808_v47  ;;  %v989_v12 = vsel %vm5803_vm10, %v4728_v25, %v985_v39  ;;  %v771_v10 = vand.u32 2147483647, %v5781_v61  ;;  %vm1240_vm5 = vweird.f32 %v4734_v19  ;;  %v773_v62 = vand.u32 2147483648, %v5781_v61 }
  0x88   : > { %v994_v31 = vsel %vm5758_vm14, %v993_v24, %v989_v12  ;;  %v755_v21 = vsel %vm5812_vm13, %v4730_v15, %v751_v60  ;;  %v1236_v14 = vsub.f32 1.0, %v1235_v49  ;;  %4737 = vrcp.f32 %v5817_v37  ;;  %v4736_v1 = vpop.eup %4735  ;;  %vm5862_vm6 = vmor %vm1239_vm3, %vm1240_vm5  ;;  %v5917_v15 = vld [vmem:[%s5115_s19 + $0x128] sm:$0x1]  ;;  %v4375_v24 = vld [vmem:[%s7651_s4 + $0x30] sm:$0xff] }
  0x89   : > { %v5839_v25 = vmul.f32 %v5620_v13, %v994_v31  ;;  %v760_v8 = vsel %vm757_vm8, %v759_v50, %v755_v21  ;;  %v1708_v11 = vrot.slane %v5808_v47, 1  ;;  %vm5844_vm11 = vcmp.eq.f32.partialorder %v1243_v63, 8.507059e+37  ;;  %2053 = vmatpush.msrb.mxu3 %v4375_v24  ;;  %vm7797_vm3 = vmmov %vm7764_vm0 }
  0x8a   : > { %v863_v27 = vmul.f32 %v760_v8, %v5626_v16  ;;  %v1246_v34 = vor.u32 1.1754944e-38, %v1245_v56  ;;  %v1237_v13 = vmul.f32 %v4734_v19, %v1236_v14  ;;  %vm767_vm14 = vweird.f32 %v5781_v61 }
  0x8b   : > { %4336 = vmatmul.msk.f32.gmra.mxu2 %vm7784_vm4, %v5839_v25  ;;  %4739 = vpow2.f32 %v5689_v7  ;;  %v4285_v16 = vmul.f32 -1.442695, %v5836_v26  ;;  %v763_v53 = vmul.f32 %v4736_v1, %v5781_v61  ;;  %vm5867_vm7 = vcmp.eq.f32.partialorder %v771_v10, 8.507059e+37 }
  0x8c   : > { %v1709_v48 = vrot.slane %v863_v27, 1  ;;  %v774_v7 = vor.u32 1.1754944e-38, %v773_v62  ;;  %v1238_v42 = vadd.f32 %v4734_v19, %v1237_v13  ;;  %vm768_vm15 = vweird.f32 %v4736_v1 }
  0x8d   : > { %4741 = vpow2.f32 %v5705_v20  ;;  %v4296_v40 = vmul.f32 -1.442695, %v5849_v36  ;;  %v764_v44 = vsub.f32 1.0, %v763_v53  ;;  %v4286_v0 = vmul.f32 -1.442695, %v5857_v33  ;;  %vm5899_vm12 = vmor %vm767_vm14, %vm768_vm15  ;;  %v4366_v53 = vld [vmem:[%s7651_s4 + $0x28] sm:$0xff] }
  0x8e   : > { %v5877_v6 = vsel %vm1692_vm1, %v1708_v11, %v1709_v48  ;;  %4743 = vpow2.f32 %v4285_v16  ;;  %v4738_v59 = vpop.eup %4737  ;;  %v1242_v50 = vsel %vm5862_vm6, %v4734_v19, %v1238_v42  ;;  %v1005_v20 = vand.u32 2147483647, %v5817_v37  ;;  %1999 = vmatpush.msrb.mxu2 %v4366_v53  ;;  %vm7800_vm6 = vmmov %vm7764_vm0 }
  0x8f   : > { %7789 = vst [vmem:[#allocation12_spill] sm:$0xff] %v5877_v6  ;;  %4345 = vmatmul.msk.f32.gmra.mxu3 %vm7790_vm9, %v5877_v6  ;;  %4745 = vpow2.f32 %v4296_v40  ;;  %v4310_v39 = vmul.f32 -1.442695, %v5872_v55  ;;  %v1247_v3 = vsel %vm5844_vm11, %v1246_v34, %v1242_v50  ;;  %v765_v60 = vmul.f32 %v4736_v1, %v764_v44 }
  0x90   : > { %v997_v63 = vmul.f32 %v4738_v59, %v5817_v37  ;;  %v1007_v56 = vand.u32 2147483648, %v5817_v37  ;;  %v5894_v49 = vmul.f32 %v5643_v32, %v1247_v3  ;;  %vm1001_vm10 = vweird.f32 %v5817_v37 }
  0x91   : > { %v4740_v12 = vpop.eup %4739  ;;  %vm1002_vm13 = vweird.f32 %v4738_v59  ;;  %v4312_v10 = vmul.f32 -1.442695, %v5881_v58  ;;  %v766_v31 = vadd.f32 %v4736_v1, %v765_v60  ;;  %4747 = vpow2.f32 %v4286_v0 }
  0x92   : > { %v998_v21 = vsub.f32 1.0, %v997_v63  ;;  %v5905_v62 = vadd.f32 1.0, %v4740_v12  ;;  %4353 = vmatmul.msk.f32.gmra.mxu0 %vm7764_vm0, %v5894_v49  ;;  %vm5909_vm8 = vcmp.eq.f32.partialorder %v1005_v20, 8.507059e+37  ;;  %4749 = vpow2.f32 %v4310_v39  ;;  %vm5924_vm2 = vmor %vm1001_vm10, %vm1002_vm13  ;;  %v4357_v39 = vld [vmem:[%s7651_s4 + $0x20] sm:$0xff] }
  0x93   : > { %v4742_v32 = vpop.eup %4741  ;;  %v770_v14 = vsel %vm5899_vm12, %v4736_v1, %v766_v31  ;;  %v1008_v11 = vor.u32 1.1754944e-38, %v1007_v56  ;;  %v5947_v44 = vmul.f32 -1.442695, %v5917_v15  ;;  %1900 = vmatpush.msra.mxu1 %v4357_v39 }
  0x94   : > { %v4744_v8 = vpop.eup %4743  ;;  %v999_v27 = vmul.f32 %v4738_v59, %v998_v21  ;;  %4751 = vrcp.f32 %v5905_v62  ;;  %v775_v13 = vsel %vm5867_vm7, %v774_v7, %v770_v14  ;;  %v786_v48 = vand.u32 2147483647, %v5905_v62 }
  0x95   : > { %v4746_v34 = vpop.eup %4745  ;;  %v788_v1 = vand.u32 2147483648, %v5905_v62  ;;  %v5930_v45 = vadd.f32 1.0, %v4742_v32  ;;  %v5939_v37 = vmul.f32 %v775_v13, %v5660_v52  ;;  %v5941_v42 = vadd.f32 1.0, %v4744_v8 }
  0x96   : > { %v1000_v7 = vadd.f32 %v4738_v59, %v999_v27  ;;  %4753 = vpow2.f32 %v4312_v10  ;;  %v5944_v40 = vadd.f32 1.0, %v4746_v34  ;;  %vm782_vm5 = vweird.f32 %v5905_v62 }
  0x97   : > { %4755 = vrcp.f32 %v5930_v45  ;;  %v4748_v0 = vpop.eup %4747  ;;  %4328 = vmatmul.msk.f32.gmra.mxu1 %vm7797_vm3, %v5939_v37  ;;  %v1273_v50 = vand.u32 2147483647, %v5930_v45  ;;  %v1275_v20 = vand.u32 2147483648, %v5930_v45  ;;  %vm5961_vm11 = vcmp.eq.f32.partialorder %v786_v48, 8.507059e+37 }
  0x98   : > { %v1004_v52 = vsel %vm5924_vm2, %v4738_v59, %v1000_v7  ;;  %v4750_v3 = vpop.eup %4749  ;;  %v789_v56 = vor.u32 1.1754944e-38, %v788_v1  ;;  %4757 = vrcp.f32 %v5941_v42  ;;  %vm1269_vm4 = vweird.f32 %v5930_v45 }
  0x99   : > { %v1009_v60 = vsel %vm5909_vm8, %v1008_v11, %v1004_v52  ;;  %v801_v19 = vand.u32 2147483647, %v5941_v42  ;;  %v803_v10 = vand.u32 2147483648, %v5941_v42  ;;  %vm797_vm14 = vweird.f32 %v5941_v42 }
  0x9a   : > { %v4752_v59 = vpop.eup %4751  ;;  %v5967_v12 = vmul.f32 %v5663_v46, %v1009_v60  ;;  %4759 = vrcp.f32 %v5944_v40  ;;  %vm5978_vm7 = vcmp.eq.f32.partialorder %v1273_v50, 8.507059e+37  ;;  %v1276_v61 = vor.u32 1.1754944e-38, %v1275_v20 }
  0x9b   : > { %v778_v31 = vmul.f32 %v4752_v59, %v5905_v62  ;;  %v1020_v8 = vand.u32 2147483647, %v5944_v40  ;;  %v1022_v14 = vand.u32 2147483648, %v5944_v40  ;;  %vm783_vm15 = vweird.f32 %v4752_v59 }
  0x9c   : > { %v4754_v32 = vpop.eup %4753  ;;  %4337 = vmatmul.msk.f32.gmra.mxu2 %vm7800_vm6, %v5967_v12  ;;  %v5984_v34 = vadd.f32 1.0, %v4748_v0  ;;  %v5986_v13 = vadd.f32 1.0, %v4750_v3  ;;  %vm5989_vm9 = vcmp.eq.f32.partialorder %v801_v19, 8.507059e+37  ;;  %v804_v1 = vor.u32 1.1754944e-38, %v803_v10  ;;  %vm5999_vm13 = vmor %vm782_vm5, %vm783_vm15 }
  0x9d   : > { %v4756_v27 = vpop.eup %4755  ;;  %v779_v11 = vsub.f32 1.0, %v778_v31  ;;  %vm1016_vm12 = vweird.f32 %v5944_v40  ;;  %v5995_v7 = vadd.f32 1.0, %v4754_v32  ;;  %vm6004_vm0 = vcmp.eq.f32.partialorder %v1020_v8, 8.507059e+37 }
  0x9e   : > { %v1265_v16 = vmul.f32 %v4756_v27, %v5930_v45  ;;  %v4758_v53 = vpop.eup %4757  ;;  %vm1270_vm10 = vweird.f32 %v4756_v27  ;;  %4761 = vrcp.f32 %v5984_v34  ;;  %v1023_v39 = vor.u32 1.1754944e-38, %v1022_v14 }
  0x9f   : > { %v780_v24 = vmul.f32 %v4752_v59, %v779_v11  ;;  %v793_v50 = vmul.f32 %v4758_v53, %v5941_v42  ;;  %v816_v3 = vand.u32 2147483647, %v5984_v34  ;;  %vm812_vm8 = vweird.f32 %v5984_v34  ;;  %vm6018_vm3 = vmor %vm1269_vm4, %vm1270_vm10 }
  0xa0   : > { %v1266_v52 = vsub.f32 1.0, %v1265_v16  ;;  %v4760_v60 = vpop.eup %4759  ;;  %v818_v62 = vand.u32 2147483648, %v5984_v34  ;;  %4763 = vrcp.f32 %v5986_v13  ;;  %vm798_vm2 = vweird.f32 %v4758_v53 }
  0xa1   : > { %v781_v19 = vadd.f32 %v4752_v59, %v780_v24  ;;  %v794_v31 = vsub.f32 1.0, %v793_v50  ;;  %v1012_v32 = vmul.f32 %v4760_v60, %v5944_v40  ;;  %vm1017_vm5 = vweird.f32 %v4760_v60  ;;  %vm6033_vm4 = vmor %vm797_vm14, %vm798_vm2 }
  0xa2   : > { %v1267_v10 = vmul.f32 %v4756_v27, %v1266_v52  ;;  %vm1299_vm6 = vweird.f32 %v5986_v13  ;;  %v1303_v11 = vand.u32 2147483647, %v5986_v13  ;;  %vm6026_vm15 = vcmp.eq.f32.partialorder %v816_v3, 8.507059e+37 }
  0xa3   : > { %v785_v8 = vsel %vm5999_vm13, %v4752_v59, %v781_v19  ;;  %v795_v52 = vmul.f32 %v4758_v53, %v794_v31  ;;  %v1013_v50 = vsub.f32 1.0, %v1012_v32  ;;  %v819_v21 = vor.u32 1.1754944e-38, %v818_v62 }
  0xa4   : > { %v790_v16 = vsel %vm5961_vm11, %v789_v56, %v785_v8  ;;  %v1268_v24 = vadd.f32 %v4756_v27, %v1267_v10  ;;  %v4762_v45 = vpop.eup %4761  ;;  %v1305_v63 = vand.u32 2147483648, %v5986_v13  ;;  %4765 = vrcp.f32 %v5995_v7  ;;  %vm6049_vm11 = vmor %vm1016_vm12, %vm1017_vm5 }
  0xa5   : > { %v865_v0 = vmul.f32 %v790_v16, %v5671_v51  ;;  %v796_v3 = vadd.f32 %v4758_v53, %v795_v52  ;;  %v1014_v10 = vmul.f32 %v4760_v60, %v1013_v50  ;;  %v808_v31 = vmul.f32 %v4762_v45, %v5984_v34 }
  0xa6   : > { %v1272_v56 = vsel %vm6018_vm3, %v4756_v27, %v1268_v24  ;;  %v6042_v32 = vpop.eup %4763  ;;  %vm813_vm14 = vweird.f32 %v4762_v45  ;;  %vm6053_vm10 = vcmp.eq.f32.partialorder %v1303_v11, 8.507059e+37  ;;  %v7819_v16 = vrot.slane %v5939_v37, 1 }
  0xa7   : > { %v1712_v51 = vrot.slane %v865_v0, 1  ;;  %v1277_v42 = vsel %vm5978_vm7, %v1276_v61, %v1272_v56  ;;  %v800_v14 = vsel %vm6033_vm4, %v4758_v53, %v796_v3  ;;  %v1015_v46 = vadd.f32 %v4760_v60, %v1014_v10  ;;  %vm6086_vm13 = vmor %vm812_vm8, %vm813_vm14  ;;  %v6103_v56 = vld [vmem:[%s5115_s19 + $0x138] sm:$0x1] }
  0xa8   : > { %v6058_v8 = vmul.f32 %v5678_v29, %v1277_v42  ;;  %v809_v61 = vsub.f32 1.0, %v808_v31  ;;  %v805_v24 = vsel %vm5989_vm9, %v804_v1, %v800_v14  ;;  %v1295_v11 = vmul.f32 %v6042_v32, %v5986_v13  ;;  %v4393_v31 = vld [vmem:[%s7651_s4 + $0x40] sm:$0xff] }
  0xa9   : > { %v6065_v40 = vsel %vm1692_vm1, %v7819_v16, %v1712_v51  ;;  %v1306_v52 = vor.u32 1.1754944e-38, %v1305_v63  ;;  %vm7821_vm7 = vcmask 64512   ;;  %v6076_v29 = vmul.f32 %v805_v24, %v5836_v26  ;;  %v6100_v63 = vld [vmem:[%s5115_s19 + $0x1b0] sm:$0xff]  ;;  %v6115_v51 = vld [vmem:[%s5115_s19 + $0x148] sm:$0x1] }
  0xaa   : > { %7820 = vst [vmem:[#allocation13_spill] sm:$0xff] %v6065_v40  ;;  %4346 = vmatmul.msk.f32.gmra.mxu3 %vm7821_vm7, %v6065_v40  ;;  %vm7822_vm12 = vmmov %vm7821_vm7  ;;  %v1019_v53 = vsel %vm6049_vm11, %v4760_v60, %v1015_v46  ;;  %v810_v48 = vmul.f32 %v4762_v45, %v809_v61  ;;  %vm1300_vm9 = vweird.f32 %v6042_v32  ;;  %v4766_v1 = vpop.eup %4765  ;;  %v1296_v26 = vsub.f32 1.0, %v1295_v11  ;;  %v6131_v61 = vld [vmem:[%s5115_s19 + $0x1d0] sm:$0xff]  ;;  %v6134_v16 = vld [vmem:[%s5115_s19 + $0x158] sm:$0x1] }
  0xab   : > { %4354 = vmatmul.msk.f32.gmra.mxu0 %vm7822_vm12, %v6058_v8  ;;  %7823 = vst [vmem:[#allocation14_spill] sm:$0xff] %v6076_v29  ;;  %v1024_v50 = vsel %vm6004_vm0, %v1023_v39, %v1019_v53  ;;  %v1333_v19 = vand.u32 2147483647, %v5995_v7  ;;  %v1335_v60 = vand.u32 2147483648, %v5995_v7  ;;  %vm7826_vm2 = vmmov %vm7821_vm7  ;;  %v1325_v34 = vmul.f32 %v4766_v1, %v5995_v7 }
  0xac   : > { %4329 = vmatmul.msk.f32.gmra.mxu1 %vm7826_vm2, %v6076_v29  ;;  %v6095_v20 = vmul.f32 %v5849_v36, %v1024_v50  ;;  %v811_v39 = vadd.f32 %v4762_v45, %v810_v48  ;;  %vm1329_vm0 = vweird.f32 %v5995_v7  ;;  %v1714_v3 = vrot.slane %v6076_v29, 1  ;;  %v6112_v36 = vld [vmem:[%s5115_s19 + $0x1c0] sm:$0xff]  ;;  %vm7830_vm5 = vmmov %vm7826_vm2 }
  0xad   : > { %v1297_v10 = vmul.f32 %v6042_v32, %v1296_v26  ;;  %vm1330_vm8 = vweird.f32 %v4766_v1  ;;  %vm6107_vm3 = vcmp.eq.f32.partialorder %v1333_v19, 8.507059e+37  ;;  %vm6125_vm4 = vmor %vm1299_vm6, %vm1300_vm9  ;;  %v1326_v14 = vsub.f32 1.0, %v1325_v34 }
  0xae   : > { %7827 = vst [vmem:[#allocation15_spill] sm:$0xff] %v6095_v20  ;;  %4338 = vmatmul.msk.f32.gmra.mxu2 %vm7830_vm5, %v6095_v20  ;;  %v815_v42 = vsel %vm6086_vm13, %v4762_v45, %v811_v39  ;;  %v1336_v46 = vor.u32 1.1754944e-38, %v1335_v60  ;;  %4767 = vpow2.f32 %v5947_v44  ;;  %v4314_v13 = vmul.f32 -1.442695, %v6100_v63  ;;  %vm6150_vm6 = vmor %vm1329_vm0, %vm1330_vm8 }
  0xaf   : > { %v820_v24 = vsel %vm6026_vm15, %v819_v21, %v815_v42  ;;  %v1298_v45 = vadd.f32 %v6042_v32, %v1297_v10  ;;  %v4301_v11 = vmul.f32 -1.442695, %v6103_v56  ;;  %v1327_v48 = vmul.f32 %v4766_v1, %v1326_v14  ;;  %vm7836_vm15 = vmmov %vm7826_vm2 }
  0xb0   : > { %v867_v53 = vmul.f32 %v820_v24, %v5857_v33  ;;  %v4315_v50 = vmul.f32 -1.442695, %v6112_v36  ;;  %v4303_v44 = vmul.f32 -1.442695, %v6115_v51  ;;  %4769 = vpow2.f32 %v4314_v13  ;;  %vm7837_vm11 = vmmov %vm7826_vm2  ;;  %v6199_v13 = vld [vmem:[%s5115_s19 + $0x1f0] sm:$0xff] }
  0xb1   : > { %v1302_v0 = vsel %vm6125_vm4, %v6042_v32, %v1298_v45  ;;  %v4316_v59 = vmul.f32 -1.442695, %v6131_v61  ;;  %v4305_v33 = vmul.f32 -1.442695, %v6134_v16  ;;  %v1328_v60 = vadd.f32 %v4766_v1, %v1327_v48  ;;  %v6159_v32 = vld [vmem:[%s5115_s19 + $0x1e0] sm:$0xff]  ;;  %vm7839_vm14 = vmmov %vm7826_vm2 }
  0xb2   : > { %v1715_v26 = vrot.slane %v867_v53, 1  ;;  %v1307_v19 = vsel %vm6053_vm10, %v1306_v52, %v1302_v0  ;;  %4771 = vpow2.f32 %v4301_v11  ;;  %v4384_v52 = vld [vmem:[%s7651_s4 + $0x38] sm:$0xff]  ;;  %vm7842_vm9 = vmmov %vm7826_vm2 }
  0xb3   : > { %v6162_v7 = vmul.f32 %v5872_v55, %v1307_v19  ;;  %4773 = vpow2.f32 %v4315_v50  ;;  %v1332_v10 = vsel %vm6150_vm6, %v4766_v1, %v1328_v60  ;;  %v4317_v1 = vmul.f32 -1.442695, %v6159_v32  ;;  %2107 = vmatpush.msra.mxu0 %v4384_v52  ;;  %v6343_v53 = vld [vmem:[%s5115_s19 + $0x178] sm:$0x1] }
  0xb4   : > { %v4768_v39 = vpop.eup %4767  ;;  %v6165_v34 = vsel %vm1692_vm1, %v1714_v3, %v1715_v26  ;;  %4775 = vpow2.f32 %v4303_v44  ;;  %v1337_v27 = vsel %vm6107_vm3, %v1336_v46, %v1332_v10  ;;  %v6182_v3 = vld [vmem:[%s5115_s19 + $0x168] sm:$0x1]  ;;  %v6213_v26 = vmul.f32 -1.442695, %v6199_v13 }
  0xb5   : > { %7835 = vst [vmem:[#allocation16_spill] sm:$0xff] %v6165_v34  ;;  %4347 = vmatmul.msk.f32.gmra.mxu3 %vm7836_vm15, %v6165_v34  ;;  %4355 = vmatmul.msk.f32.gmra.mxu0 %vm7837_vm11, %v6162_v7  ;;  %v6175_v55 = vadd.f32 1.0, %v4768_v39  ;;  %4777 = vpow2.f32 %v4316_v59  ;;  %v6185_v42 = vmul.f32 %v5881_v58, %v1337_v27  ;;  %v4307_v58 = vmul.f32 -1.442695, %v6182_v3 }
  0xb6   : > { %4779 = vpow2.f32 %v4305_v33  ;;  %v4770_v62 = vpop.eup %4769 }
  0xb7   : > { %7838 = vst [vmem:[#allocation17_spill] sm:$0xff] %v6185_v42  ;;  %4781 = vrcp.f32 %v6175_v55  ;;  %v1140_v14 = vand.u32 2147483648, %v6175_v55  ;;  %4356 = vmatmul.msk.f32.vlgmr.msrb.gmra.mxu1 %vm7839_vm14, %v6185_v42  ;;  %v1138_v24 = vand.u32 2147483647, %v6175_v55  ;;  %v6195_v45 = vadd.f32 1.0, %v4770_v62 }
  0xb8   : > { %v4772_v46 = vpop.eup %4771  ;;  %2164 = vmatpush.msrb.mxu1 %v4393_v31  ;;  %4783 = vpow2.f32 %v4317_v1  ;;  %vm1134_vm10 = vweird.f32 %v6175_v55 }
  0xb9   : > { %v4774_v11 = vpop.eup %4773  ;;  %v6202_v48 = vadd.f32 1.0, %v4772_v46  ;;  %4785 = vrcp.f32 %v6195_v45  ;;  %v1413_v0 = vand.u32 2147483648, %v6195_v45  ;;  %v6208_v59 = vor.u32 1.1754944e-38, %v1140_v14 }
  0xba   : > { %v4776_v50 = vpop.eup %4775  ;;  %v1411_v33 = vand.u32 2147483647, %v6195_v45  ;;  %vm6215_vm7 = vcmp.eq.f32.partialorder %v1138_v24, 8.507059e+37  ;;  %vm1407_vm12 = vweird.f32 %v6195_v45  ;;  %v6220_v39 = vadd.f32 1.0, %v4774_v11 }
  0xbb   : > { %v4778_v21 = vpop.eup %4777  ;;  %4787 = vrcp.f32 %v6202_v48  ;;  %v6222_v10 = vadd.f32 1.0, %v4776_v50  ;;  %vm1164_vm13 = vweird.f32 %v6202_v48  ;;  %v1168_v52 = vand.u32 2147483647, %v6202_v48 }
  0xbc   : > { %v4780_v19 = vpop.eup %4779  ;;  %4789 = vpow2.f32 %v4307_v58  ;;  %v1170_v1 = vand.u32 2147483648, %v6202_v48  ;;  %v6231_v31 = vadd.f32 1.0, %v4778_v21  ;;  %v6234_v14 = vor.u32 1.1754944e-38, %v1413_v0 }
  0xbd   : > { %v4782_v27 = vpop.eup %4781  ;;  %4376 = vmatmul.msk.f32.vlgmr.msrb.gmra.mxu3 %vm7842_vm9, %v5319_v2  ;;  %4385 = vmatmul.msk.f32.vlgmr.msra.gmra.mxu0 %vm7826_vm2, %v5330_v9  ;;  %4791 = vrcp.f32 %v6220_v39  ;;  %v6237_v46 = vadd.f32 1.0, %v4780_v19  ;;  %vm6241_vm8 = vcmp.eq.f32.partialorder %v1411_v33, 8.507059e+37  ;;  %v1426_v58 = vand.u32 2147483647, %v6220_v39 }
  0xbe   : > { %v1130_v62 = vmul.f32 %v4782_v27, %v6175_v55  ;;  %v6239_v2 = vpop.eup %4783  ;;  %vm1135_vm0 = vweird.f32 %v4782_v27  ;;  %v1428_v9 = vand.u32 2147483648, %v6220_v39  ;;  %4793 = vrcp.f32 %v6222_v10 }
  0xbf   : > { %v4786_v11 = vpop.eup %4785  ;;  %v1198_v0 = vand.u32 2147483647, %v6222_v10  ;;  %v1200_v21 = vand.u32 2147483648, %v6222_v10  ;;  %4795 = vrcp.f32 %v6231_v31  ;;  %vm6252_vm3 = vcmp.eq.f32.partialorder %v1168_v52, 8.507059e+37  ;;  %vm6264_vm15 = vmor %vm1134_vm10, %vm1135_vm0 }
  0xc0   : > { %v1131_v50 = vsub.f32 1.0, %v1130_v62  ;;  %v1403_v33 = vmul.f32 %v4786_v11, %v6195_v45  ;;  %v1171_v44 = vor.u32 1.1754944e-38, %v1170_v1  ;;  %vm1422_vm5 = vweird.f32 %v6220_v39  ;;  %vm7853_vm0 = vmmov %vm7826_vm2 }
  0xc1   : > { %v4788_v19 = vpop.eup %4787  ;;  %vm1408_vm4 = vweird.f32 %v4786_v11  ;;  %vm1194_vm6 = vweird.f32 %v6222_v10  ;;  %vm6268_vm14 = vcmp.eq.f32.partialorder %v1426_v58, 8.507059e+37  ;;  %v1429_v38 = vor.u32 1.1754944e-38, %v1428_v9 }
  0xc2   : > { %v6257_v34 = vpop.eup %4789  ;;  %v1132_v40 = vmul.f32 %v4782_v27, %v1131_v50  ;;  %v1160_v62 = vmul.f32 %v4788_v19, %v6202_v48  ;;  %v1404_v52 = vsub.f32 1.0, %v1403_v33  ;;  %vm1165_vm11 = vweird.f32 %v4788_v19  ;;  %vm6294_vm10 = vmor %vm1407_vm12, %vm1408_vm4 }
  0xc3   : > { %v6272_v50 = vor.u32 1.1754944e-38, %v1200_v21  ;;  %v4792_v23 = vpop.eup %4791  ;;  %vm6274_vm9 = vcmp.eq.f32.partialorder %v1198_v0, 8.507059e+37  ;;  %4797 = vrcp.f32 %v6237_v46  ;;  %v1443_v9 = vand.u32 2147483648, %v6231_v31 }
  0xc4   : > { %v1133_v28 = vadd.f32 %v4782_v27, %v1132_v40  ;;  %v1161_v41 = vsub.f32 1.0, %v1160_v62  ;;  %v4794_v55 = vpop.eup %4793  ;;  %v1405_v33 = vmul.f32 %v4786_v11, %v1404_v52  ;;  %v1418_v58 = vmul.f32 %v4792_v23, %v6220_v39 }
  0xc5   : > { %4377 = vmatmul.msk.f32.gmra.mxu3 %vm7826_vm2, %v5447_v4  ;;  %4386 = vmatmul.msk.f32.gmra.mxu0 %vm7853_vm0, %v5467_v30  ;;  %v1441_v40 = vand.u32 2147483647, %v6231_v31  ;;  %v6287_v0 = vpop.eup %4795  ;;  %vm1423_vm2 = vweird.f32 %v4792_v23  ;;  %v1190_v30 = vmul.f32 %v4794_v55, %v6222_v10  ;;  %vm1195_vm12 = vweird.f32 %v4794_v55 }
  0xc6   : > { %v1137_v21 = vsel %vm6264_vm15, %v4782_v27, %v1133_v28  ;;  %v1162_v4 = vmul.f32 %v4788_v19, %v1161_v41  ;;  %v1406_v20 = vadd.f32 %v4786_v11, %v1405_v33  ;;  %vm6305_vm15 = vmor %vm1164_vm13, %vm1165_vm11  ;;  %v1419_v6 = vsub.f32 1.0, %v1418_v58 }
  0xc7   : > { %v1142_v52 = vsel %vm6215_vm7, %v6208_v59, %v1137_v21  ;;  %v1433_v45 = vmul.f32 %v6287_v0, %v6231_v31  ;;  %v1191_v29 = vsub.f32 1.0, %v1190_v30  ;;  %vm1438_vm7 = vweird.f32 %v6287_v0  ;;  %vm6323_vm13 = vmor %vm1422_vm5, %vm1423_vm2 }
  0xc8   : > { %v1355_v41 = vmul.f32 %v5917_v15, %v1142_v52  ;;  %v1163_v27 = vadd.f32 %v4788_v19, %v1162_v4  ;;  %v1410_v59 = vsel %vm6294_vm10, %v4786_v11, %v1406_v20  ;;  %v1420_v60 = vmul.f32 %v4792_v23, %v1419_v6  ;;  %vm7864_vm5 = vmmov %vm7853_vm0 }
  0xc9   : > { %v1434_v33 = vsub.f32 1.0, %v1433_v45  ;;  %v4798_v48 = vpop.eup %4797  ;;  %v1415_v58 = vsel %vm6241_vm8, %v6234_v14, %v1410_v59  ;;  %v1192_v20 = vmul.f32 %v4794_v55, %v1191_v29  ;;  %vm6332_vm8 = vmor %vm1194_vm6, %vm1195_vm12  ;;  %v7862_v39 = vrot.slane %v5418_v57, 1 }
  0xca   : > { %v1943_v21 = vrot.slane %v1355_v41, 1  ;;  %v1167_v15 = vsel %vm6305_vm15, %v4788_v19, %v1163_v27  ;;  %v1522_v11 = vmul.f32 %v6100_v63, %v1415_v58  ;;  %v1421_v30 = vadd.f32 %v4792_v23, %v1420_v60  ;;  %vm7865_vm11 = vmmov %vm7853_vm0 }
  0xcb   : > { %v1172_v4 = vsel %vm6252_vm3, %v1171_v44, %v1167_v15  ;;  %v1435_v24 = vmul.f32 %v6287_v0, %v1434_v33  ;;  %v1193_v52 = vadd.f32 %v4794_v55, %v1192_v20  ;;  %v1220_v63 = vmul.f32 %v4798_v48, %v6237_v46  ;;  %vm7863_vm3 = vmmov %vm7853_vm0 }
  0xcc   : > { %v1944_v19 = vsel %vm1692_vm1, %v7862_v39, %v1943_v21  ;;  %v1357_v29 = vmul.f32 %v6103_v56, %v1172_v4  ;;  %4358 = vmatmul.msk.f32.vlgmr.msra.gmra.mxu1 %vm7864_vm5, %v1522_v11  ;;  %v1425_v44 = vsel %vm6323_vm13, %v4792_v23, %v1421_v30  ;;  %vm1224_vm4 = vweird.f32 %v6237_v46  ;;  %vm7869_vm2 = vmmov %vm7863_vm3  ;;  %v6428_v4 = vld [vmem:[%s5115_s19 + $0x210] sm:$0xff] }
  0xcd   : > { %4367 = vmatmul.msk.f32.vlgmr.msrb.gmra.mxu2 %vm7863_vm3, %v1944_v19  ;;  %v1436_v10 = vadd.f32 %v6287_v0, %v1435_v24  ;;  %vm1225_vm6 = vweird.f32 %v4798_v48  ;;  %v1430_v56 = vsel %vm6268_vm14, %v1429_v38, %v1425_v44  ;;  %v1197_v28 = vsel %vm6332_vm8, %v4794_v55, %v1193_v52  ;;  %4378 = vmatmul.msk.f32.gmra.mxu3 %vm7865_vm11, %v5568_v54  ;;  %vm7875_vm12 = vmmov %vm7869_vm2 }
  0xce   : > { %v1946_v57 = vrot.slane %v1357_v29, 1  ;;  %vm7866_vm10 = vweird.f32 %v6231_v31  ;;  %v1221_v6 = vsub.f32 1.0, %v1220_v63  ;;  %4387 = vmatmul.msk.f32.gmra.mxu0 %vm7869_vm2, %v5583_v22  ;;  %v1202_v38 = vsel %vm6274_vm9, %v6272_v50, %v1197_v28  ;;  %vm6387_vm9 = vmor %vm1224_vm4, %vm1225_vm6  ;;  %v6442_v29 = vld [vmem:[%s5115_s19 + $0x198] sm:$0x1]  ;;  %v6453_v28 = vld [vmem:[%s5115_s19 + $0x220] sm:$0xff] }
  0xcf   : > { %vm6361_vm0 = vmor %vm7866_vm10, %vm1438_vm7  ;;  %vm6370_vm14 = vcmp.eq.f32.partialorder %v1441_v40, 8.507059e+37  ;;  %v1228_v54 = vand.u32 2147483647, %v6237_v46  ;;  %v4309_v31 = vmul.f32 -1.442695, %v6343_v53  ;;  %v1523_v55 = vmul.f32 %v6112_v36, %v1430_v56  ;;  %v6450_v56 = vld [vmem:[%s5115_s19 + $0x80] sm:$0xff] }
  0xd0   : > { %v1359_v45 = vmul.f32 %v6115_v51, %v1202_v38  ;;  %v1444_v41 = vor.u32 1.1754944e-38, %v1443_v9  ;;  %v1222_v27 = vmul.f32 %v4798_v48, %v1221_v6  ;;  %v7872_v22 = vrot.slane %v5540_v35, 1  ;;  %vm7876_vm7 = vmmov %vm7869_vm2 }
  0xd1   : > { %v1440_v50 = vsel %vm6361_vm0, %v6287_v0, %v1436_v10  ;;  %v1230_v36 = vand.u32 2147483648, %v6237_v46  ;;  %v6393_v51 = vadd.f32 1.0, %v6239_v2  ;;  %vm1229_vm15 = vcmp.eq.f32.partialorder %v1228_v54, 8.507059e+37  ;;  %v6405_v46 = vld [vmem:[%s5115_s19 + $0x200] sm:$0xff]  ;;  %v6408_v2 = vld [vmem:[%s5115_s19 + $0x188] sm:$0x1]  ;;  %vm7877_vm13 = vmmov %vm7869_vm2 }
  0xd2   : > { %v1947_v42 = vsel %vm1692_vm1, %v7872_v22, %v1946_v57  ;;  %v1223_v35 = vadd.f32 %v4798_v48, %v1222_v27  ;;  %v6396_v9 = vadd.f32 1.0, %v6257_v34  ;;  %4799 = vpow2.f32 %v6213_v26  ;;  %vm7878_vm8 = vmmov %vm7869_vm2  ;;  %v6471_v22 = vld [vmem:[%s5115_s19 + $0x110] sm:$0xff] }
  0xd3   : > { %v1231_v0 = vor.u32 1.1754944e-38, %v1230_v36  ;;  %4801 = vrcp.f32 %v6393_v51  ;;  %v1948_v59 = vrot.slane %v5629_v17, 1  ;;  %v1949_v60 = vrot.slane %v1359_v45, 1  ;;  %vm7883_vm10 = vmmov %vm7869_vm2 }
  0xd4   : > { %v1227_v33 = vsel %vm6387_vm9, %v4798_v48, %v1223_v35  ;;  %4803 = vrcp.f32 %v6396_v9  ;;  %v1951_v34 = vrot.slane %v5797_v43, 1  ;;  %4359 = vmatmul.msk.f32.gmra.mxu1 %vm7876_vm7, %v1523_v55  ;;  %v1445_v17 = vsel %vm6370_vm14, %v1444_v41, %v1440_v50  ;;  %vm7884_vm0 = vmmov %vm7869_vm2 }
  0xd5   : > { %4368 = vmatmul.msk.f32.gmra.mxu2 %vm7875_vm12, %v1947_v42  ;;  %v1232_v26 = vsel %vm1229_vm15, %v1231_v0, %v1227_v33  ;;  %v1456_v21 = vand.u32 2147483647, %v6393_v51  ;;  %v1954_v48 = vrot.slane %v5894_v49, 1  ;;  %v1957_v58 = vrot.slane %v6058_v8, 1  ;;  %4379 = vmatmul.msk.f32.gmra.mxu3 %vm7877_vm13, %v5674_v5  ;;  %vm7885_vm14 = vmmov %vm7884_vm0 }
  0xd6   : > { %v1960_v15 = vrot.slane %v6162_v7, 1  ;;  %4388 = vmatmul.msk.f32.gmra.mxu0 %vm7878_vm8, %v5723_v18  ;;  %4805 = vpow2.f32 %v4309_v31  ;;  %v1361_v43 = vmul.f32 %v6134_v16, %v1232_v26  ;;  %v1458_v62 = vand.u32 2147483648, %v6393_v51  ;;  %vm7886_vm9 = vmmov %vm7884_vm0 }
  0xd7   : > { %v4319_v20 = vmul.f32 -1.442695, %v6405_v46  ;;  %v4311_v11 = vmul.f32 -1.442695, %v6408_v2  ;;  %v1950_v14 = vsel %vm1692_vm1, %v1948_v59, %v1949_v60  ;;  %v1524_v5 = vmul.f32 %v6131_v61, %v1445_v17  ;;  %vm7891_vm8 = vmmov %vm7884_vm0 }
  0xd8   : > { %v4800_v30 = vpop.eup %4799  ;;  %vm1452_vm3 = vweird.f32 %v6393_v51  ;;  %v1258_v18 = vand.u32 2147483647, %v6396_v9  ;;  %vm6434_vm5 = vcmp.eq.f32.partialorder %v1456_v21, 8.507059e+37  ;;  %v1260_v39 = vand.u32 2147483648, %v6396_v9 }
  0xd9   : > { %v4802_v24 = vpop.eup %4801  ;;  %v6439_v19 = vadd.f32 1.0, %v4800_v30  ;;  %4807 = vpow2.f32 %v4319_v20  ;;  %vm1254_vm4 = vweird.f32 %v6396_v9  ;;  %v4320_v63 = vmul.f32 -1.442695, %v6428_v4 }
  0xda   : > { %v4804_v52 = vpop.eup %4803  ;;  %v1448_v61 = vmul.f32 %v4802_v24, %v6393_v51  ;;  %4809 = vpow2.f32 %v4311_v11  ;;  %v1952_v44 = vrot.slane %v1361_v43, 1  ;;  %v1459_v10 = vor.u32 1.1754944e-38, %v1458_v62 }
  0xdb   : > { %v1250_v57 = vmul.f32 %v4804_v52, %v6396_v9  ;;  %4811 = vrcp.f32 %v6439_v19  ;;  %vm1453_vm6 = vweird.f32 %v4802_v24  ;;  %vm6455_vm11 = vcmp.eq.f32.partialorder %v1258_v18, 8.507059e+37 }
  0xdc   : > { %v4806_v23 = vpop.eup %4805  ;;  %v1449_v6 = vsub.f32 1.0, %v1448_v61  ;;  %v4313_v1 = vmul.f32 -1.442695, %v6442_v29  ;;  %4360 = vmatmul.msk.f32.gmra.mxu1 %vm7884_vm0, %v1524_v5  ;;  %vm1255_vm2 = vweird.f32 %v4804_v52  ;;  %v1261_v31 = vor.u32 1.1754944e-38, %v1260_v39  ;;  %vm6477_vm15 = vmor %vm1452_vm3, %vm1453_vm6 }
  0xdd   : > { %4369 = vmatmul.msk.f32.gmra.mxu2 %vm7883_vm10, %v1950_v14  ;;  %v1251_v54 = vsub.f32 1.0, %v1250_v57  ;;  %v6462_v55 = vadd.f32 1.0, %v4806_v23  ;;  %4380 = vmatmul.msk.f32.gmra.mxu3 %vm7885_vm14, %v5808_v47  ;;  %4813 = vpow2.f32 %v4320_v63  ;;  %v4287_v41 = vmul.f32 -1.442695, %v6450_v56  ;;  %vm6486_vm7 = vmor %vm1254_vm4, %vm1255_vm2 }
  0xde   : > { %v1450_v45 = vmul.f32 %v4802_v24, %v1449_v6  ;;  %4389 = vmatmul.msk.f32.gmra.mxu0 %vm7886_vm9, %v5839_v25  ;;  %v4321_v27 = vmul.f32 -1.442695, %v6453_v28  ;;  %v1953_v50 = vsel %vm1692_vm1, %v1951_v34, %v1952_v44  ;;  %vm1467_vm12 = vweird.f32 %v6439_v19 }
  0xdf   : > { %v4808_v42 = vpop.eup %4807  ;;  %v1252_v47 = vmul.f32 %v4804_v52, %v1251_v54  ;;  %4815 = vrcp.f32 %v6462_v55  ;;  %v1471_v51 = vand.u32 2147483647, %v6439_v19  ;;  %v1473_v33 = vand.u32 2147483648, %v6439_v19 }
  0xe0   : > { %v4810_v25 = vpop.eup %4809  ;;  %v1451_v36 = vadd.f32 %v4802_v24, %v1450_v45  ;;  %v6491_v0 = vadd.f32 1.0, %v4808_v42  ;;  %4817 = vpow2.f32 %v4313_v1  ;;  %v6497_v17 = vmul.f32 -1.442695, %v6471_v22 }
  0xe1   : > { %v4812_v59 = vpop.eup %4811  ;;  %v1253_v60 = vadd.f32 %v4804_v52, %v1252_v47  ;;  %v6494_v34 = vadd.f32 1.0, %v4810_v25  ;;  %v1288_v21 = vand.u32 2147483647, %v6462_v55  ;;  %4819 = vpow2.f32 %v4287_v41 }
  0xe2   : > { %v1455_v9 = vsel %vm6477_vm15, %v4802_v24, %v1451_v36  ;;  %v1463_v26 = vmul.f32 %v4812_v59, %v6439_v19  ;;  %v1290_v20 = vand.u32 2147483648, %v6462_v55  ;;  %4821 = vrcp.f32 %v6491_v0 }
  0xe3   : > { %v1460_v43 = vsel %vm6434_vm5, %v1459_v10, %v1455_v9  ;;  %v1257_v62 = vsel %vm6486_vm7, %v4804_v52, %v1253_v60  ;;  %v4814_v11 = vpop.eup %4813  ;;  %vm1468_vm13 = vweird.f32 %v4812_v59  ;;  %vm6514_vm3 = vcmp.eq.f32.partialorder %v1471_v51, 8.507059e+37  ;;  %vm7894_vm5 = vmmov %vm7884_vm0  ;;  %v4418_v60 = vld [vmem:[%s7653_s6 + $0x8] sm:$0xff] }
  0xe4   : > { %v1525_v30 = vmul.f32 %v6159_v32, %v1460_v43  ;;  %v1262_v14 = vsel %vm6455_vm11, %v1261_v31, %v1257_v62  ;;  %v1464_v5 = vsub.f32 1.0, %v1463_v26  ;;  %v1474_v39 = vor.u32 1.1754944e-38, %v1473_v33  ;;  %v2398_v32 = vld [vmem:[%s7653_s6] sm:$0xff]  ;;  %vm7897_vm11 = vmmov %vm7884_vm0  ;;  %v7905_v26 = vld [vmem:[#allocation14_spill] sm:$0xff]  ;;  %2524 = vmatpush.msra.mxu3 %v4418_v60 }
  0xe5   : > { %v4816_v18 = vpop.eup %4815  ;;  %4370 = vmatmul.msk.f32.gmra.mxu2 %vm7891_vm8, %v1953_v50  ;;  %v1363_v24 = vmul.f32 %v6182_v3, %v1262_v14  ;;  %4823 = vrcp.f32 %v6494_v34  ;;  %vm1284_vm4 = vweird.f32 %v6462_v55  ;;  %vm6525_vm6 = vcmp.eq.f32.partialorder %v1288_v21, 8.507059e+37  ;;  %4381 = vmatmul.msk.f32.gmra.mxu3 %vm7897_vm11, %v5939_v37  ;;  %vm6534_vm10 = vmor %vm1467_vm12, %vm1468_vm13 }
  0xe6   : > { %v4818_v52 = vpop.eup %4817  ;;  %4361 = vmatmul.msk.f32.gmra.mxu1 %vm7894_vm5, %v1525_v30  ;;  %v1465_v61 = vmul.f32 %v4812_v59, %v1464_v5  ;;  %v1280_v63 = vmul.f32 %v4816_v18, %v6462_v55  ;;  %v1291_v57 = vor.u32 1.1754944e-38, %v1290_v20  ;;  %vm1482_vm0 = vweird.f32 %v6491_v0  ;;  %vm7900_vm2 = vmmov %vm7894_vm5  ;;  %2438 = vmatpush.msra.mxu2 %v2398_v32  ;;  %v7911_v30 = vld [vmem:[#allocation15_spill] sm:$0xff] }
  0xe7   : > { %v1955_v44 = vrot.slane %v1363_v24, 1  ;;  %4390 = vmatmul.msk.f32.gmra.mxu0 %vm7900_vm2, %v5967_v12  ;;  %4825 = vpow2.f32 %v4321_v27  ;;  %v4820_v23 = vpop.eup %4819  ;;  %vm1285_vm14 = vweird.f32 %v4816_v18  ;;  %v6541_v37 = vadd.f32 1.0, %v4814_v11  ;;  %vm7903_vm7 = vmmov %vm7900_vm2 }
  0xe8   : > { %v1466_v6 = vadd.f32 %v4812_v59, %v1465_v61  ;;  %v1281_v38 = vsub.f32 1.0, %v1280_v63  ;;  %v4822_v1 = vpop.eup %4821  ;;  %v1486_v19 = vand.u32 2147483647, %v6491_v0  ;;  %v1488_v54 = vand.u32 2147483648, %v6491_v0  ;;  %vm6558_vm15 = vmor %vm1284_vm4, %vm1285_vm14 }
  0xe9   : > { %vm1314_vm9 = vweird.f32 %v6494_v34  ;;  %v6546_v31 = vadd.f32 1.0, %v4818_v52  ;;  %v1956_v12 = vsel %vm1692_vm1, %v1954_v48, %v1955_v44  ;;  %v1478_v27 = vmul.f32 %v4822_v1, %v6491_v0  ;;  %vm7904_vm13 = vmmov %vm7900_vm2  ;;  %v6598_v0 = vpop.f32.mrf.mxu1 }
  0xea   : > { %v1470_v45 = vsel %vm6534_vm10, %v4812_v59, %v1466_v6  ;;  %v1282_v41 = vmul.f32 %v4816_v18, %v1281_v38  ;;  %vm1483_vm12 = vweird.f32 %v4822_v1  ;;  %4827 = vrcp.f32 %v6541_v37  ;;  %vm7912_vm11 = vmmov %vm7900_vm2 }
  0xeb   : > { %v4824_v42 = vpop.eup %4823  ;;  %v1475_v50 = vsel %vm6514_vm3, %v1474_v39, %v1470_v45  ;;  %v6563_v49 = vadd.f32 1.0, %v4820_v23  ;;  %v1479_v25 = vsub.f32 1.0, %v1478_v27  ;;  %v1318_v55 = vand.u32 2147483647, %v6494_v34  ;;  %vm7906_vm3 = vmmov %vm7900_vm2 }
  0xec   : > { %v1526_v48 = vmul.f32 %v6199_v13, %v1475_v50  ;;  %v1283_v47 = vadd.f32 %v4816_v18, %v1282_v41  ;;  %v1310_v36 = vmul.f32 %v4824_v42, %v6494_v34  ;;  %v1320_v51 = vand.u32 2147483648, %v6494_v34  ;;  %vm6585_vm5 = vmor %vm1482_vm0, %vm1483_vm12 }
  0xed   : > { %v4826_v35 = vpop.eup %4825  ;;  %4371 = vmatmul.msk.f32.gmra.mxu2 %vm7903_vm7, %v1956_v12  ;;  %v1501_v59 = vand.u32 2147483647, %v6541_v37  ;;  %4829 = vrcp.f32 %v6546_v31  ;;  %v1480_v33 = vmul.f32 %v4822_v1, %v1479_v25  ;;  %vm1315_vm8 = vweird.f32 %v4824_v42  ;;  %4382 = vmatmul.msk.f32.gmra.mxu3 %vm7906_vm3, %v7905_v26  ;;  %vm7920_vm12 = vmmov %vm7906_vm3 }
  0xee   : > { %4362 = vmatmul.msk.f32.gmra.mxu1 %vm7904_vm13, %v1526_v48  ;;  %v1287_v13 = vsel %vm6558_vm15, %v4816_v18, %v1283_v47  ;;  %v1311_v9 = vsub.f32 1.0, %v1310_v36  ;;  %vm6589_vm4 = vcmp.eq.f32.partialorder %v1486_v19, 8.507059e+37  ;;  %v1489_v20 = vor.u32 1.1754944e-38, %v1488_v54  ;;  %vm7919_vm15 = vmmov %vm7906_vm3  ;;  %v4427_v47 = vld [vmem:[%s7653_s6 + $0x10] sm:$0xff] }
  0xef   : > { %v1292_v21 = vsel %vm6525_vm6, %v1291_v57, %v1287_v13  ;;  %v1503_v11 = vand.u32 2147483648, %v6541_v37  ;;  %4391 = vmatmul.msk.f32.gmra.mxu0 %vm7912_vm11, %v7911_v30  ;;  %v1481_v5 = vadd.f32 %v4822_v1, %v1480_v33  ;;  %4831 = vrcp.f32 %v6563_v49  ;;  %vm6603_vm6 = vmor %vm1314_vm9, %vm1315_vm8 }
  0xf0   : > { %v1365_v14 = vmul.f32 %v6343_v53, %v1292_v21  ;;  %v1312_v18 = vmul.f32 %v4824_v42, %v1311_v9  ;;  %v4828_v24 = vpop.eup %4827  ;;  %vm6607_vm10 = vcmp.eq.f32.partialorder %v1318_v55, 8.507059e+37  ;;  %v1321_v32 = vor.u32 1.1754944e-38, %v1320_v51  ;;  %2607 = vmatpush.msrb.mxu0 %v4427_v47  ;;  %v1752_v51 = vpop.f32.mrf.mxu3 }
  0xf1   : > { %vm1497_vm0 = vweird.f32 %v6541_v37  ;;  %vm6612_vm2 = vcmp.eq.f32.partialorder %v1501_v59, 8.507059e+37  ;;  %v1485_v61 = vsel %vm6585_vm5, %v4822_v1, %v1481_v5  ;;  %v1493_v63 = vmul.f32 %v4828_v24, %v6541_v37  ;;  %vm7923_vm5 = vmmov %vm7912_vm11  ;;  %v6669_v60 = vpop.f32.mrf.mxu1 }
  0xf2   : > { %v1958_v52 = vrot.slane %v1365_v14, 1  ;;  %v1313_v34 = vadd.f32 %v4824_v42, %v1312_v18  ;;  %v1490_v44 = vsel %vm6589_vm4, %v1489_v20, %v1485_v61  ;;  %vm1498_vm14 = vweird.f32 %v4828_v24  ;;  %vm7926_vm11 = vmmov %vm7923_vm5 }
  0xf3   : > { %v4830_v3 = vpop.eup %4829  ;;  %v1504_v10 = vor.u32 1.1754944e-38, %v1503_v11  ;;  %vm1344_vm9 = vweird.f32 %v6546_v31  ;;  %v1527_v23 = vmul.f32 %v6405_v46, %v1490_v44  ;;  %v1494_v38 = vsub.f32 1.0, %v1493_v63  ;;  %vm6641_vm13 = vmor %vm1497_vm0, %vm1498_vm14 }
  0xf4   : > { %v1959_v57 = vsel %vm1692_vm1, %v1957_v58, %v1958_v52  ;;  %v1317_v6 = vsel %vm6603_vm6, %v4824_v42, %v1313_v34  ;;  %v1340_v19 = vmul.f32 %v4830_v3, %v6546_v31  ;;  %v1348_v54 = vand.u32 2147483647, %v6546_v31  ;;  %vm7930_vm14 = vmmov %vm7923_vm5 }
  0xf5   : > { %4372 = vmatmul.msk.f32.gmra.mxu2 %vm7919_vm15, %v1959_v57  ;;  %v1322_v1 = vsel %vm6607_vm10, %v1321_v32, %v1317_v6  ;;  %v1350_v12 = vand.u32 2147483648, %v6546_v31  ;;  %v4832_v8 = vpop.eup %4831  ;;  %v1495_v58 = vmul.f32 %v4828_v24, %v1494_v38  ;;  %vm827_vm7 = vweird.f32 %v6563_v49  ;;  %vm7927_vm10 = vmmov %vm7923_vm5 }
  0xf6   : > { %4363 = vmatmul.msk.f32.gmra.mxu1 %vm7920_vm12, %v1527_v23  ;;  %v1367_v46 = vmul.f32 %v6408_v2, %v1322_v1  ;;  %v831_v45 = vand.u32 2147483647, %v6563_v49  ;;  %v1341_v27 = vsub.f32 1.0, %v1340_v19  ;;  %vm1345_vm8 = vweird.f32 %v4830_v3 }
  0xf7   : > { %v823_v42 = vmul.f32 %v4832_v8, %v6563_v49  ;;  %v6646_v50 = vadd.f32 1.0, %v4826_v35  ;;  %v1496_v2 = vadd.f32 %v4828_v24, %v1495_v58  ;;  %v833_v48 = vand.u32 2147483648, %v6563_v49  ;;  %vm6663_vm4 = vmor %vm1344_vm9, %vm1345_vm8  ;;  %v7945_v58 = vld [vmem:[#allocation8_spill] sm:$0xff] }
  0xf8   : > { %v1961_v40 = vrot.slane %v1367_v46, 1  ;;  %v1342_v25 = vmul.f32 %v4830_v3, %v1341_v27  ;;  %vm828_vm3 = vweird.f32 %v4832_v8  ;;  %v4979_v36 = vmov 0.0  }
  0xf9   : > { %v824_v37 = vsub.f32 1.0, %v823_v42  ;;  %4833 = vrcp.f32 %v6646_v50  ;;  %2358 = vst.msk [vmem:[#allocation2] sm:$0xff] %vm7923_vm5, %v4979_v36  ;;  %v1500_v55 = vsel %vm6641_vm13, %v4828_v24, %v1496_v2  ;;  %v1351_v59 = vor.u32 1.1754944e-38, %v1350_v12  ;;  %vm6679_vm0 = vmor %vm827_vm7, %vm828_vm3  ;;  %v6720_v53 = vpop.f32.mrf.mxu1 }
  0xfa   : > { %v1962_v35 = vsel %vm1692_vm1, %v1960_v15, %v1961_v40  ;;  %2361 = vst.msk [vmem:[#allocation2 + $0x10] sm:$0xff] %vm7926_vm11, %v4979_v36  ;;  %v1505_v7 = vsel %vm6612_vm2, %v1504_v10, %v1500_v55  ;;  %v1343_v15 = vadd.f32 %v4830_v3, %v1342_v25  ;;  %vm1349_vm6 = vcmp.eq.f32.partialorder %v1348_v54, 8.507059e+37  ;;  %vm7931_vm2 = vmmov %vm7923_vm5  ;;  %v7948_v40 = vld [vmem:[#allocation9_spill] sm:$0xff]  ;;  %v7951_v25 = vld [vmem:[#allocation10_spill] sm:$0xff] }
  0xfb   : > { %v825_v13 = vmul.f32 %v4832_v8, %v824_v37  ;;  %2363 = vst.msk [vmem:[#allocation2 + $0x20] sm:$0xff] %vm7927_vm10, %v4979_v36  ;;  %v1528_v31 = vmul.f32 %v6428_v4, %v1505_v7  ;;  %v834_v9 = vor.u32 1.1754944e-38, %v833_v48  ;;  %4835 = vpow2.f32 %v6497_v17  ;;  %vm7932_vm15 = vmmov %vm7931_vm2  ;;  %v7935_v17 = vld [vmem:[#allocation17_spill] sm:$0xff]  ;;  %v1652_v37 = vpop.f32.mrf.mxu2  ;;  %v6763_v7 = vpop.f32.mrf.mxu0 }
  0xfc   : > { %2365 = vst.msk [vmem:[#allocation2 + $0x30] sm:$0xff] %vm7930_vm14, %v4979_v36  ;;  %v1347_v26 = vsel %vm6663_vm4, %v4830_v3, %v1343_v15  ;;  %vm832_vm9 = vcmp.eq.f32.partialorder %v831_v45, 8.507059e+37  ;;  %vm7933_vm12 = vmmov %vm7931_vm2  ;;  %v1963_v62 = vrot.slane %v7935_v17, 1  ;;  %vm2359_vm3 = vcmask 58368   ;;  %v7956_v17 = vld [vmem:[#allocation13_spill] sm:$0xff] }
  0xfd   : > { %4373 = vmatmul.msk.f32.gmra.mxu2 %vm7931_vm2, %v1962_v35  ;;  %v826_v21 = vadd.f32 %v4832_v8, %v825_v13  ;;  %2367 = vst.msk [vmem:[#allocation2 + $0x40] sm:$0xff] %vm7932_vm15, %v4979_v36  ;;  %v1352_v4 = vsel %vm1349_vm6, %v1351_v59, %v1347_v26  ;;  %vm7934_vm7 = vmmov %vm7931_vm2  ;;  %vm1512_vm4 = vweird.f32 %v6646_v50  ;;  %v1516_v16 = vand.u32 2147483647, %v6646_v50  ;;  %v7953_v35 = vld [vmem:[#allocation11_spill] sm:$0xff]  ;;  %v1755_v26 = vpop.f32.mrf.mxu3 }
  0xfe   : > { %4364 = vmatmul.msk.f32.gmra.mxu1 %vm7933_vm12, %v1528_v31  ;;  %2369 = vst.msk [vmem:[#allocation2 + $0x50] sm:$0xff] %vm7934_vm7, %v4979_v36  ;;  %v1369_v43 = vmul.f32 %v6442_v29, %v1352_v4  ;;  %vm7936_vm13 = vmmov %vm7931_vm2  ;;  %v1518_v29 = vand.u32 2147483648, %v6646_v50  ;;  %v7954_v31 = vld [vmem:[#allocation12_spill] sm:$0xff] }
  0xff   : > { %v4834_v49 = vpop.eup %4833  ;;  %v830_v20 = vsel %vm6679_vm0, %v4832_v8, %v826_v21  ;;  %2371 = vst.msk [vmem:[#allocation2 + $0x60] sm:$0xff] %vm7936_vm13, %v4979_v36  ;;  %vm7937_vm8 = vmmov %vm7931_vm2  ;;  %v473_v8 = vld [vmem:[%s5115_s19 + $0x88] sm:$0x1] }
 0x100   : > { %v835_v11 = vsel %vm832_vm9, %v834_v9, %v830_v20  ;;  %v1508_v30 = vmul.f32 %v4834_v49, %v6646_v50  ;;  %2373 = vst.msk [vmem:[#allocation2 + $0x70] sm:$0xff] %vm7937_vm8, %v4979_v36  ;;  %v1964_v14 = vrot.slane %v1369_v43, 1  ;;  %vm7938_vm5 = vmmov %vm7931_vm2  ;;  %vm1513_vm11 = vweird.f32 %v4834_v49  ;;  %v2390_v44 = vld [vmem:[#allocation2] sm:$0xff] }
 0x101   : > { %v6704_v5 = vmul.f32 %v835_v11, %v6450_v56  ;;  %2375 = vst.msk [vmem:[#allocation2 + $0x80] sm:$0xff] %vm7938_vm5, %v4979_v36  ;;  %v4836_v18 = vpop.eup %4835  ;;  %vm7939_vm6 = vmmov %vm7931_vm2  ;;  %v1519_v52 = vor.u32 1.1754944e-38, %v1518_v29  ;;  %v6743_v1 = vpop.f32.mrf.mxu1  ;;  %v4288_v45 = vmul.f32 -1.442695, %v473_v8 }
 0x102   : > { %v1509_v24 = vsub.f32 1.0, %v1508_v30  ;;  %2377 = vst.msk [vmem:[#allocation2 + $0x90] sm:$0xff] %vm7939_vm6, %v4979_v36  ;;  %v1965_v39 = vsel %vm1692_vm1, %v1963_v62, %v1964_v14  ;;  %vm7940_vm10 = vmmov %vm7931_vm2  ;;  %v905_v56 = vadd.f32 1.0, %v4836_v18  ;;  %v7958_v18 = vld [vmem:[#allocation16_spill] sm:$0xff] }
 0x103   : > { %4383 = vmatmul.msk.f32.gmra.mxu3 %vm7940_vm10, %v6704_v5  ;;  %2360 = vst.msk [vmem:[#allocation2 + $0x8] sm:$0x3] %vm2359_vm3, %v4979_v36  ;;  %vm7941_vm0 = vmmov %vm7931_vm2  ;;  %vm1517_vm2 = vcmp.eq.f32.partialorder %v1516_v16, 8.507059e+37  ;;  %v1655_v15 = vpop.f32.mrf.mxu2  ;;  %v1827_v62 = vpop.f32.mrf.mxu0 }
 0x104   : > { %v1510_v32 = vmul.f32 %v4834_v49, %v1509_v24  ;;  %2362 = vst.msk [vmem:[#allocation2 + $0x18] sm:$0x3] %vm2359_vm3, %v4979_v36  ;;  %vm1514_vm14 = vmor %vm1512_vm4, %vm1513_vm11  ;;  %4837 = vrcp.f32 %v905_v56  ;;  %vm1031_vm7 = vweird.f32 %v905_v56  ;;  %v1035_v38 = vand.u32 2147483647, %v905_v56 }
 0x105   : > { %4374 = vmatmul.msk.f32.gmra.mxu2 %vm7941_vm0, %v1965_v39  ;;  %2364 = vst.msk [vmem:[#allocation2 + $0x28] sm:$0x3] %vm2359_vm3, %v4979_v36  ;;  %vm7942_vm9 = vmmov %vm7941_vm0  ;;  %4839 = vpow2.f32 %v4288_v45  ;;  %v1758_v14 = vpop.f32.mrf.mxu3  ;;  %v2142_v24 = vrot.slane %v6704_v5, 1 }
 0x106   : > { %v1511_v61 = vadd.f32 %v4834_v49, %v1510_v32  ;;  %2366 = vst.msk [vmem:[#allocation2 + $0x38] sm:$0x3] %vm2359_vm3, %v4979_v36  ;;  %vm7943_vm15 = vmmov %vm7941_vm0  ;;  %vm1036_vm5 = vcmp.eq.f32.partialorder %v1035_v38, 8.507059e+37 }
 0x107   : > { %2368 = vst.msk [vmem:[#allocation2 + $0x48] sm:$0x3] %vm2359_vm3, %v4979_v36  ;;  %vm7944_vm12 = vmmov %vm7941_vm0 }
 0x108   : > { %v1515_v34 = vsel %vm1514_vm14, %v4834_v49, %v1511_v61  ;;  %2370 = vst.msk [vmem:[#allocation2 + $0x58] sm:$0x3] %vm2359_vm3, %v4979_v36  ;;  %vm7946_vm4 = vmmov %vm7941_vm0 }
 0x109   : > { %v1520_v63 = vsel %vm1517_vm2, %v1519_v52, %v1515_v34  ;;  %2372 = vst.msk [vmem:[#allocation2 + $0x68] sm:$0x3] %vm2359_vm3, %v4979_v36  ;;  %v6750_v42 = vpop.f32.mrf.mxu1  ;;  %vm7949_vm11 = vmmov %vm7941_vm0 }
 0x10a   : > { %v1529_v3 = vmul.f32 %v6453_v28, %v1520_v63  ;;  %v2475_v10 = vld [vmem:[#allocation2 + $0x1] sm:$0xff]  ;;  %2374 = vst.msk [vmem:[#allocation2 + $0x78] sm:$0x3] %vm2359_vm3, %v4979_v36  ;;  %v4838_v57 = vpop.eup %4837  ;;  %v1037_v28 = vand.u32 2147483648, %v905_v56  ;;  %vm7950_vm6 = vmmov %vm7941_vm0 }
 0x10b   : > { %4419 = vmatmul.msk.f32.vlgmr.msra.gmra.mxu3 %vm7942_vm9, %v2475_v10  ;;  %2376 = vst.msk [vmem:[#allocation2 + $0x88] sm:$0x3] %vm2359_vm3, %v4979_v36  ;;  %v1027_v23 = vmul.f32 %v4838_v57, %v905_v56  ;;  %vm1032_vm13 = vweird.f32 %v4838_v57  ;;  %v4840_v50 = vpop.eup %4839  ;;  %v2558_v2 = vld [vmem:[#allocation2 + $0x2] sm:$0xff]  ;;  %vm7952_vm10 = vmmov %vm7941_vm0  ;;  %v1658_v20 = vpop.f32.mrf.mxu2 }
 0x10c   : > { %4365 = vmatmul.msk.f32.gmra.mxu1 %vm7943_vm15, %v1529_v3  ;;  %2378 = vst.msk [vmem:[#allocation2 + $0x98] sm:$0x3] %vm2359_vm3, %v4979_v36  ;;  %vm1033_vm8 = vmor %vm1031_vm7, %vm1032_vm13  ;;  %v1038_v54 = vor.u32 1.1754944e-38, %v1037_v28  ;;  %v581_v48 = vadd.f32 1.0, %v4840_v50  ;;  %v1830_v39 = vpop.f32.mrf.mxu0 }
 0x10d   : > { %4410 = vmatmul.msk.f32.vlgmr.msra.gmra.mxu2 %vm7944_vm12, %v2390_v44  ;;  %v1028_v6 = vsub.f32 1.0, %v1027_v23  ;;  %vm7947_vm3 = vmmov %vm7941_vm0  ;;  %v1761_v61 = vpop.f32.mrf.mxu3 }
 0x10e   : > { %4841 = vrcp.f32 %v581_v48  ;;  %vm7955_vm14 = vmmov %vm7941_vm0  ;;  %vm842_vm2 = vweird.f32 %v581_v48  ;;  %v848_v9 = vand.u32 2147483648, %v581_v48  ;;  %v846_v4 = vand.u32 2147483647, %v581_v48 }
 0x10f   : > { %v1029_v19 = vmul.f32 %v4838_v57, %v1028_v6  ;;  %vm7957_vm7 = vmmov %vm7941_vm0 }
 0x110   : > { %v849_v49 = vor.u32 1.1754944e-38, %v848_v9  ;;  %vm847_vm12 = vcmp.eq.f32.partialorder %v846_v4, 8.507059e+37  ;;  %vm7959_vm13 = vmmov %vm7941_vm0 }
 0x111   : > { %v1030_v12 = vadd.f32 %v4838_v57, %v1029_v19  ;;  %v6755_v47 = vpop.f32.mrf.mxu1 }
 0x113   : > { %v1034_v46 = vsel %vm1033_vm8, %v4838_v57, %v1030_v12  ;;  %v1661_v56 = vpop.f32.mrf.mxu2  ;;  %vm7960_vm8 = vmmov %vm7941_vm0 }
 0x114   : > { %4394 = vmatmul.msk.f32.vlgmr.msrb.gmra.mxu1 %vm7946_vm4, %v7945_v58  ;;  %v1039_v41 = vsel %vm1036_vm5, %v1038_v54, %v1034_v46  ;;  %v1833_v34 = vpop.f32.mrf.mxu0  ;;  %v6801_v58 = vld [vmem:[%s7652_s5] ss:$0 sm:$0xff] }
 0x115   : > { %v1049_v27 = vmul.f32 %v6471_v22, %v1039_v41  ;;  %v4842_v22 = vpop.eup %4841  ;;  %v6778_v44 = vpop.f32.mrf.mxu3  ;;  %v1601_v41 = vadd.f32 %v6801_v58, %v6598_v0  ;;  %v1603_v0 = vadd.f32 %v6801_v58, %v6720_v53 }
 0x116   : > { %v838_v36 = vmul.f32 %v4842_v22, %v581_v48  ;;  %vm843_vm9 = vweird.f32 %v4842_v22 }
 0x117   : > { %4392 = vmatmul.msk.f32.gmra.mxu0 %vm7947_vm3, %v1049_v27  ;;  %vm844_vm15 = vmor %vm842_vm2, %vm843_vm9 }
 0x118   : > { %v839_v59 = vsub.f32 1.0, %v838_v36  ;;  %vm7962_vm2 = vmmov %vm7957_vm7 }
 0x119   : > { %v6761_v55 = vpop.f32.mrf.mxu1 }
 0x11a   : > { %v840_v13 = vmul.f32 %v4842_v22, %v839_v59 }
 0x11b   : > { %v1664_v63 = vpop.f32.mrf.mxu2 }
 0x11c   : > { %4395 = vmatmul.msk.f32.gmra.mxu1 %vm7949_vm11, %v7948_v40  ;;  %v841_v21 = vadd.f32 %v4842_v22, %v840_v13  ;;  %v1836_v57 = vpop.f32.mrf.mxu0  ;;  %v1676_v40 = vadd.f32 %v1652_v37, %v1601_v41  ;;  %vm7961_vm11 = vmmov %vm7941_vm0 }
 0x11d   : > { %v6782_v28 = vpop.f32.mrf.mxu3 }
 0x11e   : > { %v845_v43 = vsel %vm844_vm15, %v4842_v22, %v841_v21  ;;  %v1776_v48 = vadd.f32 %v1752_v51, %v1676_v40  ;;  %v1602_v22 = vadd.f32 %v6801_v58, %v6669_v60  ;;  %v1678_v51 = vadd.f32 %v1658_v20, %v1603_v0  ;;  %vm7963_vm15 = vmmov %vm7962_vm2 }
 0x11f   : > { %4428 = vmatmul.msk.f32.vlgmr.msrb.gmra.mxu0 %vm7950_vm6, %v2558_v2  ;;  %v850_v11 = vsel %vm847_vm12, %v849_v49, %v845_v43  ;;  %vm7964_vm12 = vmmov %vm7962_vm2 }
 0x120   : > { %v869_v29 = vmul.f32 %v850_v11, %v473_v8  ;;  %v1677_v59 = vadd.f32 %v1655_v15, %v1602_v22  ;;  %v1778_v60 = vadd.f32 %v1758_v14, %v1678_v51  ;;  %v1604_v15 = vadd.f32 %v6801_v58, %v6743_v1 }
 0x121   : > { %v1605_v14 = vadd.f32 %v6801_v58, %v6750_v42  ;;  %v1606_v42 = vadd.f32 %v6801_v58, %v6755_v47 }
 0x122   : > { %v2143_v16 = vrot.slane %v869_v29, 1  ;;  %v1777_v9 = vadd.f32 %v1755_v26, %v1677_v59 }
 0x123   : > { %v6780_v23 = vpop.f32.mrf.mxu2 }
 0x124   : > { %4396 = vmatmul.msk.f32.gmra.mxu1 %vm7952_vm10, %v7951_v25  ;;  %v2144_v32 = vsel %vm1692_vm1, %v2142_v24, %v2143_v16  ;;  %v6784_v6 = vpop.f32.mrf.mxu0  ;;  %v1852_v37 = vadd.f32 %v1830_v39, %v1777_v9  ;;  %v1853_v16 = vadd.f32 %v1833_v34, %v1778_v60  ;;  %v1607_v60 = vadd.f32 %v6801_v58, %v6761_v55 }
 0x129   : > { %v6767_v33 = vpop.f32.mrf.mxu1 }
 0x12b   : > { %v6786_v38 = vpop.f32.mrf.mxu2 }
 0x12c   : > { %4397 = vmatmul.msk.f32.gmra.mxu1 %vm7941_vm0, %v7953_v35  ;;  %v6792_v12 = vpop.f32.mrf.mxu0  ;;  %v1851_v35 = vadd.f32 %v1827_v62, %v1776_v48 }
 0x12d   : > { %v6788_v19 = vpop.f32.mrf.mxu3 }
 0x133   : > { %v6794_v8 = vpop.f32.mrf.mxu2 }
 0x134   : > { %4398 = vmatmul.msk.f32.gmra.mxu1 %vm7955_vm14, %v7954_v31  ;;  %v6771_v30 = vpop.f32.mrf.mxu1  ;;  %v6807_v27 = vpop.f32.mrf.mxu0 }
 0x138   : > { %v6796_v46 = vpop.f32.mrf.mxu3 }
 0x13c   : > { %4399 = vmatmul.msk.f32.gmra.mxu1 %vm7957_vm7, %v7956_v17  ;;  %v2109_v36 = vpop.f32.mrf.mxu0  ;;  %vm7965_vm7 = vmmov %vm7962_vm2 }
 0x140   : > { %v2055_v2 = vpop.f32.mrf.mxu3 }
 0x144   : > { %4400 = vmatmul.msk.f32.gmra.mxu1 %vm7959_vm13, %v7958_v18  ;;  %v2112_v43 = vpop.f32.mrf.mxu0  ;;  %vm7966_vm13 = vmmov %vm7962_vm2 }
 0x148   : > { %v2058_v21 = vpop.f32.mrf.mxu3 }
 0x149   : > { %v1902_v52 = vpop.f32.mrf.mxu1 }
 0x14a   : > { %v1926_v31 = vadd.f32 %v1902_v52, %v1851_v35 }
 0x14c   : > { %4401 = vmatmul.msk.f32.gmra.mxu1 %vm7960_vm8, %v2144_v32  ;;  %v1679_v32 = vadd.f32 %v1661_v56, %v1604_v15  ;;  %v2115_v39 = vpop.f32.mrf.mxu0 }
 0x150   : > { %v2001_v50 = vpop.f32.mrf.mxu2  ;;  %v2061_v26 = vpop.f32.mrf.mxu3 }
 0x151   : > { %v1905_v3 = vpop.f32.mrf.mxu1  ;;  %v2025_v4 = vadd.f32 %v2001_v50, %v1926_v31  ;;  %v1779_v50 = vadd.f32 %v1761_v61, %v1679_v32 }
 0x152   : > { %v1927_v11 = vadd.f32 %v1905_v3, %v1852_v37 }
 0x153   : > { %v2079_v17 = vadd.f32 %v2055_v2, %v2025_v4  ;;  %v1680_v2 = vadd.f32 %v1664_v63, %v1605_v14  ;;  %v1854_v22 = vadd.f32 %v1836_v57, %v1779_v50 }
 0x154   : > { %v2118_v31 = vpop.f32.mrf.mxu0 }
 0x155   : > { %v2133_v62 = vadd.f32 %v2109_v36, %v2079_v17  ;;  %v1780_v61 = vadd.f32 %v6778_v44, %v1680_v2 }
 0x157   : > { %v1855_v57 = vadd.f32 %v6784_v6, %v1780_v61 }
 0x158   : > { %v2004_v13 = vpop.f32.mrf.mxu2  ;;  %v2064_v56 = vpop.f32.mrf.mxu3 }
 0x159   : > { %v1908_v10 = vpop.f32.mrf.mxu1  ;;  %v2026_v18 = vadd.f32 %v2004_v13, %v1927_v11 }
 0x15a   : > { %v1928_v41 = vadd.f32 %v1908_v10, %v1853_v16 }
 0x15b   : > { %v2080_v52 = vadd.f32 %v2058_v21, %v2026_v18  ;;  %v1681_v21 = vadd.f32 %v6780_v23, %v1606_v42 }
 0x15d   : > { %v2134_v1 = vadd.f32 %v2112_v43, %v2080_v52  ;;  %v1781_v6 = vadd.f32 %v6782_v28, %v1681_v21 }
 0x15f   : > { %v1856_v18 = vadd.f32 %v6792_v12, %v1781_v6 }
 0x160   : > { %v2007_v29 = vpop.f32.mrf.mxu2  ;;  %v2067_v11 = vpop.f32.mrf.mxu3 }
 0x161   : > { %v2027_v40 = vadd.f32 %v2007_v29, %v1928_v41 }
 0x163   : > { %v1911_v5 = vpop.f32.mrf.mxu1  ;;  %v2081_v35 = vadd.f32 %v2061_v26, %v2027_v40  ;;  %v1682_v26 = vadd.f32 %v6786_v38, %v1607_v60 }
 0x164   : > { %v1929_v10 = vadd.f32 %v1911_v5, %v1854_v22  ;;  %v4436_v5 = vld [vmem:[%s7653_s6 + $0x18] sm:$0xff]  ;;  %v1608_v22 = vadd.f32 %v6801_v58, %v6767_v33 }
 0x165   : > { %v2135_v63 = vadd.f32 %v2115_v39, %v2081_v35  ;;  %2690 = vmatpush.msra.mxu1 %v4436_v5  ;;  %v1782_v38 = vadd.f32 %v6788_v19, %v1682_v26 }
 0x166   : > { %v1683_v61 = vadd.f32 %v6794_v8, %v1608_v22 }
 0x168   : > { %v2010_v3 = vpop.f32.mrf.mxu2 }
 0x169   : > { %v2028_v9 = vadd.f32 %v2010_v3, %v1929_v10 }
 0x16b   : > { %v6790_v54 = vpop.f32.mrf.mxu1  ;;  %v2082_v51 = vadd.f32 %v2064_v56, %v2028_v9 }
 0x16c   : > { %v1930_v37 = vadd.f32 %v6790_v54, %v1855_v57 }
 0x170   : > { %v2013_v0 = vpop.f32.mrf.mxu2 }
 0x171   : > { %v2029_v15 = vadd.f32 %v2013_v0, %v1930_v37 }
 0x173   : > { %v6803_v45 = vpop.f32.mrf.mxu1 }
 0x174   : > { %v1931_v50 = vadd.f32 %v6803_v45, %v1856_v18  ;;  %v2070_v45 = vpop.f32.mrf.mxu3 }
 0x178   : > { %v2016_v39 = vpop.f32.mrf.mxu2 }
 0x179   : > { %v2030_v35 = vadd.f32 %v2016_v39, %v1931_v50 }
 0x17b   : > { %v6809_v25 = vpop.f32.mrf.mxu1  ;;  %v2084_v9 = vadd.f32 %v2070_v45, %v2030_v35 }
 0x180   : > { %v2019_v5 = vpop.f32.mrf.mxu2 }
 0x189   : > { %v6815_v49 = vpop.f32.mrf.mxu1 }
 0x191   : > { %v2166_v24 = vpop.f32.mrf.mxu1 }
 0x192   : > { %v6819_v53 = vadd.f32 %v2166_v24, %v2133_v62  ;;  %v2136_v62 = vadd.f32 %v2118_v31, %v2082_v51  ;;  %v2121_v24 = vpop.f32.mrf.mxu0 }
 0x194   : > { %v4402_v20 = vmul.f32 -1.442695, %v6819_v53 }
 0x196   : > { %4843 = vpow2.f32 %v4402_v20  ;;  %v2083_v20 = vadd.f32 %v2067_v11, %v2029_v15 }
 0x199   : > { %v2169_v48 = vpop.f32.mrf.mxu1 }
 0x19a   : > { %v6824_v34 = vadd.f32 %v2169_v48, %v2134_v1 }
 0x19c   : > { %v4844_v36 = vpop.eup %4843  ;;  %v4403_v59 = vmul.f32 -1.442695, %v6824_v34 }
 0x19d   : > { %v2222_v13 = vadd.f32 1.0, %v4844_v36  ;;  %v2137_v36 = vadd.f32 %v2121_v24, %v2083_v20 }
 0x19e   : > { %4845 = vpow2.f32 %v4403_v59  ;;  %v1857_v59 = vadd.f32 %v6807_v27, %v1782_v38 }
 0x19f   : > { %4847 = vrcp.f32 %v2222_v13  ;;  %v2241_v16 = vand.u32 2147483648, %v2222_v13  ;;  %v2239_v52 = vand.u32 2147483647, %v2222_v13  ;;  %vm2235_vm5 = vweird.f32 %v2222_v13 }
 0x1a0   : > { %v1932_v27 = vadd.f32 %v6809_v25, %v1857_v59 }
 0x1a1   : > { %v2172_v4 = vpop.f32.mrf.mxu1  ;;  %v2242_v1 = vor.u32 1.1754944e-38, %v2241_v16  ;;  %vm2240_vm3 = vcmp.eq.f32.partialorder %v2239_v52, 8.507059e+37 }
 0x1a2   : > { %v6835_v44 = vadd.f32 %v2172_v4, %v2135_v63  ;;  %v2124_v63 = vpop.f32.mrf.mxu0  ;;  %v1783_v4 = vadd.f32 %v6796_v46, %v1683_v61  ;;  %v2073_v46 = vpop.f32.mrf.mxu3 }
 0x1a3   : > { %v2138_v6 = vadd.f32 %v2124_v63, %v2084_v9 }
 0x1a4   : > { %v4846_v47 = vpop.eup %4845  ;;  %v4404_v43 = vmul.f32 -1.442695, %v6835_v44 }
 0x1a5   : > { %v4848_v17 = vpop.eup %4847  ;;  %v6840_v23 = vadd.f32 1.0, %v4846_v47 }
 0x1a6   : > { %v2231_v29 = vmul.f32 %v4848_v17, %v2222_v13  ;;  %4849 = vpow2.f32 %v4404_v43  ;;  %vm2236_vm1 = vweird.f32 %v4848_v17  ;;  %v2031_v43 = vadd.f32 %v2019_v5, %v1932_v27 }
 0x1a7   : > { %4851 = vrcp.f32 %v6840_v23  ;;  %vm2237_vm4 = vmor %vm2235_vm5, %vm2236_vm1  ;;  %v2256_v13 = vand.u32 2147483648, %v6840_v23  ;;  %v2254_v33 = vand.u32 2147483647, %v6840_v23  ;;  %vm2250_vm10 = vweird.f32 %v6840_v23 }
 0x1a8   : > { %v2232_v54 = vsub.f32 1.0, %v2231_v29  ;;  %v1858_v29 = vadd.f32 %v6771_v30, %v1783_v4  ;;  %v2085_v30 = vadd.f32 %v2073_v46, %v2031_v43 }
 0x1a9   : > { %v2175_v28 = vpop.f32.mrf.mxu1  ;;  %v2257_v37 = vor.u32 1.1754944e-38, %v2256_v13  ;;  %vm2255_vm14 = vcmp.eq.f32.partialorder %v2254_v33, 8.507059e+37 }
 0x1aa   : > { %v2233_v32 = vmul.f32 %v4848_v17, %v2232_v54  ;;  %v6847_v41 = vadd.f32 %v2175_v28, %v2136_v62  ;;  %v1933_v28 = vadd.f32 %v6815_v49, %v1858_v29  ;;  %v2127_v39 = vpop.f32.mrf.mxu0 }
 0x1ab   : > { %v2139_v49 = vadd.f32 %v2127_v39, %v2085_v30 }
 0x1ac   : > { %v4850_v55 = vpop.eup %4849  ;;  %v2234_v14 = vadd.f32 %v4848_v17, %v2233_v32  ;;  %v4405_v3 = vmul.f32 -1.442695, %v6847_v41 }
 0x1ad   : > { %v4852_v12 = vpop.eup %4851  ;;  %v6852_v40 = vadd.f32 1.0, %v4850_v55 }
 0x1ae   : > { %v2238_v2 = vsel %vm2237_vm4, %v4848_v17, %v2234_v14  ;;  %v2246_v48 = vmul.f32 %v4852_v12, %v6840_v23  ;;  %4853 = vpow2.f32 %v4405_v3  ;;  %vm2251_vm6 = vweird.f32 %v4852_v12  ;;  %vm7967_vm4 = vmmov %vm7962_vm2 }
 0x1af   : > { %v2243_v56 = vsel %vm2240_vm3, %v2242_v1, %v2238_v2  ;;  %4855 = vrcp.f32 %v6852_v40  ;;  %vm2252_vm0 = vmor %vm2250_vm10, %vm2251_vm6  ;;  %v2271_v60 = vand.u32 2147483648, %v6852_v40  ;;  %v2269_v24 = vand.u32 2147483647, %v6852_v40 }
 0x1b0   : > { %v2350_v19 = vmul.f32 %v2243_v56, %v6819_v53  ;;  %v2247_v10 = vsub.f32 1.0, %v2246_v48  ;;  %v4445_v53 = vld [vmem:[%s7653_s6 + $0x20] sm:$0xff]  ;;  %vm2265_vm8 = vweird.f32 %v6852_v40  ;;  %vm7969_vm6 = vmmov %vm7962_vm2 }
 0x1b1   : > { %v2178_v42 = vpop.f32.mrf.mxu1  ;;  %2773 = vmatpush.msrb.mxu2 %v4445_v53  ;;  %v2272_v55 = vor.u32 1.1754944e-38, %v2271_v60  ;;  %vm2270_vm5 = vcmp.eq.f32.partialorder %v2269_v24, 8.507059e+37  ;;  %vm7970_vm10 = vmmov %vm7962_vm2 }
 0x1b2   : > { %2380 = vst.msk [vmem:[#allocation2 + $0x11] sm:$0xff] %vm7961_vm11, %v2350_v19  ;;  %v2248_v31 = vmul.f32 %v4852_v12, %v2247_v10  ;;  %v6864_v58 = vadd.f32 %v2178_v42, %v2137_v36  ;;  %vm7968_vm11 = vmmov %vm7962_vm2 }
 0x1b4   : > { %v4854_v8 = vpop.eup %4853  ;;  %v2249_v57 = vadd.f32 %v4852_v12, %v2248_v31  ;;  %v4406_v21 = vmul.f32 -1.442695, %v6864_v58 }
 0x1b5   : > { %v4856_v0 = vpop.eup %4855  ;;  %v6874_v47 = vadd.f32 1.0, %v4854_v8  ;;  %v2130_v8 = vpop.f32.mrf.mxu0 }
 0x1b6   : > { %v2253_v51 = vsel %vm2252_vm0, %v4852_v12, %v2249_v57  ;;  %v2261_v25 = vmul.f32 %v4856_v0, %v6852_v40  ;;  %4857 = vpow2.f32 %v4406_v21  ;;  %vm2266_vm9 = vweird.f32 %v4856_v0  ;;  %v2022_v12 = vpop.f32.mrf.mxu2  ;;  %vm7971_vm0 = vmmov %vm7962_vm2 }
 0x1b7   : > { %v2258_v17 = vsel %vm2255_vm14, %v2257_v37, %v2253_v51  ;;  %4859 = vrcp.f32 %v6874_v47  ;;  %vm2267_vm1 = vmor %vm2265_vm8, %vm2266_vm9  ;;  %v2032_v1 = vadd.f32 %v2022_v12, %v1933_v28  ;;  %v2286_v48 = vand.u32 2147483648, %v6874_v47 }
 0x1b8   : > { %v2351_v11 = vmul.f32 %v2258_v17, %v6824_v34  ;;  %v2262_v23 = vsub.f32 1.0, %v2261_v25  ;;  %v2284_v19 = vand.u32 2147483647, %v6874_v47  ;;  %vm2280_vm14 = vweird.f32 %v6874_v47  ;;  %vm7975_vm8 = vmmov %vm7971_vm0 }
 0x1b9   : > { %v2181_v15 = vpop.f32.mrf.mxu1  ;;  %v2391_v62 = vld [vmem:[#allocation2 + $0x10] sm:$0xff]  ;;  %v2287_v33 = vor.u32 1.1754944e-38, %v2286_v48 }
 0x1ba   : > { %v6881_v54 = vld [vmem:[#allocation2 + $0x11] sm:$0xff]  ;;  %2381 = vst.msk [vmem:[#allocation2 + $0x21] sm:$0xff] %vm7962_vm2, %v2351_v11  ;;  %v2263_v26 = vmul.f32 %v4856_v0, %v2262_v23  ;;  %v6887_v16 = vadd.f32 %v2181_v15, %v2138_v6  ;;  %4411 = vmatmul.msk.f32.gmra.mxu2 %vm7963_vm15, %v2391_v62  ;;  %4437 = vmatmul.msk.f32.vlgmr.msra.gmra.mxu1 %vm7966_vm13, %v2391_v62  ;;  %vm2285_vm9 = vcmp.eq.f32.partialorder %v2284_v19, 8.507059e+37  ;;  %vm7972_vm15 = vmmov %vm7971_vm0 }
 0x1bb   : > { %v6883_v18 = vld [vmem:[#allocation2 + $0x12] sm:$0xff]  ;;  %4420 = vmatmul.msk.f32.gmra.mxu3 %vm7964_vm12, %v6881_v54  ;;  %vm7974_vm13 = vmmov %vm7971_vm0 }
 0x1bc   : > { %4429 = vmatmul.msk.f32.gmra.mxu0 %vm7965_vm7, %v6883_v18  ;;  %v4858_v34 = vpop.eup %4857  ;;  %v2264_v32 = vadd.f32 %v4856_v0, %v2263_v26  ;;  %v4407_v52 = vmul.f32 -1.442695, %v6887_v16  ;;  %vm7973_vm7 = vmmov %vm7971_vm0  ;;  %v4463_v6 = vld [vmem:[%s7653_s6 + $0x30] sm:$0xff] }
 0x1bd   : > { %v4860_v20 = vpop.eup %4859  ;;  %v6899_v50 = vadd.f32 1.0, %v4858_v34  ;;  %2940 = vmatpush.msra.mxu0 %v4463_v6 }
 0x1be   : > { %v2268_v14 = vsel %vm2267_vm1, %v4856_v0, %v2264_v32  ;;  %v2276_v3 = vmul.f32 %v4860_v20, %v6874_v47  ;;  %4861 = vpow2.f32 %v4407_v52  ;;  %vm2281_vm3 = vweird.f32 %v4860_v20  ;;  %vm7976_vm1 = vmmov %vm7971_vm0 }
 0x1bf   : > { %v2273_v38 = vsel %vm2270_vm5, %v2272_v55, %v2268_v14  ;;  %4863 = vrcp.f32 %v6899_v50  ;;  %vm2282_vm2 = vmor %vm2280_vm14, %vm2281_vm3  ;;  %v2301_v4 = vand.u32 2147483648, %v6899_v50  ;;  %v2299_v43 = vand.u32 2147483647, %v6899_v50 }
 0x1c0   : > { %v2352_v40 = vmul.f32 %v2273_v38, %v6835_v44  ;;  %v2277_v2 = vsub.f32 1.0, %v2276_v3  ;;  %v2076_v44 = vpop.f32.mrf.mxu3  ;;  %vm2295_vm5 = vweird.f32 %v6899_v50  ;;  %vm7979_vm14 = vmmov %vm7971_vm0 }
 0x1c1   : > { %v2184_v22 = vpop.f32.mrf.mxu1  ;;  %v6905_v45 = vld [vmem:[#allocation2 + $0x20] sm:$0xff]  ;;  %v2086_v61 = vadd.f32 %v2076_v44, %v2032_v1  ;;  %v2302_v60 = vor.u32 1.1754944e-38, %v2301_v4  ;;  %vm2300_vm3 = vcmp.eq.f32.partialorder %v2299_v43, 8.507059e+37 }
 0x1c2   : > { %v6907_v56 = vld [vmem:[#allocation2 + $0x21] sm:$0xff]  ;;  %2382 = vst.msk [vmem:[#allocation2 + $0x31] sm:$0xff] %vm7967_vm4, %v2352_v40  ;;  %v2278_v35 = vmul.f32 %v4860_v20, %v2277_v2  ;;  %v6913_v10 = vadd.f32 %v2184_v22, %v2139_v49  ;;  %4412 = vmatmul.msk.f32.gmra.mxu2 %vm7968_vm11, %v6905_v45  ;;  %4438 = vmatmul.msk.f32.gmra.mxu1 %vm7971_vm0, %v6905_v45  ;;  %vm7977_vm11 = vmmov %vm7971_vm0 }
 0x1c3   : > { %v6909_v36 = vld [vmem:[#allocation2 + $0x22] sm:$0xff]  ;;  %4421 = vmatmul.msk.f32.gmra.mxu3 %vm7969_vm6, %v6907_v56  ;;  %v2140_v57 = vadd.f32 %v2130_v8, %v2086_v61 }
 0x1c4   : > { %4430 = vmatmul.msk.f32.gmra.mxu0 %vm7970_vm10, %v6909_v36  ;;  %v4862_v59 = vpop.eup %4861  ;;  %v2279_v13 = vadd.f32 %v4860_v20, %v2278_v35  ;;  %v4408_v42 = vmul.f32 -1.442695, %v6913_v10  ;;  %vm7978_vm10 = vmmov %vm7971_vm0 }
 0x1c5   : > { %v4864_v31 = vpop.eup %4863  ;;  %v6925_v53 = vadd.f32 1.0, %v4862_v59 }
 0x1c6   : > { %v2283_v63 = vsel %vm2282_vm2, %v4860_v20, %v2279_v13  ;;  %v2291_v27 = vmul.f32 %v4864_v31, %v6899_v50  ;;  %4865 = vpow2.f32 %v4408_v42  ;;  %vm2296_vm12 = vweird.f32 %v4864_v31  ;;  %vm7980_vm2 = vmmov %vm7971_vm0  ;;  %v4472_v50 = vld [vmem:[%s7653_s6 + $0x38] sm:$0xff] }
 0x1c7   : > { %v2288_v9 = vsel %vm2285_vm9, %v2287_v33, %v2283_v63  ;;  %4867 = vrcp.f32 %v6925_v53  ;;  %vm2297_vm4 = vmor %vm2295_vm5, %vm2296_vm12  ;;  %v2316_v28 = vand.u32 2147483648, %v6925_v53  ;;  %v2314_v55 = vand.u32 2147483647, %v6925_v53  ;;  %3023 = vmatpush.msrb.mxu1 %v4472_v50 }
 0x1c8   : > { %v2353_v21 = vmul.f32 %v2288_v9, %v6847_v41  ;;  %v2292_v0 = vsub.f32 1.0, %v2291_v27  ;;  %v4454_v41 = vld [vmem:[%s7653_s6 + $0x28] sm:$0xff]  ;;  %vm2310_vm9 = vweird.f32 %v6925_v53  ;;  %vm7984_vm5 = vmmov %vm7971_vm0 }
 0x1c9   : > { %v2187_v5 = vpop.f32.mrf.mxu1  ;;  %v6931_v37 = vld [vmem:[#allocation2 + $0x30] sm:$0xff]  ;;  %2856 = vmatpush.msrb.mxu3 %v4454_v41  ;;  %v2317_v38 = vor.u32 1.1754944e-38, %v2316_v28  ;;  %vm2315_vm12 = vcmp.eq.f32.partialorder %v2314_v55, 8.507059e+37 }
 0x1ca   : > { %v6933_v47 = vld [vmem:[#allocation2 + $0x31] sm:$0xff]  ;;  %2383 = vst.msk [vmem:[#allocation2 + $0x41] sm:$0xff] %vm7972_vm15, %v2353_v21  ;;  %v2293_v25 = vmul.f32 %v4864_v31, %v2292_v0  ;;  %v6939_v17 = vadd.f32 %v2187_v5, %v2140_v57  ;;  %4413 = vmatmul.msk.f32.gmra.mxu2 %vm7973_vm7, %v6931_v37  ;;  %4439 = vmatmul.msk.f32.gmra.mxu1 %vm7976_vm1, %v6931_v37  ;;  %vm7981_vm7 = vmmov %vm7971_vm0 }
 0x1cb   : > { %v6935_v51 = vld [vmem:[#allocation2 + $0x32] sm:$0xff]  ;;  %4422 = vmatmul.msk.f32.gmra.mxu3 %vm7974_vm13, %v6933_v47  ;;  %vm7983_vm1 = vmmov %vm7971_vm0 }
 0x1cc   : > { %4431 = vmatmul.msk.f32.gmra.mxu0 %vm7975_vm8, %v6935_v51  ;;  %v4866_v11 = vpop.eup %4865  ;;  %v2294_v23 = vadd.f32 %v4864_v31, %v2293_v25  ;;  %v4409_v46 = vmul.f32 -1.442695, %v6939_v17  ;;  %vm7982_vm8 = vmmov %vm7971_vm0 }
 0x1cd   : > { %v4868_v29 = vpop.eup %4867  ;;  %v2228_v15 = vadd.f32 1.0, %v4866_v11 }
 0x1ce   : > { %v2298_v62 = vsel %vm2297_vm4, %v4864_v31, %v2294_v23  ;;  %v2306_v26 = vmul.f32 %v4868_v29, %v6925_v53  ;;  %4869 = vpow2.f32 %v4409_v46  ;;  %vm2311_vm6 = vweird.f32 %v4868_v29  ;;  %vm7985_vm4 = vmmov %vm7971_vm0 }
 0x1cf   : > { %v2303_v24 = vsel %vm2300_vm3, %v2302_v60, %v2298_v62  ;;  %4871 = vrcp.f32 %v2228_v15  ;;  %vm2312_vm15 = vmor %vm2310_vm9, %vm2311_vm6  ;;  %v2331_v35 = vand.u32 2147483648, %v2228_v15  ;;  %v2329_v13 = vand.u32 2147483647, %v2228_v15 }
 0x1d0   : > { %v2354_v30 = vmul.f32 %v2303_v24, %v6864_v58  ;;  %v2307_v34 = vsub.f32 1.0, %v2306_v26  ;;  %v4481_v58 = vld [vmem:[%s7653_s6 + $0x40] sm:$0xff]  ;;  %vm2325_vm3 = vweird.f32 %v2228_v15  ;;  %vm7989_vm9 = vmmov %vm7983_vm1 }
 0x1d1   : > { %v6961_v32 = vld [vmem:[#allocation2 + $0x40] sm:$0xff]  ;;  %3106 = vmatpush.msra.mxu2 %v4481_v58  ;;  %v2332_v31 = vor.u32 1.1754944e-38, %v2331_v35  ;;  %vm2330_vm6 = vcmp.eq.f32.partialorder %v2329_v13, 8.507059e+37 }
 0x1d2   : > { %v6963_v52 = vld [vmem:[#allocation2 + $0x41] sm:$0xff]  ;;  %2384 = vst.msk [vmem:[#allocation2 + $0x51] sm:$0xff] %vm7977_vm11, %v2354_v30  ;;  %v2308_v39 = vmul.f32 %v4868_v29, %v2307_v34  ;;  %4414 = vmatmul.msk.f32.gmra.mxu2 %vm7978_vm10, %v6961_v32  ;;  %4440 = vmatmul.msk.f32.gmra.mxu1 %vm7980_vm2, %v6961_v32  ;;  %vm7986_vm10 = vmmov %vm7971_vm0 }
 0x1d3   : > { %v6965_v20 = vld [vmem:[#allocation2 + $0x42] sm:$0xff]  ;;  %4423 = vmatmul.msk.f32.gmra.mxu3 %vm7971_vm0, %v6963_v52  ;;  %vm7988_vm2 = vmmov %vm7983_vm1 }
 0x1d4   : > { %4432 = vmatmul.msk.f32.gmra.mxu0 %vm7979_vm14, %v6965_v20  ;;  %v4870_v14 = vpop.eup %4869  ;;  %v2309_v3 = vadd.f32 %v4868_v29, %v2308_v39  ;;  %vm7987_vm14 = vmmov %vm7983_vm1 }
 0x1d5   : > { %v4872_v12 = vpop.eup %4871  ;;  %v2229_v49 = vadd.f32 1.0, %v4870_v14  ;;  %v3308_v14 = vld [vmem:[%s7657_s10] sm:$0xff] }
 0x1d6   : > { %v2313_v1 = vsel %vm2312_vm15, %v4868_v29, %v2309_v3  ;;  %v2321_v40 = vmul.f32 %v4872_v12, %v2228_v15  ;;  %vm2326_vm13 = vweird.f32 %v4872_v12  ;;  %vm7990_vm15 = vmmov %vm7983_vm1  ;;  %v7091_v15 = vpop.f32.mrf.mxu0  ;;  %3352 = vmatpush.msra.mxu3 %v3308_v14  ;;  %v4907_v3 = vld [vmem:[%s5115_s19 + $0x1b0] sm:$0xff] }
 0x1d7   : > { %v2318_v2 = vsel %vm2315_vm12, %v2317_v38, %v2313_v1  ;;  %4873 = vrcp.f32 %v2229_v49  ;;  %vm2327_vm11 = vmor %vm2325_vm3, %vm2326_vm13  ;;  %v2346_v9 = vand.u32 2147483648, %v2229_v49  ;;  %v2344_v5 = vand.u32 2147483647, %v2229_v49  ;;  %v3398_v1 = vld [vmem:[%s7655_s8] sm:$0xff] }
 0x1d8   : > { %v2355_v48 = vmul.f32 %v2318_v2, %v6887_v16  ;;  %v2322_v22 = vsub.f32 1.0, %v2321_v40  ;;  %vm2340_vm12 = vweird.f32 %v2229_v49  ;;  %vm7994_vm3 = vmmov %vm7983_vm1  ;;  %3438 = vmatpush.msrb.mxu0 %v3398_v1  ;;  %v4908_v2 = vld [vmem:[%s5115_s19 + $0x1c0] sm:$0xff] }
 0x1d9   : > { %v6985_v19 = vld [vmem:[#allocation2 + $0x50] sm:$0xff]  ;;  %v2347_v25 = vor.u32 1.1754944e-38, %v2346_v9  ;;  %vm2345_vm13 = vcmp.eq.f32.partialorder %v2344_v5, 8.507059e+37  ;;  %v4912_v5 = vld [vmem:[%s5115_s19 + $0x200] sm:$0xff] }
 0x1da   : > { %v6987_v44 = vld [vmem:[#allocation2 + $0x51] sm:$0xff]  ;;  %2385 = vst.msk [vmem:[#allocation2 + $0x61] sm:$0xff] %vm7981_vm7, %v2355_v48  ;;  %v2323_v61 = vmul.f32 %v4872_v12, %v2322_v22  ;;  %4415 = vmatmul.msk.f32.gmra.mxu2 %vm7982_vm8, %v6985_v19  ;;  %4441 = vmatmul.msk.f32.gmra.mxu1 %vm7985_vm4, %v6985_v19  ;;  %vm7991_vm8 = vmmov %vm7983_vm1 }
 0x1db   : > { %v6989_v59 = vld [vmem:[#allocation2 + $0x52] sm:$0xff]  ;;  %4424 = vmatmul.msk.f32.gmra.mxu3 %vm7983_vm1, %v6987_v44  ;;  %vm7993_vm4 = vmmov %vm7983_vm1 }
 0x1dc   : > { %4433 = vmatmul.msk.f32.gmra.mxu0 %vm7984_vm5, %v6989_v59  ;;  %v2324_v16 = vadd.f32 %v4872_v12, %v2323_v61  ;;  %vm7992_vm5 = vmmov %vm7983_vm1 }
 0x1dd   : > { %v4874_v42 = vpop.eup %4873 }
 0x1de   : > { %v2328_v33 = vsel %vm2327_vm11, %v4872_v12, %v2324_v16  ;;  %v2336_v53 = vmul.f32 %v4874_v42, %v2229_v49  ;;  %vm2341_vm0 = vweird.f32 %v4874_v42  ;;  %vm7995_vm11 = vmmov %vm7983_vm1  ;;  %v4910_v16 = vld [vmem:[%s5115_s19 + $0x1e0] sm:$0xff] }
 0x1df   : > { %v2333_v63 = vsel %vm2330_vm6, %v2332_v31, %v2328_v33  ;;  %vm2342_vm7 = vmor %vm2340_vm12, %vm2341_vm0  ;;  %v431_v33 = vld [vmem:[%s7650_s3] sm:$0x1] }
 0x1e0   : > { %v2356_v27 = vmul.f32 %v2333_v63, %v6913_v10  ;;  %v2337_v8 = vsub.f32 1.0, %v2336_v53  ;;  %vm7996_vm6 = vmmov %vm7983_vm1  ;;  %v454_v63 = vadd.f32 %v6763_v7, %v431_v33 }
 0x1e1   : > { %v2396_v57 = vld [vmem:[#allocation2 + $0x60] sm:$0xff]  ;;  %vm7998_vm0 = vmmov %vm7983_vm1 }
 0x1e2   : > { %v2481_v21 = vld [vmem:[#allocation2 + $0x61] sm:$0xff]  ;;  %2386 = vst.msk [vmem:[#allocation2 + $0x71] sm:$0xff] %vm7986_vm10, %v2356_v27  ;;  %v2338_v4 = vmul.f32 %v4874_v42, %v2337_v8  ;;  %4416 = vmatmul.msk.f32.gmra.mxu2 %vm7987_vm14, %v2396_v57  ;;  %4442 = vmatmul.msk.f32.gmra.mxu1 %vm7990_vm15, %v2396_v57  ;;  %vm7997_vm10 = vmmov %vm7983_vm1  ;;  %v4911_v27 = vld [vmem:[%s5115_s19 + $0x1f0] sm:$0xff] }
 0x1e3   : > { %v7001_v0 = vld [vmem:[#allocation2 + $0x62] sm:$0xff]  ;;  %4425 = vmatmul.msk.f32.gmra.mxu3 %vm7988_vm2, %v2481_v21  ;;  %vm7999_vm14 = vmmov %vm7998_vm0  ;;  %v2388_v8 = vld [vmem:[%s7654_s7] sm:$0x1] }
 0x1e4   : > { %4434 = vmatmul.msk.f32.gmra.mxu0 %vm7989_vm9, %v7001_v0  ;;  %v2339_v10 = vadd.f32 %v4874_v42, %v2338_v4  ;;  %vm8000_vm2 = vmmov %vm7998_vm0 }
 0x1e5   : > { %vm8001_vm9 = vmmov %vm7998_vm0 }
 0x1e6   : > { %v2343_v43 = vsel %vm2342_vm7, %v4874_v42, %v2339_v10  ;;  %vm8002_vm15 = vmmov %vm7998_vm0 }
 0x1e7   : > { %v2348_v41 = vsel %vm2345_vm13, %v2347_v25, %v2343_v43  ;;  %vm8003_vm12 = vmmov %vm7998_vm0 }
 0x1e8   : > { %v2357_v6 = vmul.f32 %v2348_v41, %v6939_v17  ;;  %vm8004_vm7 = vmmov %vm7998_vm0 }
 0x1e9   : > { %v2397_v11 = vld [vmem:[#allocation2 + $0x70] sm:$0xff]  ;;  %vm8005_vm13 = vmmov %vm7998_vm0 }
 0x1ea   : > { %v2482_v23 = vld [vmem:[#allocation2 + $0x71] sm:$0xff]  ;;  %2387 = vst.msk [vmem:[#allocation2 + $0x81] sm:$0xff] %vm7991_vm8, %v2357_v6  ;;  %4417 = vmatmul.msk.f32.gmra.mxu2 %vm7983_vm1, %v2397_v11  ;;  %4443 = vmatmul.msk.f32.gmra.mxu1 %vm7994_vm3, %v2397_v11  ;;  %vm8006_vm8 = vmmov %vm7998_vm0 }
 0x1eb   : > { %v2565_v46 = vld [vmem:[#allocation2 + $0x72] sm:$0xff]  ;;  %4426 = vmatmul.msk.f32.gmra.mxu3 %vm7992_vm5, %v2482_v23  ;;  %vm8007_vm1 = vmmov %vm7998_vm0 }
 0x1ec   : > { %4435 = vmatmul.msk.f32.gmra.mxu0 %vm7993_vm4, %v2565_v46  ;;  %vm8008_vm5 = vmmov %vm7998_vm0 }
 0x1ed   : > { %vm8009_vm4 = vmmov %vm7998_vm0 }
 0x1ee   : > { %vm8010_vm3 = vmmov %vm7998_vm0 }
 0x1f1   : > { %v2648_v29 = vld [vmem:[#allocation2 + $0x80] sm:$0xff] }
 0x1f2   : > { %4446 = vmatmul.msk.f32.vlgmr.msrb.gmra.mxu2 %vm7995_vm11, %v6881_v54  ;;  %4444 = vmatmul.msk.f32.gmra.mxu1 %vm7997_vm10, %v2648_v29  ;;  %vm8011_vm11 = vmmov %vm7998_vm0  ;;  %v7062_v54 = vld [vmem:[#allocation2 + $0x90] sm:$0xff] }
 0x1f3   : > { %4455 = vmatmul.msk.f32.vlgmr.msrb.gmra.mxu3 %vm7996_vm6, %v6883_v18  ;;  %vm8012_vm6 = vmmov %vm7998_vm0  ;;  %v2731_v18 = vld [vmem:[#allocation2 + $0x81] sm:$0xff] }
 0x1f4   : > { %4464 = vmatmul.msk.f32.vlgmr.msra.gmra.mxu0 %vm7998_vm0, %v6905_v45  ;;  %vm8013_vm10 = vmmov %vm7998_vm0  ;;  %v2814_v45 = vld [vmem:[#allocation2 + $0x82] sm:$0xff] }
 0x1fa   : > { %4447 = vmatmul.msk.f32.gmra.mxu2 %vm7999_vm14, %v6907_v56  ;;  %4473 = vmatmul.msk.f32.vlgmr.msrb.gmra.mxu1 %vm8002_vm15, %v6907_v56  ;;  %vm8014_vm14 = vmmov %vm7998_vm0  ;;  %v7069_v56 = vld [vmem:[#allocation2 + $0x91] sm:$0xff] }
 0x1fb   : > { %4456 = vmatmul.msk.f32.gmra.mxu3 %vm8000_vm2, %v6909_v36  ;;  %vm8015_vm2 = vmmov %vm7998_vm0 }
 0x1fc   : > { %4465 = vmatmul.msk.f32.gmra.mxu0 %vm8001_vm9, %v6931_v37  ;;  %vm8016_vm9 = vmmov %vm7998_vm0  ;;  %v7075_v37 = vpop.f32.mrf.mxu2 }
 0x1fd   : > { %vm8017_vm15 = vmmov %vm7998_vm0 }
 0x202   : > { %4448 = vmatmul.msk.f32.gmra.mxu2 %vm8003_vm12, %v6933_v47  ;;  %4474 = vmatmul.msk.f32.gmra.mxu1 %vm8006_vm8, %v6933_v47  ;;  %vm8018_vm12 = vmmov %vm7998_vm0 }
 0x203   : > { %4457 = vmatmul.msk.f32.gmra.mxu3 %vm8004_vm7, %v6935_v51  ;;  %vm8019_vm7 = vmmov %vm7998_vm0 }
 0x204   : > { %4466 = vmatmul.msk.f32.gmra.mxu0 %vm8005_vm13, %v6961_v32  ;;  %vm8020_vm13 = vmmov %vm7998_vm0 }
 0x205   : > { %vm8021_vm8 = vmmov %vm7998_vm0 }
 0x20a   : > { %4449 = vmatmul.msk.f32.gmra.mxu2 %vm8007_vm1, %v6963_v52  ;;  %4475 = vmatmul.msk.f32.gmra.mxu1 %vm8010_vm3, %v6963_v52  ;;  %vm8022_vm1 = vmmov %vm7998_vm0 }
 0x20b   : > { %4458 = vmatmul.msk.f32.gmra.mxu3 %vm8008_vm5, %v6965_v20  ;;  %vm8023_vm5 = vmmov %vm7998_vm0 }
 0x20c   : > { %4467 = vmatmul.msk.f32.gmra.mxu0 %vm8009_vm4, %v6985_v19  ;;  %vm8024_vm4 = vmmov %vm7998_vm0  ;;  %v4909_v19 = vld [vmem:[%s5115_s19 + $0x1d0] sm:$0xff] }
 0x20d   : > { %vm8025_vm3 = vmmov %vm7998_vm0 }
 0x212   : > { %4450 = vmatmul.msk.f32.gmra.mxu2 %vm8011_vm11, %v6987_v44  ;;  %4476 = vmatmul.msk.f32.gmra.mxu1 %vm7998_vm0, %v6987_v44  ;;  %vm8026_vm11 = vmmov %vm7998_vm0 }
 0x213   : > { %4459 = vmatmul.msk.f32.gmra.mxu3 %vm8012_vm6, %v6989_v59  ;;  %vm8027_vm6 = vmmov %vm7998_vm0 }
 0x214   : > { %4468 = vmatmul.msk.f32.gmra.mxu0 %vm8013_vm10, %v2396_v57  ;;  %vm8028_vm10 = vmmov %vm7998_vm0 }
 0x21a   : > { %4451 = vmatmul.msk.f32.gmra.mxu2 %vm8014_vm14, %v2481_v21  ;;  %4477 = vmatmul.msk.f32.gmra.mxu1 %vm8017_vm15, %v2481_v21  ;;  %vm8029_vm14 = vmmov %vm7998_vm0  ;;  %v2389_v21 = vadd.f32 %v2388_v8, %v454_v63 }
 0x21b   : > { %4460 = vmatmul.msk.f32.gmra.mxu3 %vm8015_vm2, %v7001_v0  ;;  %vm8030_vm2 = vmmov %vm7998_vm0 }
 0x21c   : > { %4469 = vmatmul.msk.f32.gmra.mxu0 %vm8016_vm9, %v2397_v11  ;;  %vm8031_vm9 = vmmov %vm7998_vm0  ;;  %v7176_v4 = vperm.slane %v2389_v21, 0 }
 0x21d   : > { %vm8032_vm15 = vmmov %vm7998_vm0 }
 0x21e   : > { %v2467_v10 = vadd.f32 %v7176_v4, %v7075_v37 }
 0x222   : > { %4452 = vmatmul.msk.f32.gmra.mxu2 %vm8018_vm12, %v2482_v23  ;;  %4478 = vmatmul.msk.f32.gmra.mxu1 %vm8021_vm8, %v2482_v23  ;;  %vm8033_vm12 = vmmov %vm7998_vm0  ;;  %v4913_v23 = vld [vmem:[%s5115_s19 + $0x210] sm:$0xff] }
 0x223   : > { %4461 = vmatmul.msk.f32.gmra.mxu3 %vm8019_vm7, %v2565_v46  ;;  %vm8034_vm7 = vmmov %vm7998_vm0 }
 0x224   : > { %4470 = vmatmul.msk.f32.gmra.mxu0 %vm8020_vm13, %v2648_v29  ;;  %vm8035_vm13 = vmmov %vm7998_vm0 }
 0x225   : > { %vm8036_vm8 = vmmov %vm7998_vm0 }
 0x22a   : > { %4453 = vmatmul.msk.f32.gmra.mxu2 %vm8022_vm1, %v2731_v18  ;;  %4479 = vmatmul.msk.f32.gmra.mxu1 %vm8024_vm4, %v2731_v18  ;;  %vm8037_vm1 = vmmov %vm7998_vm0 }
 0x22b   : > { %4462 = vmatmul.msk.f32.gmra.mxu3 %vm8023_vm5, %v2814_v45  ;;  %vm8038_vm5 = vmmov %vm7998_vm0 }
 0x22c   : > { %4471 = vmatmul.msk.f32.gmra.mxu0 %vm8025_vm3, %v7062_v54  ;;  %vm8039_vm4 = vmmov %vm7998_vm0 }
 0x22d   : > { %vm8040_vm3 = vmmov %vm7998_vm0 }
 0x232   : > { %4482 = vmatmul.msk.f32.vlgmr.msra.gmra.mxu2 %vm8026_vm11, %v6909_v36  ;;  %4480 = vmatmul.msk.f32.gmra.mxu1 %vm8027_vm6, %v7069_v56  ;;  %v2526_v36 = vpop.f32.mrf.mxu3  ;;  %vm8041_vm11 = vmmov %vm7998_vm0 }
 0x233   : > { %4498 = vmatmul.msk.f32.vlgmr.msra.gmra.mxu3 %vm8034_vm7, %v4907_v3  ;;  %v2550_v41 = vadd.f32 %v2526_v36, %v2467_v10  ;;  %vm8042_vm6 = vmmov %vm7998_vm0 }
 0x237   : > { %v7093_v62 = vpop.f32.mrf.mxu1 }
 0x239   : > { %v7100_v24 = vpop.f32.mrf.mxu0 }
 0x23a   : > { %4483 = vmatmul.msk.f32.gmra.mxu2 %vm8028_vm10, %v6935_v51  ;;  %vm8043_vm10 = vmmov %vm7998_vm0 }
 0x23b   : > { %4499 = vmatmul.msk.f32.gmra.mxu3 %vm8035_vm13, %v4908_v2 }
 0x23d   : > { %v7079_v47 = vpop.f32.mrf.mxu2 }
 0x23e   : > { %v7097_v26 = vpop.f32.mrf.mxu3  ;;  %v2468_v11 = vadd.f32 %v7176_v4, %v7079_v47  ;;  %v4914_v47 = vld [vmem:[%s5115_s19 + $0x220] sm:$0xff]  ;;  %s7573_s19 = scalar_lea.vmem [#allocation3], %s4235_s30 }
 0x23f   : > { %v7104_v34 = vpop.f32.mrf.mxu1  ;;  %s4157_s20 = sshll.u32 %s7573_s19, 4  ;;  %s4158_s20 = int_to_ptr.vmem [resolvable:$true] %s4157_s20 }
 0x240   : > { %v2551_v37 = vadd.f32 %v7097_v26, %v2468_v11 }
 0x241   : > { %v7109_v32 = vpop.f32.mrf.mxu0 }
 0x242   : > { %4484 = vmatmul.msk.f32.gmra.mxu2 %vm7998_vm0, %v6965_v20  ;;  %v7113_v20 = vld [vmem:[#allocation2 + $0x92] sm:$0xff]  ;;  %v2634_v36 = vadd.f32 %v7100_v24, %v2551_v37  ;;  %v3390_v37 = vld [vmem:[#allocation2] sm:$0xff] }
 0x243   : > { %4500 = vmatmul.msk.f32.gmra.mxu3 %vm8036_vm8, %v4909_v19  ;;  %4506 = vmatmul.msk.f32.vlgmr.msrb.gmra.mxu0 %vm8043_vm10, %v3390_v37  ;;  %vm8049_vm10 = vmmov %vm7998_vm0 }
 0x245   : > { %v7083_v17 = vpop.f32.mrf.mxu2 }
 0x246   : > { %v7106_v28 = vpop.f32.mrf.mxu3  ;;  %v2469_v1 = vadd.f32 %v7176_v4, %v7083_v17 }
 0x247   : > { %v7115_v39 = vpop.f32.mrf.mxu1 }
 0x249   : > { %v7123_v50 = vpop.f32.mrf.mxu0 }
 0x24a   : > { %4485 = vmatmul.msk.f32.gmra.mxu2 %vm8029_vm14, %v6989_v59 }
 0x24b   : > { %4501 = vmatmul.msk.f32.gmra.mxu3 %vm8037_vm1, %v4910_v16  ;;  %v2717_v16 = vadd.f32 %v7104_v34, %v2634_v36 }
 0x24d   : > { %v7087_v60 = vpop.f32.mrf.mxu2 }
 0x24e   : > { %v7119_v55 = vpop.f32.mrf.mxu3  ;;  %v2470_v17 = vadd.f32 %v7176_v4, %v7087_v60 }
 0x24f   : > { %v7130_v12 = vpop.f32.mrf.mxu1 }
 0x251   : > { %v7137_v40 = vpop.f32.mrf.mxu0 }
 0x252   : > { %4486 = vmatmul.msk.f32.gmra.mxu2 %vm8030_vm2, %v7001_v0 }
 0x253   : > { %4502 = vmatmul.msk.f32.gmra.mxu3 %vm8038_vm5, %v4911_v27  ;;  %vm8045_vm5 = vmmov %vm7998_vm0 }
 0x255   : > { %v7095_v51 = vpop.f32.mrf.mxu2 }
 0x256   : > { %v7132_v38 = vpop.f32.mrf.mxu3 }
 0x257   : > { %v7141_v48 = vpop.f32.mrf.mxu1 }
 0x259   : > { %v7147_v44 = vpop.f32.mrf.mxu0 }
 0x25a   : > { %4487 = vmatmul.msk.f32.gmra.mxu2 %vm8031_vm9, %v2565_v46  ;;  %v2633_v46 = vadd.f32 %v7091_v15, %v2550_v41 }
 0x25b   : > { %4503 = vmatmul.msk.f32.gmra.mxu3 %vm8039_vm4, %v4912_v5 }
 0x25d   : > { %v7102_v30 = vpop.f32.mrf.mxu2 }
 0x25e   : > { %v7143_v35 = vpop.f32.mrf.mxu3 }
 0x25f   : > { %v7149_v61 = vpop.f32.mrf.mxu1 }
 0x261   : > { %v7155_v42 = vpop.f32.mrf.mxu0 }
 0x262   : > { %4488 = vmatmul.msk.f32.gmra.mxu2 %vm8032_vm15, %v2814_v45  ;;  %v2716_v45 = vadd.f32 %v7093_v62, %v2633_v46  ;;  %v2552_v62 = vadd.f32 %v7106_v28, %v2469_v1  ;;  %v3555_v46 = vld [vmem:[#allocation2 + $0x2] sm:$0xff] }
 0x263   : > { %4504 = vmatmul.msk.f32.gmra.mxu3 %vm8040_vm3, %v4913_v23  ;;  %vm8046_vm3 = vmmov %vm7998_vm0 }
 0x264   : > { %v2635_v24 = vadd.f32 %v7109_v32, %v2552_v62  ;;  %v2471_v32 = vadd.f32 %v7176_v4, %v7095_v51  ;;  %v4514_v51 = vld [vmem:[%s7655_s8 + $0x8] sm:$0xff] }
 0x265   : > { %v7111_v52 = vpop.f32.mrf.mxu2  ;;  %3521 = vmatpush.msra.mxu1 %v4514_v51 }
 0x266   : > { %v7151_v13 = vpop.f32.mrf.mxu3  ;;  %v2718_v10 = vadd.f32 %v7115_v39, %v2635_v24  ;;  %v4523_v39 = vld [vmem:[%s7655_s8 + $0x10] sm:$0xff] }
 0x267   : > { %v7162_v53 = vpop.f32.mrf.mxu1  ;;  %3604 = vmatpush.msrb.mxu2 %v4523_v39 }
 0x269   : > { %v7174_v0 = vpop.f32.mrf.mxu0 }
 0x26a   : > { %4489 = vmatmul.msk.f32.gmra.mxu2 %vm8033_vm12, %v7113_v20  ;;  %vm8044_vm12 = vmmov %vm7998_vm0 }
 0x26b   : > { %4505 = vmatmul.msk.f32.gmra.mxu3 %vm8041_vm11, %v4914_v47  ;;  %vm8047_vm11 = vmmov %vm7998_vm0 }
 0x26d   : > { %v7121_v58 = vpop.f32.mrf.mxu2 }
 0x26e   : > { %v7170_v9 = vpop.f32.mrf.mxu3 }
 0x26f   : > { %v7180_v7 = vpop.f32.mrf.mxu1 }
 0x271   : > { %v2942_v6 = vpop.f32.mrf.mxu0 }
 0x272   : > { %4524 = vmatmul.msk.f32.vlgmr.msrb.gmra.mxu2 %vm8042_vm6, %v3555_v46  ;;  %vm8048_vm6 = vmmov %vm7998_vm0 }
 0x275   : > { %v2775_v49 = vpop.f32.mrf.mxu2 }
 0x276   : > { %v2858_v25 = vpop.f32.mrf.mxu3  ;;  %v2799_v3 = vadd.f32 %v2775_v49, %v2716_v45 }
 0x277   : > { %v3025_v29 = vpop.f32.mrf.mxu1 }
 0x278   : > { %v2882_v19 = vadd.f32 %v2858_v25, %v2799_v3  ;;  %v2553_v25 = vadd.f32 %v7119_v55, %v2470_v17 }
 0x279   : > { %v2945_v2 = vpop.f32.mrf.mxu0 }
 0x27a   : > { %v2966_v26 = vadd.f32 %v2942_v6, %v2882_v19  ;;  %v2636_v60 = vadd.f32 %v7123_v50, %v2553_v25 }
 0x27c   : > { %v3049_v27 = vadd.f32 %v3025_v29, %v2966_v26  ;;  %v2719_v50 = vadd.f32 %v7130_v12, %v2636_v60  ;;  %v2472_v12 = vadd.f32 %v7176_v4, %v7102_v30 }
 0x27d   : > { %v2778_v22 = vpop.f32.mrf.mxu2 }
 0x27e   : > { %v2861_v14 = vpop.f32.mrf.mxu3  ;;  %v2800_v63 = vadd.f32 %v2778_v22, %v2717_v16 }
 0x27f   : > { %v3028_v33 = vpop.f32.mrf.mxu1 }
 0x280   : > { %v2883_v8 = vadd.f32 %v2861_v14, %v2800_v63  ;;  %v3472_v14 = vld [vmem:[#allocation2 + $0x1] sm:$0xff]  ;;  %v2555_v63 = vadd.f32 %v7143_v35, %v2472_v12  ;;  %v2473_v35 = vadd.f32 %v7176_v4, %v7111_v52 }
 0x281   : > { %v2948_v21 = vpop.f32.mrf.mxu0  ;;  %4515 = vmatmul.msk.f32.vlgmr.msra.gmra.mxu1 %vm7998_vm0, %v3472_v14 }
 0x282   : > { %v2967_v28 = vadd.f32 %v2945_v2, %v2883_v8 }
 0x284   : > { %v3050_v23 = vadd.f32 %v3028_v33, %v2967_v28 }
 0x285   : > { %v2781_v59 = vpop.f32.mrf.mxu2 }
 0x286   : > { %v2864_v49 = vpop.f32.mrf.mxu3  ;;  %v2801_v41 = vadd.f32 %v2781_v59, %v2718_v10  ;;  %v2554_v59 = vadd.f32 %v7132_v38, %v2471_v32  ;;  %v2556_v32 = vadd.f32 %v7151_v13, %v2473_v35 }
 0x287   : > { %v3031_v6 = vpop.f32.mrf.mxu1 }
 0x288   : > { %v2884_v55 = vadd.f32 %v2864_v49, %v2801_v41  ;;  %v2637_v2 = vadd.f32 %v7137_v40, %v2554_v59  ;;  %v2639_v13 = vadd.f32 %v7155_v42, %v2556_v32 }
 0x289   : > { %v2951_v3 = vpop.f32.mrf.mxu0 }
 0x28a   : > { %v2968_v36 = vadd.f32 %v2948_v21, %v2884_v55  ;;  %v2720_v26 = vadd.f32 %v7141_v48, %v2637_v2  ;;  %v2638_v48 = vadd.f32 %v7147_v44, %v2555_v63 }
 0x28c   : > { %v3051_v62 = vadd.f32 %v3031_v6, %v2968_v36 }
 0x28d   : > { %v7157_v31 = vpop.f32.mrf.mxu2 }
 0x28e   : > { %v2867_v11 = vpop.f32.mrf.mxu3  ;;  %v2802_v1 = vadd.f32 %v7157_v31, %v2719_v50  ;;  %v4532_v31 = vld [vmem:[%s7655_s8 + $0x18] sm:$0xff]  ;;  %v2474_v50 = vadd.f32 %v7176_v4, %v7121_v58  ;;  %v2722_v58 = vadd.f32 %v7162_v53, %v2639_v13 }
 0x28f   : > { %v3034_v16 = vpop.f32.mrf.mxu1  ;;  %3687 = vmatpush.msrb.mxu3 %v4532_v31 }
 0x290   : > { %v2885_v33 = vadd.f32 %v2867_v11, %v2802_v1  ;;  %v2557_v4 = vadd.f32 %v7170_v9, %v2474_v50 }
 0x295   : > { %v7172_v57 = vpop.f32.mrf.mxu2 }
 0x296   : > { %v2870_v49 = vpop.f32.mrf.mxu3  ;;  %v2803_v30 = vadd.f32 %v7172_v57, %v2720_v26 }
 0x297   : > { %v3037_v6 = vpop.f32.mrf.mxu1 }
 0x298   : > { %v2886_v28 = vadd.f32 %v2870_v49, %v2803_v30  ;;  %v2640_v30 = vadd.f32 %v7174_v0, %v2557_v4 }
 0x29a   : > { %v2723_v0 = vadd.f32 %v7180_v7, %v2640_v30 }
 0x29d   : > { %v7184_v43 = vpop.f32.mrf.mxu2 }
 0x29e   : > { %v2873_v55 = vpop.f32.mrf.mxu3 }
 0x29f   : > { %v3040_v26 = vpop.f32.mrf.mxu1 }
 0x2a5   : > { %v7191_v18 = vpop.f32.mrf.mxu2 }
 0x2a6   : > { %v2805_v53 = vadd.f32 %v7191_v18, %v2722_v58 }
 0x2ad   : > { %v7200_v15 = vpop.f32.mrf.mxu2 }
 0x2b5   : > { %v3108_v5 = vpop.f32.mrf.mxu2 }
 0x2b6   : > { %v7209_v34 = vadd.f32 %v3108_v5, %v3049_v27  ;;  %v2969_v27 = vadd.f32 %v2951_v3, %v2885_v33  ;;  %v2954_v5 = vpop.f32.mrf.mxu0 }
 0x2b8   : > { %v4490_v22 = vmul.f32 -1.442695, %v7209_v34  ;;  %v3052_v41 = vadd.f32 %v3034_v16, %v2969_v27 }
 0x2ba   : > { %4875 = vpow2.f32 %v4490_v22  ;;  %v2721_v22 = vadd.f32 %v7149_v61, %v2638_v48 }
 0x2bc   : > { %v2804_v59 = vadd.f32 %v7184_v43, %v2721_v22 }
 0x2bd   : > { %v3111_v29 = vpop.f32.mrf.mxu2 }
 0x2be   : > { %v7224_v45 = vadd.f32 %v3111_v29, %v3050_v23  ;;  %v2970_v23 = vadd.f32 %v2954_v5, %v2886_v28  ;;  %v2957_v43 = vpop.f32.mrf.mxu0 }
 0x2c0   : > { %v4876_v38 = vpop.eup %4875  ;;  %v4491_v47 = vmul.f32 -1.442695, %v7224_v45  ;;  %v3053_v1 = vadd.f32 %v3037_v6, %v2970_v23 }
 0x2c1   : > { %v3164_v19 = vadd.f32 1.0, %v4876_v38 }
 0x2c2   : > { %4877 = vpow2.f32 %v4491_v47  ;;  %v2887_v47 = vadd.f32 %v2873_v55, %v2804_v59  ;;  %v3043_v59 = vpop.f32.mrf.mxu1 }
 0x2c3   : > { %4879 = vrcp.f32 %v3164_v19  ;;  %v3183_v60 = vand.u32 2147483648, %v3164_v19  ;;  %v3181_v52 = vand.u32 2147483647, %v3164_v19  ;;  %vm3177_vm2 = vweird.f32 %v3164_v19 }
 0x2c4   : > { %v2971_v63 = vadd.f32 %v2957_v43, %v2887_v47 }
 0x2c5   : > { %v3114_v24 = vpop.f32.mrf.mxu2  ;;  %v3184_v37 = vor.u32 1.1754944e-38, %v3183_v60  ;;  %vm3182_vm15 = vcmp.eq.f32.partialorder %v3181_v52, 8.507059e+37  ;;  %v2806_v52 = vadd.f32 %v7200_v15, %v2723_v0  ;;  %v4550_v0 = vld [vmem:[%s7655_s8 + $0x28] sm:$0xff] }
 0x2c6   : > { %v7238_v40 = vadd.f32 %v3114_v24, %v3051_v62  ;;  %v3054_v5 = vadd.f32 %v3040_v26, %v2971_v63  ;;  %v2960_v28 = vpop.f32.mrf.mxu0  ;;  %3853 = vmatpush.msrb.mxu1 %v4550_v0 }
 0x2c8   : > { %v4878_v17 = vpop.eup %4877  ;;  %v4492_v8 = vmul.f32 -1.442695, %v7238_v40 }
 0x2c9   : > { %v4880_v21 = vpop.eup %4879  ;;  %v7245_v10 = vadd.f32 1.0, %v4878_v17  ;;  %v2876_v17 = vpop.f32.mrf.mxu3 }
 0x2ca   : > { %v3173_v25 = vmul.f32 %v4880_v21, %v3164_v19  ;;  %4881 = vpow2.f32 %v4492_v8  ;;  %vm3178_vm14 = vweird.f32 %v4880_v21  ;;  %v2888_v48 = vadd.f32 %v2876_v17, %v2805_v53  ;;  %v3046_v26 = vpop.f32.mrf.mxu1 }
 0x2cb   : > { %4883 = vrcp.f32 %v7245_v10  ;;  %vm3179_vm9 = vmor %vm3177_vm2, %vm3178_vm14  ;;  %v3198_v12 = vand.u32 2147483648, %v7245_v10  ;;  %v3196_v62 = vand.u32 2147483647, %v7245_v10  ;;  %vm3192_vm13 = vweird.f32 %v7245_v10 }
 0x2cc   : > { %v3174_v57 = vsub.f32 1.0, %v3173_v25  ;;  %v2972_v7 = vadd.f32 %v2960_v28, %v2888_v48 }
 0x2cd   : > { %v3117_v44 = vpop.f32.mrf.mxu2  ;;  %v3199_v27 = vor.u32 1.1754944e-38, %v3198_v12  ;;  %vm3197_vm1 = vcmp.eq.f32.partialorder %v3196_v62, 8.507059e+37 }
 0x2ce   : > { %v3175_v11 = vmul.f32 %v4880_v21, %v3174_v57  ;;  %v7250_v39 = vadd.f32 %v3117_v44, %v3052_v41  ;;  %v3055_v15 = vadd.f32 %v3043_v59, %v2972_v7  ;;  %v2963_v43 = vpop.f32.mrf.mxu0 }
 0x2d0   : > { %v4882_v46 = vpop.eup %4881  ;;  %v3176_v29 = vadd.f32 %v4880_v21, %v3175_v11  ;;  %v4493_v51 = vmul.f32 -1.442695, %v7250_v39 }
 0x2d1   : > { %v4884_v61 = vpop.eup %4883  ;;  %v7257_v14 = vadd.f32 1.0, %v4882_v46  ;;  %v2879_v50 = vpop.f32.mrf.mxu3 }
 0x2d2   : > { %v3180_v3 = vsel %vm3179_vm9, %v4880_v21, %v3176_v29  ;;  %v3188_v38 = vmul.f32 %v4884_v61, %v7245_v10  ;;  %4885 = vpow2.f32 %v4493_v51  ;;  %vm3193_vm7 = vweird.f32 %v4884_v61  ;;  %vm8050_vm9 = vmmov %vm8046_vm3 }
 0x2d3   : > { %v3185_v36 = vsel %vm3182_vm15, %v3184_v37, %v3180_v3  ;;  %4887 = vrcp.f32 %v7257_v14  ;;  %vm3194_vm8 = vmor %vm3192_vm13, %vm3193_vm7  ;;  %v3213_v41 = vand.u32 2147483648, %v7257_v14  ;;  %v3211_v44 = vand.u32 2147483647, %v7257_v14 }
 0x2d4   : > { %v3292_v42 = vmul.f32 %v3185_v36, %v7209_v34  ;;  %v3189_v2 = vsub.f32 1.0, %v3188_v38  ;;  %v4541_v34 = vld [vmem:[%s7655_s8 + $0x20] sm:$0xff]  ;;  %vm3207_vm0 = vweird.f32 %v7257_v14  ;;  %vm8052_vm7 = vmmov %vm8046_vm3 }
 0x2d5   : > { %v3120_v19 = vpop.f32.mrf.mxu2  ;;  %3770 = vmatpush.msra.mxu0 %v4541_v34  ;;  %v3214_v29 = vor.u32 1.1754944e-38, %v3213_v41  ;;  %vm3212_vm2 = vcmp.eq.f32.partialorder %v3211_v44, 8.507059e+37  ;;  %vm8053_vm13 = vmmov %vm8046_vm3 }
 0x2d6   : > { %3300 = vst.msk [vmem:[#allocation2 + $0x11] sm:$0xff] %vm8044_vm12, %v3292_v42  ;;  %v3190_v16 = vmul.f32 %v4884_v61, %v3189_v2  ;;  %v7267_v33 = vadd.f32 %v3120_v19, %v3053_v1  ;;  %vm8051_vm12 = vmmov %vm8046_vm3 }
 0x2d8   : > { %v4886_v9 = vpop.eup %4885  ;;  %v3191_v49 = vadd.f32 %v4884_v61, %v3190_v16  ;;  %v4494_v24 = vmul.f32 -1.442695, %v7267_v33 }
 0x2d9   : > { %v4888_v31 = vpop.eup %4887  ;;  %v7277_v8 = vadd.f32 1.0, %v4886_v9 }
 0x2da   : > { %v3195_v21 = vsel %vm3194_vm8, %v4884_v61, %v3191_v49  ;;  %v3203_v18 = vmul.f32 %v4888_v31, %v7257_v14  ;;  %4889 = vpow2.f32 %v4494_v24  ;;  %vm3208_vm4 = vweird.f32 %v4888_v31  ;;  %vm8054_vm8 = vmmov %vm8046_vm3 }
 0x2db   : > { %v3200_v35 = vsel %vm3197_vm1, %v3199_v27, %v3195_v21  ;;  %4891 = vrcp.f32 %v7277_v8  ;;  %vm3209_vm14 = vmor %vm3207_vm0, %vm3208_vm4  ;;  %v2889_v14 = vadd.f32 %v2879_v50, %v2806_v52  ;;  %v3228_v36 = vand.u32 2147483648, %v7277_v8 }
 0x2dc   : > { %v3293_v10 = vmul.f32 %v3200_v35, %v7224_v45  ;;  %v3204_v25 = vsub.f32 1.0, %v3203_v18  ;;  %v3226_v4 = vand.u32 2147483647, %v7277_v8  ;;  %vm3222_vm1 = vweird.f32 %v7277_v8  ;;  %vm8057_vm0 = vmmov %vm8046_vm3 }
 0x2dd   : > { %v3123_v57 = vpop.f32.mrf.mxu2  ;;  %v3391_v22 = vld [vmem:[#allocation2 + $0x10] sm:$0xff]  ;;  %v2973_v19 = vadd.f32 %v2963_v43, %v2889_v14  ;;  %v3229_v53 = vor.u32 1.1754944e-38, %v3228_v36 }
 0x2de   : > { %v7284_v32 = vld [vmem:[#allocation2 + $0x11] sm:$0xff]  ;;  %3301 = vst.msk [vmem:[#allocation2 + $0x21] sm:$0xff] %vm8045_vm5, %v3293_v10  ;;  %v3205_v60 = vmul.f32 %v4888_v31, %v3204_v25  ;;  %v7290_v11 = vadd.f32 %v3123_v57, %v3054_v5  ;;  %4507 = vmatmul.msk.f32.gmra.mxu0 %vm8046_vm3, %v3391_v22  ;;  %4533 = vmatmul.msk.f32.vlgmr.msrb.gmra.mxu3 %vm8049_vm10, %v3391_v22  ;;  %vm3227_vm4 = vcmp.eq.f32.partialorder %v3226_v4, 8.507059e+37  ;;  %vm8056_vm10 = vmmov %vm8046_vm3 }
 0x2df   : > { %v7286_v6 = vld [vmem:[#allocation2 + $0x12] sm:$0xff]  ;;  %4516 = vmatmul.msk.f32.gmra.mxu1 %vm8047_vm11, %v7284_v32 }
 0x2e0   : > { %4525 = vmatmul.msk.f32.gmra.mxu2 %vm8048_vm6, %v7286_v6  ;;  %v4890_v45 = vpop.eup %4889  ;;  %v3206_v23 = vadd.f32 %v4888_v31, %v3205_v60  ;;  %v4495_v55 = vmul.f32 -1.442695, %v7290_v11  ;;  %vm8055_vm6 = vmmov %vm8046_vm3  ;;  %v4568_v25 = vld [vmem:[%s7655_s8 + $0x38] sm:$0xff] }
 0x2e1   : > { %v4892_v46 = vpop.eup %4891  ;;  %v7302_v51 = vadd.f32 1.0, %v4890_v45  ;;  %4019 = vmatpush.msra.mxu3 %v4568_v25 }
 0x2e2   : > { %v3210_v61 = vsel %vm3209_vm14, %v4888_v31, %v3206_v23  ;;  %v3218_v13 = vmul.f32 %v4892_v46, %v7277_v8  ;;  %4893 = vpow2.f32 %v4495_v55  ;;  %vm3223_vm15 = vweird.f32 %v4892_v46  ;;  %vm8058_vm14 = vmmov %vm8057_vm0 }
 0x2e3   : > { %v3215_v37 = vsel %vm3212_vm2, %v3214_v29, %v3210_v61  ;;  %4895 = vrcp.f32 %v7302_v51  ;;  %vm3224_vm5 = vmor %vm3222_vm1, %vm3223_vm15  ;;  %v3056_v31 = vadd.f32 %v3046_v26, %v2973_v19  ;;  %v3243_v27 = vand.u32 2147483648, %v7302_v51 }
 0x2e4   : > { %v3294_v3 = vmul.f32 %v3215_v37, %v7238_v40  ;;  %v3219_v38 = vsub.f32 1.0, %v3218_v13  ;;  %v3241_v5 = vand.u32 2147483647, %v7302_v51  ;;  %vm3237_vm2 = vweird.f32 %v7302_v51  ;;  %vm8062_vm1 = vmmov %vm8057_vm0 }
 0x2e5   : > { %v3126_v1 = vpop.f32.mrf.mxu2  ;;  %v7308_v47 = vld [vmem:[#allocation2 + $0x20] sm:$0xff]  ;;  %v3244_v60 = vor.u32 1.1754944e-38, %v3243_v27 }
 0x2e6   : > { %v7310_v42 = vld [vmem:[#allocation2 + $0x21] sm:$0xff]  ;;  %3302 = vst.msk [vmem:[#allocation2 + $0x31] sm:$0xff] %vm8050_vm9, %v3294_v3  ;;  %v3220_v58 = vmul.f32 %v4892_v46, %v3219_v38  ;;  %v7316_v12 = vadd.f32 %v3126_v1, %v3055_v15  ;;  %4508 = vmatmul.msk.f32.gmra.mxu0 %vm8051_vm12, %v7308_v47  ;;  %4534 = vmatmul.msk.f32.gmra.mxu3 %vm8054_vm8, %v7308_v47  ;;  %vm3242_vm15 = vcmp.eq.f32.partialorder %v3241_v5, 8.507059e+37  ;;  %vm8059_vm12 = vmmov %vm8057_vm0 }
 0x2e7   : > { %v7312_v2 = vld [vmem:[#allocation2 + $0x22] sm:$0xff]  ;;  %4517 = vmatmul.msk.f32.gmra.mxu1 %vm8052_vm7, %v7310_v42  ;;  %vm8061_vm8 = vmmov %vm8057_vm0 }
 0x2e8   : > { %4526 = vmatmul.msk.f32.gmra.mxu2 %vm8053_vm13, %v7312_v2  ;;  %v4894_v40 = vpop.eup %4893  ;;  %v3221_v16 = vadd.f32 %v4892_v46, %v3220_v58  ;;  %v4496_v62 = vmul.f32 -1.442695, %v7316_v12  ;;  %vm8060_vm13 = vmmov %vm8057_vm0 }
 0x2e9   : > { %v4896_v34 = vpop.eup %4895  ;;  %v7328_v9 = vadd.f32 1.0, %v4894_v40 }
 0x2ea   : > { %v3225_v63 = vsel %vm3224_vm5, %v4892_v46, %v3221_v16  ;;  %v3233_v49 = vmul.f32 %v4896_v34, %v7302_v51  ;;  %4897 = vpow2.f32 %v4496_v62  ;;  %vm3238_vm11 = vweird.f32 %v4896_v34  ;;  %vm8063_vm5 = vmmov %vm8057_vm0 }
 0x2eb   : > { %v3230_v24 = vsel %vm3227_vm4, %v3229_v53, %v3225_v63  ;;  %4899 = vrcp.f32 %v7328_v9  ;;  %vm3239_vm9 = vmor %vm3237_vm2, %vm3238_vm11  ;;  %v3258_v46 = vand.u32 2147483648, %v7328_v9  ;;  %v3256_v13 = vand.u32 2147483647, %v7328_v9 }
 0x2ec   : > { %v3295_v30 = vmul.f32 %v3230_v24, %v7250_v39  ;;  %v3234_v17 = vsub.f32 1.0, %v3233_v49  ;;  %v4559_v39 = vld [vmem:[%s7655_s8 + $0x30] sm:$0xff]  ;;  %vm3252_vm4 = vweird.f32 %v7328_v9  ;;  %vm8066_vm2 = vmmov %vm8057_vm0 }
 0x2ed   : > { %v3129_v8 = vpop.f32.mrf.mxu2  ;;  %v7334_v21 = vld [vmem:[#allocation2 + $0x30] sm:$0xff]  ;;  %3936 = vmatpush.msra.mxu2 %v4559_v39  ;;  %v3259_v14 = vor.u32 1.1754944e-38, %v3258_v46  ;;  %vm3257_vm11 = vcmp.eq.f32.partialorder %v3256_v13, 8.507059e+37 }
 0x2ee   : > { %v7336_v18 = vld [vmem:[#allocation2 + $0x31] sm:$0xff]  ;;  %3303 = vst.msk [vmem:[#allocation2 + $0x41] sm:$0xff] %vm8046_vm3, %v3295_v30  ;;  %v3235_v35 = vmul.f32 %v4896_v34, %v3234_v17  ;;  %v7342_v10 = vadd.f32 %v3129_v8, %v3056_v31  ;;  %4509 = vmatmul.msk.f32.gmra.mxu0 %vm8055_vm6, %v7334_v21  ;;  %4535 = vmatmul.msk.f32.gmra.mxu3 %vm8058_vm14, %v7334_v21  ;;  %vm8064_vm6 = vmmov %vm8057_vm0 }
 0x2ef   : > { %v7338_v48 = vld [vmem:[#allocation2 + $0x32] sm:$0xff]  ;;  %4518 = vmatmul.msk.f32.gmra.mxu1 %vm8056_vm10, %v7336_v18  ;;  %vm8065_vm14 = vmmov %vm8057_vm0 }
 0x2f0   : > { %4527 = vmatmul.msk.f32.gmra.mxu2 %vm8057_vm0, %v7338_v48  ;;  %v4898_v28 = vpop.eup %4897  ;;  %v3236_v41 = vadd.f32 %v4896_v34, %v3235_v35  ;;  %v4497_v57 = vmul.f32 -1.442695, %v7342_v10 }
 0x2f1   : > { %v4900_v22 = vpop.eup %4899  ;;  %v3170_v44 = vadd.f32 1.0, %v4898_v28 }
 0x2f2   : > { %v3240_v7 = vsel %vm3239_vm9, %v4896_v34, %v3236_v41  ;;  %v3248_v45 = vmul.f32 %v4900_v22, %v7328_v9  ;;  %4901 = vpow2.f32 %v4497_v57  ;;  %vm3253_vm7 = vweird.f32 %v4900_v22  ;;  %vm8067_vm9 = vmmov %vm8057_vm0 }
 0x2f3   : > { %v3245_v52 = vsel %vm3242_vm15, %v3244_v60, %v3240_v7  ;;  %4903 = vrcp.f32 %v3170_v44  ;;  %vm3254_vm3 = vmor %vm3252_vm4, %vm3253_vm7  ;;  %v3273_v4 = vand.u32 2147483648, %v3170_v44  ;;  %v3271_v34 = vand.u32 2147483647, %v3170_v44 }
 0x2f4   : > { %v3296_v23 = vmul.f32 %v3245_v52, %v7267_v33  ;;  %v3249_v55 = vsub.f32 1.0, %v3248_v45  ;;  %v4577_v33 = vld [vmem:[%s7655_s8 + $0x40] sm:$0xff]  ;;  %vm3267_vm15 = vweird.f32 %v3170_v44  ;;  %vm8071_vm4 = vmmov %vm8057_vm0 }
 0x2f5   : > { %v7367_v59 = vld [vmem:[#allocation2 + $0x40] sm:$0xff]  ;;  %4102 = vmatpush.msrb.mxu0 %v4577_v33  ;;  %v3274_v53 = vor.u32 1.1754944e-38, %v3273_v4  ;;  %vm3272_vm7 = vcmp.eq.f32.partialorder %v3271_v34, 8.507059e+37 }
 0x2f6   : > { %v7369_v29 = vld [vmem:[#allocation2 + $0x41] sm:$0xff]  ;;  %3304 = vst.msk [vmem:[#allocation2 + $0x51] sm:$0xff] %vm8059_vm12, %v3296_v23  ;;  %v3250_v61 = vmul.f32 %v4900_v22, %v3249_v55  ;;  %4510 = vmatmul.msk.f32.gmra.mxu0 %vm8060_vm13, %v7367_v59  ;;  %4536 = vmatmul.msk.f32.gmra.mxu3 %vm8063_vm5, %v7367_v59  ;;  %vm8068_vm13 = vmmov %vm8057_vm0 }
 0x2f7   : > { %v7371_v51 = vld [vmem:[#allocation2 + $0x42] sm:$0xff]  ;;  %4519 = vmatmul.msk.f32.gmra.mxu1 %vm8061_vm8, %v7369_v29  ;;  %vm8070_vm5 = vmmov %vm8057_vm0 }
 0x2f8   : > { %4528 = vmatmul.msk.f32.gmra.mxu2 %vm8062_vm1, %v7371_v51  ;;  %v4902_v50 = vpop.eup %4901  ;;  %v3251_v37 = vadd.f32 %v4900_v22, %v3250_v61  ;;  %vm8069_vm1 = vmmov %vm8057_vm0 }
 0x2f9   : > { %v4904_v15 = vpop.eup %4903  ;;  %v3171_v3 = vadd.f32 1.0, %v4902_v50 }
 0x2fa   : > { %v3255_v38 = vsel %vm3254_vm3, %v4900_v22, %v3251_v37  ;;  %v3263_v43 = vmul.f32 %v4904_v15, %v3170_v44  ;;  %vm3268_vm10 = vweird.f32 %v4904_v15  ;;  %vm8072_vm3 = vmmov %vm8057_vm0  ;;  %v3440_v44 = vpop.f32.mrf.mxu0 }
 0x2fb   : > { %v3260_v36 = vsel %vm3257_vm11, %v3259_v14, %v3255_v38  ;;  %4905 = vrcp.f32 %v3171_v3  ;;  %vm3269_vm12 = vmor %vm3267_vm15, %vm3268_vm10  ;;  %v3288_v30 = vand.u32 2147483648, %v3171_v3  ;;  %v3286_v5 = vand.u32 2147483647, %v3171_v3 }
 0x2fc   : > { %v3297_v1 = vmul.f32 %v3260_v36, %v7290_v11  ;;  %v3264_v58 = vsub.f32 1.0, %v3263_v43  ;;  %vm3282_vm11 = vweird.f32 %v3171_v3  ;;  %vm8076_vm15 = vmmov %vm8057_vm0 }
 0x2fd   : > { %v7388_v40 = vld [vmem:[#allocation2 + $0x50] sm:$0xff]  ;;  %v3289_v39 = vor.u32 1.1754944e-38, %v3288_v30  ;;  %vm3287_vm10 = vcmp.eq.f32.partialorder %v3286_v5, 8.507059e+37 }
 0x2fe   : > { %v7390_v19 = vld [vmem:[#allocation2 + $0x51] sm:$0xff]  ;;  %3305 = vst.msk [vmem:[#allocation2 + $0x61] sm:$0xff] %vm8064_vm6, %v3297_v1  ;;  %v3265_v62 = vmul.f32 %v4904_v15, %v3264_v58  ;;  %4511 = vmatmul.msk.f32.gmra.mxu0 %vm8057_vm0, %v7388_v40  ;;  %4537 = vmatmul.msk.f32.gmra.mxu3 %vm8067_vm9, %v7388_v40  ;;  %vm8075_vm9 = vmmov %vm8057_vm0  ;;  %v3523_v36 = vpop.f32.mrf.mxu1  ;;  %v3606_v1 = vpop.f32.mrf.mxu2 }
 0x2ff   : > { %v7392_v16 = vld [vmem:[#allocation2 + $0x52] sm:$0xff]  ;;  %4520 = vmatmul.msk.f32.gmra.mxu1 %vm8065_vm14, %v7390_v19  ;;  %vm8073_vm14 = vmmov %vm8057_vm0 }
 0x300   : > { %4529 = vmatmul.msk.f32.gmra.mxu2 %vm8066_vm2, %v7392_v16  ;;  %v3266_v11 = vadd.f32 %v4904_v15, %v3265_v62  ;;  %vm8074_vm2 = vmmov %vm8057_vm0 }
 0x301   : > { %v4906_v26 = vpop.eup %4905 }
 0x302   : > { %v3270_v9 = vsel %vm3269_vm12, %v4904_v15, %v3266_v11  ;;  %v3278_v63 = vmul.f32 %v4906_v26, %v3171_v3  ;;  %vm3283_vm8 = vweird.f32 %v4906_v26  ;;  %vm8077_vm12 = vmmov %vm8057_vm0 }
 0x303   : > { %v3275_v49 = vsel %vm3272_vm7, %v3274_v53, %v3270_v9  ;;  %vm3284_vm6 = vmor %vm3282_vm11, %vm3283_vm8 }
 0x304   : > { %v3298_v24 = vmul.f32 %v3275_v49, %v7316_v12  ;;  %v3279_v31 = vsub.f32 1.0, %v3278_v63  ;;  %vm8078_vm7 = vmmov %vm8057_vm0 }
 0x305   : > { %v3396_v17 = vld [vmem:[#allocation2 + $0x60] sm:$0xff]  ;;  %vm8080_vm8 = vmmov %vm8057_vm0 }
 0x306   : > { %v3478_v27 = vld [vmem:[#allocation2 + $0x61] sm:$0xff]  ;;  %3306 = vst.msk [vmem:[#allocation2 + $0x71] sm:$0xff] %vm8068_vm13, %v3298_v24  ;;  %v3280_v35 = vmul.f32 %v4906_v26, %v3279_v31  ;;  %4512 = vmatmul.msk.f32.gmra.mxu0 %vm8069_vm1, %v3396_v17  ;;  %4538 = vmatmul.msk.f32.gmra.mxu3 %vm8072_vm3, %v3396_v17  ;;  %vm8079_vm13 = vmmov %vm8057_vm0 }
 0x307   : > { %v7404_v8 = vld [vmem:[#allocation2 + $0x62] sm:$0xff]  ;;  %4521 = vmatmul.msk.f32.gmra.mxu1 %vm8070_vm5, %v3478_v27  ;;  %vm8081_vm1 = vmmov %vm8057_vm0 }
 0x308   : > { %4530 = vmatmul.msk.f32.gmra.mxu2 %vm8071_vm4, %v7404_v8  ;;  %v3281_v12 = vadd.f32 %v4906_v26, %v3280_v35  ;;  %vm8082_vm5 = vmmov %vm8057_vm0 }
 0x309   : > { %vm8083_vm4 = vmmov %vm8057_vm0 }
 0x30a   : > { %v3285_v25 = vsel %vm3284_vm6, %v4906_v26, %v3281_v12  ;;  %vm8084_vm3 = vmmov %vm8057_vm0 }
 0x30b   : > { %v3290_v0 = vsel %vm3287_vm10, %v3289_v39, %v3285_v25  ;;  %vm8085_vm11 = vmmov %vm8057_vm0 }
 0x30c   : > { %v3299_v28 = vmul.f32 %v3290_v0, %v7342_v10  ;;  %vm8086_vm6 = vmmov %vm8057_vm0 }
 0x30d   : > { %v3397_v41 = vld [vmem:[#allocation2 + $0x70] sm:$0xff]  ;;  %vm8087_vm10 = vmmov %vm8057_vm0 }
 0x30e   : > { %v3479_v57 = vld [vmem:[#allocation2 + $0x71] sm:$0xff]  ;;  %3307 = vst.msk [vmem:[#allocation2 + $0x81] sm:$0xff] %vm8057_vm0, %v3299_v28  ;;  %4513 = vmatmul.msk.f32.gmra.mxu0 %vm8073_vm14, %v3397_v41  ;;  %4539 = vmatmul.msk.f32.gmra.mxu3 %vm8076_vm15, %v3397_v41  ;;  %vm8088_vm14 = vmmov %vm8057_vm0 }
 0x30f   : > { %v7413_v22 = vld [vmem:[#allocation2 + $0x72] sm:$0xff]  ;;  %4522 = vmatmul.msk.f32.gmra.mxu1 %vm8074_vm2, %v3479_v57  ;;  %vm8089_vm2 = vmmov %vm8057_vm0 }
 0x310   : > { %4531 = vmatmul.msk.f32.gmra.mxu2 %vm8075_vm9, %v7413_v22  ;;  %vm8090_vm9 = vmmov %vm8057_vm0 }
 0x311   : > { %vm8091_vm15 = vmmov %vm8057_vm0 }
 0x315   : > { %v3645_v60 = vld [vmem:[#allocation2 + $0x80] sm:$0xff] }
 0x316   : > { %4542 = vmatmul.msk.f32.vlgmr.msra.gmra.mxu0 %vm8077_vm12, %v7284_v32  ;;  %4540 = vmatmul.msk.f32.gmra.mxu3 %vm8079_vm13, %v3645_v60  ;;  %v3354_v32 = vpop.f32.mrf.mxu3  ;;  %vm8092_vm12 = vmmov %vm8057_vm0  ;;  %v3728_v23 = vld [vmem:[#allocation2 + $0x81] sm:$0xff] }
 0x317   : > { %4551 = vmatmul.msk.f32.vlgmr.msrb.gmra.mxu1 %vm8078_vm7, %v7286_v6  ;;  %vm8093_vm7 = vmmov %vm8057_vm0  ;;  %v3811_v55 = vld [vmem:[#allocation2 + $0x82] sm:$0xff] }
 0x318   : > { %4560 = vmatmul.msk.f32.vlgmr.msra.gmra.mxu2 %vm8080_vm8, %v7308_v47  ;;  %v7455_v47 = vld [vmem:[%s7658_s11] ss:$0 sm:$0xff]  ;;  %vm8094_vm13 = vmmov %vm8057_vm0 }
 0x319   : > { %vm8095_vm8 = vmmov %vm8057_vm0 }
 0x31e   : > { %4543 = vmatmul.msk.f32.gmra.mxu0 %vm8081_vm1, %v7310_v42  ;;  %4569 = vmatmul.msk.f32.vlgmr.msra.gmra.mxu3 %vm8084_vm3, %v7310_v42  ;;  %v3357_v6 = vpop.f32.mrf.mxu3  ;;  %v3355_v42 = vadd.f32 %v7455_v47, %v3354_v32  ;;  %vm8096_vm1 = vmmov %vm8057_vm0 }
 0x31f   : > { %4552 = vmatmul.msk.f32.gmra.mxu1 %vm8082_vm5, %v7312_v2  ;;  %vm8097_vm5 = vmmov %vm8057_vm0 }
 0x320   : > { %4561 = vmatmul.msk.f32.gmra.mxu2 %vm8083_vm4, %v7334_v21  ;;  %vm8098_vm4 = vmmov %vm8057_vm0 }
 0x321   : > { %vm8099_vm3 = vmmov %vm8057_vm0 }
 0x326   : > { %4544 = vmatmul.msk.f32.gmra.mxu0 %vm8085_vm11, %v7336_v18  ;;  %4570 = vmatmul.msk.f32.gmra.mxu3 %vm8057_vm0, %v7336_v18  ;;  %v3360_v21 = vpop.f32.mrf.mxu3  ;;  %v7461_v18 = vld [vmem:[%s7656_s9] ss:$0 sm:$0xff]  ;;  %vm8100_vm11 = vmmov %vm8057_vm0 }
 0x327   : > { %4553 = vmatmul.msk.f32.gmra.mxu1 %vm8086_vm6, %v7338_v48  ;;  %v3382_v10 = vadd.f32 %v7461_v18, %v3355_v42  ;;  %vm8101_vm6 = vmmov %vm8057_vm0  ;;  %v3361_v13 = vadd.f32 %v7455_v47, %v3360_v21 }
 0x328   : > { %4562 = vmatmul.msk.f32.gmra.mxu2 %vm8087_vm10, %v7367_v59  ;;  %vm8102_vm10 = vmmov %vm8057_vm0  ;;  %v3358_v59 = vadd.f32 %v7455_v47, %v3357_v6 }
 0x329   : > { %v7471_v7 = vadd.f32 %v3440_v44, %v3382_v10 }
 0x32e   : > { %4545 = vmatmul.msk.f32.gmra.mxu0 %vm8088_vm14, %v7369_v29  ;;  %4571 = vmatmul.msk.f32.gmra.mxu3 %vm8091_vm15, %v7369_v29  ;;  %v3363_v45 = vpop.f32.mrf.mxu3  ;;  %vm8103_vm14 = vmmov %vm8057_vm0  ;;  %v3383_v29 = vadd.f32 %v7461_v18, %v3358_v59  ;;  %v3547_v59 = vadd.f32 %v3523_v36, %v7471_v7 }
 0x32f   : > { %4554 = vmatmul.msk.f32.gmra.mxu1 %vm8089_vm2, %v7371_v51  ;;  %vm8104_vm2 = vmmov %vm8057_vm0  ;;  %v3364_v15 = vadd.f32 %v7455_v47, %v3363_v45 }
 0x330   : > { %4563 = vmatmul.msk.f32.gmra.mxu2 %vm8090_vm9, %v7388_v40  ;;  %vm8105_vm9 = vmmov %vm8057_vm0 }
 0x331   : > { %vm8106_vm15 = vmmov %vm8057_vm0  ;;  %v3385_v14 = vadd.f32 %v7461_v18, %v3364_v15 }
 0x336   : > { %4546 = vmatmul.msk.f32.gmra.mxu0 %vm8092_vm12, %v7390_v19  ;;  %4572 = vmatmul.msk.f32.gmra.mxu3 %vm8095_vm8, %v7390_v19  ;;  %v3366_v52 = vpop.f32.mrf.mxu3  ;;  %vm8107_vm12 = vmmov %vm8057_vm0 }
 0x337   : > { %4555 = vmatmul.msk.f32.gmra.mxu1 %vm8093_vm7, %v7392_v16  ;;  %vm8108_vm7 = vmmov %vm8057_vm0  ;;  %v3367_v38 = vadd.f32 %v7455_v47, %v3366_v52 }
 0x338   : > { %4564 = vmatmul.msk.f32.gmra.mxu2 %vm8094_vm13, %v3396_v17  ;;  %vm8109_vm13 = vmmov %vm8057_vm0 }
 0x339   : > { %vm8110_vm8 = vmmov %vm8057_vm0 }
 0x33e   : > { %4547 = vmatmul.msk.f32.gmra.mxu0 %vm8096_vm1, %v3478_v27  ;;  %4573 = vmatmul.msk.f32.gmra.mxu3 %vm8099_vm3, %v3478_v27  ;;  %v3369_v46 = vpop.f32.mrf.mxu3  ;;  %vm8111_vm1 = vmmov %vm8057_vm0 }
 0x33f   : > { %4556 = vmatmul.msk.f32.gmra.mxu1 %vm8097_vm5, %v7404_v8  ;;  %v3370_v40 = vadd.f32 %v7455_v47, %v3369_v46  ;;  %vm8112_vm5 = vmmov %vm8057_vm0 }
 0x340   : > { %4565 = vmatmul.msk.f32.gmra.mxu2 %vm8098_vm4, %v3397_v41  ;;  %vm8113_vm4 = vmmov %vm8057_vm0 }
 0x341   : > { %v3387_v62 = vadd.f32 %v7461_v18, %v3370_v40  ;;  %vm8114_vm3 = vmmov %vm8057_vm0 }
 0x346   : > { %4548 = vmatmul.msk.f32.gmra.mxu0 %vm8100_vm11, %v3479_v57  ;;  %4574 = vmatmul.msk.f32.gmra.mxu3 %vm8057_vm0, %v3479_v57  ;;  %v3372_v50 = vpop.f32.mrf.mxu3  ;;  %vm8115_vm11 = vmmov %vm8057_vm0 }
 0x347   : > { %4557 = vmatmul.msk.f32.gmra.mxu1 %vm8101_vm6, %v7413_v22  ;;  %vm8116_vm6 = vmmov %vm8057_vm0 }
 0x348   : > { %4566 = vmatmul.msk.f32.gmra.mxu2 %vm8102_vm10, %v3645_v60  ;;  %vm8117_vm10 = vmmov %vm8057_vm0 }
 0x34e   : > { %4549 = vmatmul.msk.f32.gmra.mxu0 %vm8103_vm14, %v3728_v23  ;;  %4575 = vmatmul.msk.f32.gmra.mxu3 %vm8106_vm15, %v3728_v23  ;;  %vm8118_vm14 = vmmov %vm8057_vm0 }
 0x34f   : > { %4558 = vmatmul.msk.f32.gmra.mxu1 %vm8104_vm2, %v3811_v55  ;;  %vm8119_vm2 = vmmov %vm8057_vm0 }
 0x350   : > { %4567 = vmatmul.msk.f32.gmra.mxu2 %vm8105_vm9, %v7062_v54  ;;  %v3384_v54 = vadd.f32 %v7461_v18, %v3361_v13  ;;  %vm8120_vm9 = vmmov %vm8057_vm0 }
 0x351   : > { %vm8121_vm15 = vmmov %vm8057_vm0 }
 0x356   : > { %4578 = vmatmul.msk.f32.vlgmr.msrb.gmra.mxu0 %vm8107_vm12, %v7312_v2  ;;  %4576 = vmatmul.msk.f32.gmra.mxu3 %vm8108_vm7, %v7069_v56  ;;  %v3375_v56 = vpop.f32.mrf.mxu3  ;;  %vm8122_vm12 = vmmov %vm8057_vm0 }
 0x357   : > { %v3376_v31 = vadd.f32 %v7455_v47, %v3375_v56 }
 0x359   : > { %v3389_v27 = vadd.f32 %v7461_v18, %v3376_v31 }
 0x35b   : > { %v3443_v61 = vpop.f32.mrf.mxu0 }
 0x35c   : > { %v7495_v33 = vadd.f32 %v3443_v61, %v3383_v29  ;;  %v3526_v19 = vpop.f32.mrf.mxu1  ;;  %v3630_v61 = vadd.f32 %v3606_v1, %v3547_v59 }
 0x35e   : > { %4579 = vmatmul.msk.f32.gmra.mxu0 %vm8109_vm13, %v7338_v48  ;;  %v3386_v48 = vadd.f32 %v7461_v18, %v3367_v38 }
 0x361   : > { %v3689_v58 = vpop.f32.mrf.mxu3 }
 0x362   : > { %v3713_v13 = vadd.f32 %v3689_v58, %v3630_v61 }
 0x363   : > { %v3446_v37 = vpop.f32.mrf.mxu0  ;;  %v3609_v34 = vpop.f32.mrf.mxu2 }
 0x364   : > { %v7501_v2 = vadd.f32 %v3446_v37, %v3384_v54  ;;  %v3529_v63 = vpop.f32.mrf.mxu1 }
 0x366   : > { %4580 = vmatmul.msk.f32.gmra.mxu0 %vm8110_vm8, %v7371_v51 }
 0x369   : > { %v3692_v11 = vpop.f32.mrf.mxu3 }
 0x36b   : > { %v3449_v3 = vpop.f32.mrf.mxu0  ;;  %v3612_v49 = vpop.f32.mrf.mxu2 }
 0x36c   : > { %v7507_v43 = vadd.f32 %v3449_v3, %v3385_v14  ;;  %v3532_v35 = vpop.f32.mrf.mxu1  ;;  %v3548_v14 = vadd.f32 %v3526_v19, %v7495_v33 }
 0x36e   : > { %4581 = vmatmul.msk.f32.gmra.mxu0 %vm8111_vm1, %v7392_v16  ;;  %v3373_v16 = vadd.f32 %v7455_v47, %v3372_v50  ;;  %v3631_v3 = vadd.f32 %v3609_v34, %v3548_v14 }
 0x370   : > { %v3388_v9 = vadd.f32 %v7461_v18, %v3373_v16 }
 0x371   : > { %v3695_v17 = vpop.f32.mrf.mxu3 }
 0x373   : > { %v3452_v4 = vpop.f32.mrf.mxu0  ;;  %v3615_v12 = vpop.f32.mrf.mxu2 }
 0x374   : > { %v7513_v51 = vadd.f32 %v3452_v4, %v3386_v48  ;;  %v7535_v0 = vpop.f32.mrf.mxu1  ;;  %v3714_v48 = vadd.f32 %v3692_v11, %v3631_v3 }
 0x376   : > { %4582 = vmatmul.msk.f32.gmra.mxu0 %vm8112_vm5, %v7404_v8 }
 0x379   : > { %v7533_v39 = vpop.f32.mrf.mxu3 }
 0x37b   : > { %v3455_v26 = vpop.f32.mrf.mxu0  ;;  %v7537_v28 = vpop.f32.mrf.mxu2 }
 0x37c   : > { %v7519_v53 = vadd.f32 %v3455_v26, %v3387_v62  ;;  %v3549_v62 = vadd.f32 %v3529_v63, %v7501_v2 }
 0x37e   : > { %4583 = vmatmul.msk.f32.gmra.mxu0 %vm8113_vm4, %v7413_v22  ;;  %v7541_v22 = vpop.f32.mrf.mxu1 }
 0x381   : > { %v7539_v41 = vpop.f32.mrf.mxu3 }
 0x383   : > { %v3458_v24 = vpop.f32.mrf.mxu0  ;;  %v7543_v60 = vpop.f32.mrf.mxu2 }
 0x384   : > { %v7525_v30 = vadd.f32 %v3458_v24, %v3388_v9  ;;  %v3632_v9 = vadd.f32 %v3612_v49, %v3549_v62 }
 0x386   : > { %4584 = vmatmul.msk.f32.gmra.mxu0 %vm8114_vm3, %v3811_v55  ;;  %v7547_v47 = vpop.f32.mrf.mxu1  ;;  %v3715_v33 = vadd.f32 %v3695_v17, %v3632_v9 }
 0x389   : > { %v7545_v32 = vpop.f32.mrf.mxu3 }
 0x38b   : > { %v3461_v8 = vpop.f32.mrf.mxu0 }
 0x38c   : > { %v7529_v5 = vadd.f32 %v3461_v8, %v3389_v27  ;;  %v3550_v27 = vadd.f32 %v3532_v35, %v7507_v43 }
 0x38e   : > { %4585 = vmatmul.msk.f32.gmra.mxu0 %vm8115_vm11, %v7113_v20  ;;  %v7549_v20 = vpop.f32.mrf.mxu2  ;;  %v7555_v10 = vpop.f32.mrf.mxu1  ;;  %v3633_v63 = vadd.f32 %v3615_v12, %v3550_v27 }
 0x391   : > { %v7551_v21 = vpop.f32.mrf.mxu3 }
 0x393   : > { %v3772_v25 = vpop.f32.mrf.mxu0 }
 0x394   : > { %v3796_v37 = vadd.f32 %v3772_v25, %v3713_v13 }
 0x396   : > { %v7557_v44 = vpop.f32.mrf.mxu2  ;;  %v3855_v23 = vpop.f32.mrf.mxu1 }
 0x397   : > { %v3879_v38 = vadd.f32 %v3855_v23, %v3796_v37  ;;  %v3716_v23 = vadd.f32 %v7533_v39, %v3633_v63 }
 0x399   : > { %v7559_v45 = vpop.f32.mrf.mxu3 }
 0x39b   : > { %v3775_v57 = vpop.f32.mrf.mxu0 }
 0x39c   : > { %v3797_v7 = vadd.f32 %v3775_v57, %v3714_v48 }
 0x39e   : > { %v3938_v55 = vpop.f32.mrf.mxu2  ;;  %v3858_v50 = vpop.f32.mrf.mxu1 }
 0x39f   : > { %v3962_v4 = vadd.f32 %v3938_v55, %v3879_v38  ;;  %v3880_v24 = vadd.f32 %v3858_v50, %v3797_v7 }
 0x3a1   : > { %v4021_v46 = vpop.f32.mrf.mxu3 }
 0x3a2   : > { %v4045_v36 = vadd.f32 %v4021_v46, %v3962_v4 }
 0x3a3   : > { %v3778_v6 = vpop.f32.mrf.mxu0 }
 0x3a4   : > { %v3798_v34 = vadd.f32 %v3778_v6, %v3715_v33  ;;  %v3551_v6 = vadd.f32 %v7535_v0, %v7513_v51  ;;  %v3552_v51 = vadd.f32 %v7541_v22, %v7519_v53  ;;  %v3553_v53 = vadd.f32 %v7547_v47, %v7525_v30 }
 0x3a5   : > { %v3554_v30 = vadd.f32 %v7555_v10, %v7529_v5 }
 0x3a6   : > { %v3941_v54 = vpop.f32.mrf.mxu2  ;;  %v3861_v40 = vpop.f32.mrf.mxu1  ;;  %v3634_v43 = vadd.f32 %v7537_v28, %v3551_v6  ;;  %v3635_v28 = vadd.f32 %v7543_v60, %v3552_v51  ;;  %v3636_v60 = vadd.f32 %v7549_v20, %v3553_v53 }
 0x3a7   : > { %v3963_v19 = vadd.f32 %v3941_v54, %v3880_v24  ;;  %v3881_v49 = vadd.f32 %v3861_v40, %v3798_v34  ;;  %v3637_v20 = vadd.f32 %v7557_v44, %v3554_v30 }
 0x3a8   : > { %v3717_v50 = vadd.f32 %v7539_v41, %v3634_v43  ;;  %v3718_v3 = vadd.f32 %v7545_v32, %v3635_v28  ;;  %v3719_v32 = vadd.f32 %v7551_v21, %v3636_v60 }
 0x3a9   : > { %v4024_v15 = vpop.f32.mrf.mxu3  ;;  %v3720_v21 = vadd.f32 %v7559_v45, %v3637_v20 }
 0x3aa   : > { %v4046_v11 = vadd.f32 %v4024_v15, %v3963_v19 }
 0x3ab   : > { %v3781_v42 = vpop.f32.mrf.mxu0 }
 0x3ac   : > { %v3799_v46 = vadd.f32 %v3781_v42, %v3716_v23 }
 0x3ae   : > { %v3944_v1 = vpop.f32.mrf.mxu2  ;;  %v3864_v8 = vpop.f32.mrf.mxu1 }
 0x3af   : > { %v3964_v55 = vadd.f32 %v3944_v1, %v3881_v49  ;;  %v3882_v35 = vadd.f32 %v3864_v8, %v3799_v46 }
 0x3b1   : > { %v4027_v16 = vpop.f32.mrf.mxu3 }
 0x3b2   : > { %v4047_v17 = vadd.f32 %v4027_v16, %v3964_v55 }
 0x3b3   : > { %v7553_v18 = vpop.f32.mrf.mxu0 }
 0x3b4   : > { %v3800_v42 = vadd.f32 %v7553_v18, %v3717_v50 }
 0x3b6   : > { %v3947_v2 = vpop.f32.mrf.mxu2  ;;  %v3867_v13 = vpop.f32.mrf.mxu1 }
 0x3b7   : > { %v3965_v54 = vadd.f32 %v3947_v2, %v3882_v35  ;;  %v3883_v14 = vadd.f32 %v3867_v13, %v3800_v42 }
 0x3b9   : > { %v4030_v57 = vpop.f32.mrf.mxu3 }
 0x3ba   : > { %v4048_v37 = vadd.f32 %v4030_v57, %v3965_v54 }
 0x3bb   : > { %v7561_v52 = vpop.f32.mrf.mxu0 }
 0x3bc   : > { %v3801_v4 = vadd.f32 %v7561_v52, %v3718_v3 }
 0x3be   : > { %v3950_v12 = vpop.f32.mrf.mxu2  ;;  %v3870_v41 = vpop.f32.mrf.mxu1 }
 0x3bf   : > { %v3966_v38 = vadd.f32 %v3950_v12, %v3883_v14  ;;  %v3884_v40 = vadd.f32 %v3870_v41, %v3801_v4 }
 0x3c1   : > { %v4033_v39 = vpop.f32.mrf.mxu3 }
 0x3c2   : > { %v4049_v18 = vadd.f32 %v4033_v39, %v3966_v38 }
 0x3c3   : > { %v7564_v29 = vpop.f32.mrf.mxu0 }
 0x3c6   : > { %v3953_v48 = vpop.f32.mrf.mxu2  ;;  %v3873_v52 = vpop.f32.mrf.mxu1 }
 0x3c7   : > { %v3967_v1 = vadd.f32 %v3953_v48, %v3884_v40 }
 0x3c9   : > { %v4036_v7 = vpop.f32.mrf.mxu3 }
 0x3ca   : > { %v4050_v62 = vadd.f32 %v4036_v7, %v3967_v1 }
 0x3cb   : > { %v7566_v56 = vpop.f32.mrf.mxu0 }
 0x3cc   : > { %v3803_v33 = vadd.f32 %v7566_v56, %v3720_v21 }
 0x3ce   : > { %v3876_v5 = vpop.f32.mrf.mxu1 }
 0x3d1   : > { %v4039_v9 = vpop.f32.mrf.mxu3 }
 0x3d3   : > { %v4104_v58 = vpop.f32.mrf.mxu0 }
 0x3d4   : > { %v4128_v26 = vadd.f32 %v4104_v58, %v4045_v36  ;;  %v3802_v58 = vadd.f32 %v7564_v29, %v3719_v32 }
 0x3d6   : > { %4136 = vst.msk [vmem:[%s7573_s19] sm:$0xff] %vm8116_vm6, %v4128_v26  ;;  %v3956_v26 = vpop.f32.mrf.mxu2  ;;  %v3885_v24 = vadd.f32 %v3873_v52, %v3802_v58 }
 0x3d8   : > { %v3968_v29 = vadd.f32 %v3956_v26, %v3885_v24 }
 0x3d9   : > { %v4042_v44 = vpop.f32.mrf.mxu3 }
 0x3da   : > { %v4051_v19 = vadd.f32 %v4039_v9, %v3968_v29 }
 0x3db   : > { %v4107_v31 = vpop.f32.mrf.mxu0 }
 0x3dc   : > { %v4129_v25 = vadd.f32 %v4107_v31, %v4046_v11  ;;  %v3886_v31 = vadd.f32 %v3876_v5, %v3803_v33 }
 0x3de   : > { %4137 = vst.msk [vmem:[%s7573_s19 + $0x8] sm:$0xff] %vm8117_vm10, %v4129_v25  ;;  %v3959_v10 = vpop.f32.mrf.mxu2 }
 0x3df   : > { %v3969_v45 = vadd.f32 %v3959_v10, %v3886_v31 }
 0x3e1   : > { %v4052_v56 = vadd.f32 %v4042_v44, %v3969_v45 }
 0x3e3   : > { %v4110_v59 = vpop.f32.mrf.mxu0 }
 0x3e4   : > { %v4130_v61 = vadd.f32 %v4110_v59, %v4047_v17 }
 0x3e6   : > { %4138 = vst.msk [vmem:[%s7573_s19 + $0x10] sm:$0xff] %vm8057_vm0, %v4130_v61 }
 0x3eb   : > { %v4113_v15 = vpop.f32.mrf.mxu0 }
 0x3ec   : > { %v4131_v0 = vadd.f32 %v4113_v15, %v4048_v37 }
 0x3ee   : > { %4139 = vst.msk [vmem:[%s7573_s19 + $0x18] sm:$0xff] %vm8118_vm14, %v4131_v0 }
 0x3f3   : > { %v4116_v36 = vpop.f32.mrf.mxu0 }
 0x3f4   : > { %v4132_v22 = vadd.f32 %v4116_v36, %v4049_v18 }
 0x3f6   : > { %4140 = vst.msk [vmem:[%s7573_s19 + $0x20] sm:$0xff] %vm8119_vm2, %v4132_v22 }
 0x3fb   : > { %v4119_v16 = vpop.f32.mrf.mxu0 }
 0x3fc   : > { %v4133_v47 = vadd.f32 %v4119_v16, %v4050_v62 }
 0x3fe   : > { %4141 = vst.msk [vmem:[%s7573_s19 + $0x28] sm:$0xff] %vm8120_vm9, %v4133_v47 }
 0x403   : > { %v4122_v34 = vpop.f32.mrf.mxu0 }
 0x404   : > { %v4134_v11 = vadd.f32 %v4122_v34, %v4051_v19 }
 0x406   : > { %4142 = vst.msk [vmem:[%s7573_s19 + $0x30] sm:$0xff] %vm8121_vm15, %v4134_v11 }
 0x40b   : > { %v4125_v27 = vpop.f32.mrf.mxu0 }
 0x40c   : > { %v4135_v8 = vadd.f32 %v4125_v27, %v4052_v56 }
 0x40e   : > { %4143 = vst.msk [vmem:[%s7573_s19 + $0x38] sm:$0xff] %vm8122_vm12, %v4135_v8 }
 0x40f   : > { %4942 = shalt.err (!%p4939_p3)
}
 0x410   : > { %s4980_s23 = smov 128   ;;  %s4981_s19 = smov 8  }
 0x411   : > { %4594 = dma.vmem_to_hbm [thread:$0]  (%p5085_p5), %s4158_s20, 1024, %s4160_s26, %s4145_s25, %s4980_s23, %s4980_s23, %s4981_s19  }
 0x412 PF: > { %p4600_p4 = scmp.ge.s32.totalorder %s4977_s24, 2  ;;  %s4174_s30 = sand.u32 1, %s4965_s21  }
 0x413   : > { %s4175_s15 = scalar_lea.sflag [#allocation4], %s4174_s30 }
 0x414   : > { %p4597_p7 = pnand %p4600_p4, %p5089_p6 }
 0x416   : > { %p4598_p8 = pneg %p4597_p7 }
 0x418   : > { %4960 = dma.done.wait (%p4598_p8), %s4175_s15, 1024  }
 0x419   : > { %4962 = vsyncadd (%p4598_p8), %s4175_s15, 4294966272  ;;  %s8123_s28 = sld [smem:[#allocation6_spill]]  ;;  %p22_p9 = scmp.ge.s32.totalorder %s5072_s27, 4  }
 0x41a   : > { %s8124_s23 = sld [smem:[#allocation7_spill]]  ;;  %s8125_s21 = smov %s4969_s22 }
 0x41b   : > { %s8127_s24 = smov %s5072_s27  ;;  %24 = sbr.rel (!%p22_p9) target bundleno = 3 (0x3), region = 135 }
 0x41f   : > { %s8126_s22 = smov %s8123_s28 }
 0x420   :  { %4181 = vsyncpa [#allocation4], 1 }
 0x421   :  { %4183 = vsyncpa [#allocation4 + $0x1], 1 }

</bundles_post_ra>
